<compile_context>
chip_gen: v6e
topology: v6e:2x2x1
jax: 0.10.0
libtpu: 0.0.40
codegen_flags: <defaults>
</compile_context>

<pallas_src>
import jax
import jax.numpy as jnp
from jax.experimental import pallas as pl
from jax.experimental.pallas import tpu as pltpu


# ----------------------------------------------------------------------------
# Model dimensions (latent must be 1024: z_p = randn(batch, 1024) in reference)
# ----------------------------------------------------------------------------
GESTURE_DIM = 256
ENC_HIDDEN = 256
LATENT_DIM = 1024
MUSIC_DIM = 512
DISC_HIDDEN = 256
SCORE_PAD = 128       # lane-dense padding of the 1-wide score head


# ----------------------------------------------------------------------------
# Single fused Pallas kernel for the whole forward pass
# ----------------------------------------------------------------------------
def _vae_transgan_kernel(
    # data inputs
    gesture_ref, music_real_ref, eps_ref, zp_ref,
    # parameters (weights bf16, biases f32)
    enc_w1_ref, enc_b1_ref, enc_wmv_ref, enc_bmv_ref,
    gen_w_ref, gen_b_ref,
    disc_w1_ref, disc_b1_ref, disc_w2_ref, disc_b2_ref,
    # outputs
    mean_ref, logvar_ref,
    real_score_ref, fake_score_ref, noise_score_ref,
    real_layer_ref, fake_layer_ref,
):
    f32 = jnp.float32
    bf16 = jnp.bfloat16

    # ---- gesture encoder: h = relu(gesture @ W1 + b1) ----
    g = gesture_ref[...].astype(bf16)
    h = jnp.dot(g, enc_w1_ref[...], preferred_element_type=f32) + enc_b1_ref[...]
    h = jnp.maximum(h, 0.0)

    # ---- fused mean / log_var head: one (256, 2048) MXU pass ----
    mv = jnp.dot(h.astype(bf16), enc_wmv_ref[...], preferred_element_type=f32)
    mv = mv + enc_bmv_ref[...]
    mean = mv[:, :LATENT_DIM]
    log_var = mv[:, LATENT_DIM:]
    mean_ref[...] = mean
    logvar_ref[...] = log_var

    # ---- reparameterize: z = mean + eps * exp(log_var / 2)  (VPU + EUP) ----
    z = mean + eps_ref[...] * jnp.exp(log_var * 0.5)

    # ---- music generator (weights resident in VMEM, reused twice) ----
    def generator(x_f32):
        y = jnp.dot(x_f32.astype(bf16), gen_w_ref[...], preferred_element_type=f32)
        return jnp.tanh(y + gen_b_ref[...])

    music_fake = generator(z)
    music_noise = generator(zp_ref[...])

    # ---- discriminator (weights resident in VMEM, reused three times) ----
    def discriminator(m_f32):
        layer = jnp.dot(m_f32.astype(bf16), disc_w1_ref[...],
                        preferred_element_type=f32)
        layer = jnp.maximum(layer + disc_b1_ref[...], 0.0)
        # lane-padded (Hd, 128) weight -> lane-dense (B, 128) score output
        score = jnp.dot(layer.astype(bf16), disc_w2_ref[...],
                        preferred_element_type=f32) + disc_b2_ref[...]
        return score, layer

    real_score, real_layer = discriminator(music_real_ref[...])
    fake_score, fake_layer = discriminator(music_fake)
    noise_score, _ = discriminator(music_noise)

    real_score_ref[...] = real_score
    fake_score_ref[...] = fake_score
    noise_score_ref[...] = noise_score
    real_layer_ref[...] = real_layer
    fake_layer_ref[...] = fake_layer


# ----------------------------------------------------------------------------
# Parameters
# ----------------------------------------------------------------------------
def init_params(key):
    ks = jax.random.split(key, 6)

    def dense(k, fan_in, fan_out):
        scale = 1.0 / jnp.sqrt(jnp.float32(fan_in))
        w = jax.random.uniform(k, (fan_in, fan_out), jnp.float32, -scale, scale)
        b = jnp.zeros((1, fan_out), jnp.float32)
        return w, b

    enc_w1, enc_b1 = dense(ks[0], GESTURE_DIM, ENC_HIDDEN)
    enc_wm, enc_bm = dense(ks[1], ENC_HIDDEN, LATENT_DIM)
    enc_wv, enc_bv = dense(ks[2], ENC_HIDDEN, LATENT_DIM)
    gen_w, gen_b = dense(ks[3], LATENT_DIM, MUSIC_DIM)
    disc_w1, disc_b1 = dense(ks[4], MUSIC_DIM, DISC_HIDDEN)
    disc_w2, disc_b2 = dense(ks[5], DISC_HIDDEN, 1)

    # fuse mean / log_var heads into one (H, 2*LATENT) matmul
    enc_wmv = jnp.concatenate([enc_wm, enc_wv], axis=1)
    enc_bmv = jnp.concatenate([enc_bm, enc_bv], axis=1)

    # pad the 1-wide score head to 128 lanes (real weights in lane 0)
    disc_w2p = jnp.pad(disc_w2, ((0, 0), (0, SCORE_PAD - 1)))
    disc_b2p = jnp.pad(disc_b2, ((0, 0), (0, SCORE_PAD - 1)))

    bf = lambda w: w.astype(jnp.bfloat16)
    return {
        "enc_w1": bf(enc_w1), "enc_b1": enc_b1,
        "enc_wmv": bf(enc_wmv), "enc_bmv": enc_bmv,
        "gen_w": bf(gen_w), "gen_b": gen_b,
        "disc_w1": bf(disc_w1), "disc_b1": disc_b1,
        "disc_w2": bf(disc_w2p), "disc_b2": disc_b2p,
    }


# ----------------------------------------------------------------------------
# VAE_TransGAN.forward (single fused pallas_call)
# ----------------------------------------------------------------------------
def vae_transgan_forward(params, gesture, music_real, rng):
    batch = gesture.shape[0]

    # torch.randn_like(std) and torch.randn(batch, 1024) -> one normal draw
    noise = jax.random.normal(rng, (2 * batch, LATENT_DIM), jnp.float32)
    eps, z_p = noise[:batch], noise[batch:]

    def full_spec(shape):
        return pl.BlockSpec(shape, lambda: (0,) * len(shape))

    p = params
    inputs = (
        gesture, music_real, eps, z_p,
        p["enc_w1"], p["enc_b1"], p["enc_wmv"], p["enc_bmv"],
        p["gen_w"], p["gen_b"],
        p["disc_w1"], p["disc_b1"], p["disc_w2"], p["disc_b2"],
    )

    out_shapes = (
        jax.ShapeDtypeStruct((batch, LATENT_DIM), jnp.float32),    # mean
        jax.ShapeDtypeStruct((batch, LATENT_DIM), jnp.float32),    # log_var
        jax.ShapeDtypeStruct((batch, SCORE_PAD), jnp.float32),     # real score (padded)
        jax.ShapeDtypeStruct((batch, SCORE_PAD), jnp.float32),     # fake score (padded)
        jax.ShapeDtypeStruct((batch, SCORE_PAD), jnp.float32),     # noise score (padded)
        jax.ShapeDtypeStruct((batch, DISC_HIDDEN), jnp.float32),   # real layer
        jax.ShapeDtypeStruct((batch, DISC_HIDDEN), jnp.float32),   # fake layer
    )

    outs = pl.pallas_call(
        _vae_transgan_kernel,
        out_shape=out_shapes,
        in_specs=[full_spec(x.shape) for x in inputs],
        out_specs=tuple(full_spec(s.shape) for s in out_shapes),
        compiler_params=pltpu.CompilerParams(vmem_limit_bytes=16 << 20),
    )(*inputs)

    mean, log_var, real_s, fake_s, noise_s, real_layer, fake_layer = outs
    # extract the real score from lane 0 of the lane-dense padded outputs
    real_score = real_s[:, :1]
    fake_score = fake_s[:, :1]
    noise_score = noise_s[:, :1]
    return (mean, log_var, real_score, fake_score, noise_score,
            real_layer, fake_layer)


if __name__ == "__main__":
    key = jax.random.PRNGKey(0)
    k_params, k_gesture, k_music, k_fwd = jax.random.split(key, 4)

    params = init_params(k_params)

    B = 2
    gesture = jax.random.normal(k_gesture, (B, GESTURE_DIM), jnp.float32)
    music_real = jax.random.normal(k_music, (B, MUSIC_DIM), jnp.float32)

    outs = jax.jit(vae_transgan_forward)(params, gesture, music_real, k_fwd)
    outs = jax.block_until_ready(outs)

    (mean, log_var, real_score, fake_score, noise_score,
     real_layer, fake_layer) = outs
    assert mean.shape == (B, LATENT_DIM)
    assert log_var.shape == (B, LATENT_DIM)
    assert real_score.shape == (B, 1)
    assert fake_score.shape == (B, 1)
    assert noise_score.shape == (B, 1)
    assert real_layer.shape == (B, DISC_HIDDEN)
    assert fake_layer.shape == (B, DISC_HIDDEN)
    assert all(bool(jnp.all(jnp.isfinite(o))) for o in outs)

    print("KERNEL_OK")
</pallas_src>

<mosaic_0001>
module attributes {stable_mosaic.version = 11 : i64} {
  func.func @_vae_transgan_kernel(%arg0: memref<2x256xf32, #tpu.memory_space<vmem>>, %arg1: memref<2x512xf32, #tpu.memory_space<vmem>>, %arg2: memref<2x1024xf32, #tpu.memory_space<vmem>>, %arg3: memref<2x1024xf32, #tpu.memory_space<vmem>>, %arg4: memref<256x256xbf16, #tpu.memory_space<vmem>>, %arg5: memref<1x256xf32, #tpu.memory_space<vmem>>, %arg6: memref<256x2048xbf16, #tpu.memory_space<vmem>>, %arg7: memref<1x2048xf32, #tpu.memory_space<vmem>>, %arg8: memref<1024x512xbf16, #tpu.memory_space<vmem>>, %arg9: memref<1x512xf32, #tpu.memory_space<vmem>>, %arg10: memref<512x256xbf16, #tpu.memory_space<vmem>>, %arg11: memref<1x256xf32, #tpu.memory_space<vmem>>, %arg12: memref<256x128xbf16, #tpu.memory_space<vmem>>, %arg13: memref<1x128xf32, #tpu.memory_space<vmem>>, %arg14: memref<2x1024xf32, #tpu.memory_space<vmem>>, %arg15: memref<2x1024xf32, #tpu.memory_space<vmem>>, %arg16: memref<2x128xf32, #tpu.memory_space<vmem>>, %arg17: memref<2x128xf32, #tpu.memory_space<vmem>>, %arg18: memref<2x128xf32, #tpu.memory_space<vmem>>, %arg19: memref<2x256xf32, #tpu.memory_space<vmem>>, %arg20: memref<2x256xf32, #tpu.memory_space<vmem>>) attributes {dimension_semantics = [], scalar_prefetch = 0 : i64, scratch_operands = 0 : i64, tpu.core_type = #tpu.core_type<tc>} {
    %c0 = arith.constant 0 : index
    %c0_0 = arith.constant 0 : index
    %0 = vector.load %arg0[%c0, %c0_0] : memref<2x256xf32, #tpu.memory_space<vmem>>, vector<2x256xf32>
    %1 = arith.truncf %0 : vector<2x256xf32> to vector<2x256xbf16>
    %c0_1 = arith.constant 0 : index
    %c0_2 = arith.constant 0 : index
    %2 = vector.load %arg4[%c0_1, %c0_2] : memref<256x256xbf16, #tpu.memory_space<vmem>>, vector<256x256xbf16>
    %cst = arith.constant dense<0.000000e+00> : vector<2x256xf32>
    %3 = tpu.matmul %1, %2, %cst {dimension_numbers = #tpu.dot_dimension_numbers<[1], [0], [0], [1], [0, 0, 1, 1], [], []>} : vector<2x256xbf16>, vector<256x256xbf16>, vector<2x256xf32> -> vector<2x256xf32>
    %c0_3 = arith.constant 0 : index
    %c0_4 = arith.constant 0 : index
    %4 = vector.load %arg5[%c0_3, %c0_4] : memref<1x256xf32, #tpu.memory_space<vmem>>, vector<1x256xf32>
    %5 = vector.broadcast %4 : vector<1x256xf32> to vector<2x256xf32>
    %6 = arith.addf %3, %5 : vector<2x256xf32>
    %cst_5 = arith.constant 0.000000e+00 : f32
    %7 = vector.broadcast %cst_5 : f32 to vector<2x256xf32>
    %8 = arith.maximumf %6, %7 : vector<2x256xf32>
    %9 = arith.truncf %8 : vector<2x256xf32> to vector<2x256xbf16>
    %c0_6 = arith.constant 0 : index
    %c0_7 = arith.constant 0 : index
    %10 = vector.load %arg6[%c0_6, %c0_7] : memref<256x2048xbf16, #tpu.memory_space<vmem>>, vector<256x2048xbf16>
    %cst_8 = arith.constant dense<0.000000e+00> : vector<2x2048xf32>
    %11 = tpu.matmul %9, %10, %cst_8 {dimension_numbers = #tpu.dot_dimension_numbers<[1], [0], [0], [1], [0, 0, 1, 1], [], []>} : vector<2x256xbf16>, vector<256x2048xbf16>, vector<2x2048xf32> -> vector<2x2048xf32>
    %c0_9 = arith.constant 0 : index
    %c0_10 = arith.constant 0 : index
    %12 = vector.load %arg7[%c0_9, %c0_10] : memref<1x2048xf32, #tpu.memory_space<vmem>>, vector<1x2048xf32>
    %13 = vector.broadcast %12 : vector<1x2048xf32> to vector<2x2048xf32>
    %14 = arith.addf %11, %13 : vector<2x2048xf32>
    %15 = vector.extract_strided_slice %14 {offsets = [0, 0], sizes = [2, 1024], strides = [1, 1]} : vector<2x2048xf32> to vector<2x1024xf32>
    %16 = vector.extract_strided_slice %14 {offsets = [0, 1024], sizes = [2, 1024], strides = [1, 1]} : vector<2x2048xf32> to vector<2x1024xf32>
    %c0_11 = arith.constant 0 : index
    %c0_12 = arith.constant 0 : index
    %17 = vector.load %arg14[%c0_11, %c0_12] : memref<2x1024xf32, #tpu.memory_space<vmem>>, vector<2x1024xf32>
    tpu.vector_store %arg14[%c0_11, %c0_12], %15 {strides = array<i32>} : memref<2x1024xf32, #tpu.memory_space<vmem>>, vector<2x1024xf32>,
    %c0_13 = arith.constant 0 : index
    %c0_14 = arith.constant 0 : index
    %18 = vector.load %arg15[%c0_13, %c0_14] : memref<2x1024xf32, #tpu.memory_space<vmem>>, vector<2x1024xf32>
    tpu.vector_store %arg15[%c0_13, %c0_14], %16 {strides = array<i32>} : memref<2x1024xf32, #tpu.memory_space<vmem>>, vector<2x1024xf32>,
    %c0_15 = arith.constant 0 : index
    %c0_16 = arith.constant 0 : index
    %19 = vector.load %arg2[%c0_15, %c0_16] : memref<2x1024xf32, #tpu.memory_space<vmem>>, vector<2x1024xf32>
    %cst_17 = arith.constant 5.000000e-01 : f32
    %20 = vector.broadcast %cst_17 : f32 to vector<2x1024xf32>
    %21 = arith.mulf %16, %20 : vector<2x1024xf32>
    %22 = math.exp %21 : vector<2x1024xf32>
    %23 = arith.mulf %19, %22 : vector<2x1024xf32>
    %24 = arith.addf %15, %23 : vector<2x1024xf32>
    %25 = arith.truncf %24 : vector<2x1024xf32> to vector<2x1024xbf16>
    %c0_18 = arith.constant 0 : index
    %c0_19 = arith.constant 0 : index
    %26 = vector.load %arg8[%c0_18, %c0_19] : memref<1024x512xbf16, #tpu.memory_space<vmem>>, vector<1024x512xbf16>
    %cst_20 = arith.constant dense<0.000000e+00> : vector<2x512xf32>
    %27 = tpu.matmul %25, %26, %cst_20 {dimension_numbers = #tpu.dot_dimension_numbers<[1], [0], [0], [1], [0, 0, 1, 1], [], []>} : vector<2x1024xbf16>, vector<1024x512xbf16>, vector<2x512xf32> -> vector<2x512xf32>
    %c0_21 = arith.constant 0 : index
    %c0_22 = arith.constant 0 : index
    %28 = vector.load %arg9[%c0_21, %c0_22] : memref<1x512xf32, #tpu.memory_space<vmem>>, vector<1x512xf32>
    %29 = vector.broadcast %28 : vector<1x512xf32> to vector<2x512xf32>
    %30 = arith.addf %27, %29 : vector<2x512xf32>
    %31 = math.tanh %30 : vector<2x512xf32>
    %c0_23 = arith.constant 0 : index
    %c0_24 = arith.constant 0 : index
    %32 = vector.load %arg3[%c0_23, %c0_24] : memref<2x1024xf32, #tpu.memory_space<vmem>>, vector<2x1024xf32>
    %33 = arith.truncf %32 : vector<2x1024xf32> to vector<2x1024xbf16>
    %c0_25 = arith.constant 0 : index
    %c0_26 = arith.constant 0 : index
    %34 = vector.load %arg8[%c0_25, %c0_26] : memref<1024x512xbf16, #tpu.memory_space<vmem>>, vector<1024x512xbf16>
    %cst_27 = arith.constant dense<0.000000e+00> : vector<2x512xf32>
    %35 = tpu.matmul %33, %34, %cst_27 {dimension_numbers = #tpu.dot_dimension_numbers<[1], [0], [0], [1], [0, 0, 1, 1], [], []>} : vector<2x1024xbf16>, vector<1024x512xbf16>, vector<2x512xf32> -> vector<2x512xf32>
    %c0_28 = arith.constant 0 : index
    %c0_29 = arith.constant 0 : index
    %36 = vector.load %arg9[%c0_28, %c0_29] : memref<1x512xf32, #tpu.memory_space<vmem>>, vector<1x512xf32>
    %37 = vector.broadcast %36 : vector<1x512xf32> to vector<2x512xf32>
    %38 = arith.addf %35, %37 : vector<2x512xf32>
    %39 = math.tanh %38 : vector<2x512xf32>
    %c0_30 = arith.constant 0 : index
    %c0_31 = arith.constant 0 : index
    %40 = vector.load %arg1[%c0_30, %c0_31] : memref<2x512xf32, #tpu.memory_space<vmem>>, vector<2x512xf32>
    %41 = arith.truncf %40 : vector<2x512xf32> to vector<2x512xbf16>
    %c0_32 = arith.constant 0 : index
    %c0_33 = arith.constant 0 : index
    %42 = vector.load %arg10[%c0_32, %c0_33] : memref<512x256xbf16, #tpu.memory_space<vmem>>, vector<512x256xbf16>
    %cst_34 = arith.constant dense<0.000000e+00> : vector<2x256xf32>
    %43 = tpu.matmul %41, %42, %cst_34 {dimension_numbers = #tpu.dot_dimension_numbers<[1], [0], [0], [1], [0, 0, 1, 1], [], []>} : vector<2x512xbf16>, vector<512x256xbf16>, vector<2x256xf32> -> vector<2x256xf32>
    %c0_35 = arith.constant 0 : index
    %c0_36 = arith.constant 0 : index
    %44 = vector.load %arg11[%c0_35, %c0_36] : memref<1x256xf32, #tpu.memory_space<vmem>>, vector<1x256xf32>
    %45 = vector.broadcast %44 : vector<1x256xf32> to vector<2x256xf32>
    %46 = arith.addf %43, %45 : vector<2x256xf32>
    %cst_37 = arith.constant 0.000000e+00 : f32
    %47 = vector.broadcast %cst_37 : f32 to vector<2x256xf32>
    %48 = arith.maximumf %46, %47 : vector<2x256xf32>
    %49 = arith.truncf %48 : vector<2x256xf32> to vector<2x256xbf16>
    %c0_38 = arith.constant 0 : index
    %c0_39 = arith.constant 0 : index
    %50 = vector.load %arg12[%c0_38, %c0_39] : memref<256x128xbf16, #tpu.memory_space<vmem>>, vector<256x128xbf16>
    %cst_40 = arith.constant dense<0.000000e+00> : vector<2x128xf32>
    %51 = tpu.matmul %49, %50, %cst_40 {dimension_numbers = #tpu.dot_dimension_numbers<[1], [0], [0], [1], [0, 0, 1, 1], [], []>} : vector<2x256xbf16>, vector<256x128xbf16>, vector<2x128xf32> -> vector<2x128xf32>
    %c0_41 = arith.constant 0 : index
    %c0_42 = arith.constant 0 : index
    %52 = vector.load %arg13[%c0_41, %c0_42] : memref<1x128xf32, #tpu.memory_space<vmem>>, vector<1x128xf32>
    %53 = vector.broadcast %52 : vector<1x128xf32> to vector<2x128xf32>
    %54 = arith.addf %51, %53 : vector<2x128xf32>
    %55 = arith.truncf %31 : vector<2x512xf32> to vector<2x512xbf16>
    %c0_43 = arith.constant 0 : index
    %c0_44 = arith.constant 0 : index
    %56 = vector.load %arg10[%c0_43, %c0_44] : memref<512x256xbf16, #tpu.memory_space<vmem>>, vector<512x256xbf16>
    %cst_45 = arith.constant dense<0.000000e+00> : vector<2x256xf32>
    %57 = tpu.matmul %55, %56, %cst_45 {dimension_numbers = #tpu.dot_dimension_numbers<[1], [0], [0], [1], [0, 0, 1, 1], [], []>} : vector<2x512xbf16>, vector<512x256xbf16>, vector<2x256xf32> -> vector<2x256xf32>
    %c0_46 = arith.constant 0 : index
    %c0_47 = arith.constant 0 : index
    %58 = vector.load %arg11[%c0_46, %c0_47] : memref<1x256xf32, #tpu.memory_space<vmem>>, vector<1x256xf32>
    %59 = vector.broadcast %58 : vector<1x256xf32> to vector<2x256xf32>
    %60 = arith.addf %57, %59 : vector<2x256xf32>
    %cst_48 = arith.constant 0.000000e+00 : f32
    %61 = vector.broadcast %cst_48 : f32 to vector<2x256xf32>
    %62 = arith.maximumf %60, %61 : vector<2x256xf32>
    %63 = arith.truncf %62 : vector<2x256xf32> to vector<2x256xbf16>
    %c0_49 = arith.constant 0 : index
    %c0_50 = arith.constant 0 : index
    %64 = vector.load %arg12[%c0_49, %c0_50] : memref<256x128xbf16, #tpu.memory_space<vmem>>, vector<256x128xbf16>
    %cst_51 = arith.constant dense<0.000000e+00> : vector<2x128xf32>
    %65 = tpu.matmul %63, %64, %cst_51 {dimension_numbers = #tpu.dot_dimension_numbers<[1], [0], [0], [1], [0, 0, 1, 1], [], []>} : vector<2x256xbf16>, vector<256x128xbf16>, vector<2x128xf32> -> vector<2x128xf32>
    %c0_52 = arith.constant 0 : index
    %c0_53 = arith.constant 0 : index
    %66 = vector.load %arg13[%c0_52, %c0_53] : memref<1x128xf32, #tpu.memory_space<vmem>>, vector<1x128xf32>
    %67 = vector.broadcast %66 : vector<1x128xf32> to vector<2x128xf32>
    %68 = arith.addf %65, %67 : vector<2x128xf32>
    %69 = arith.truncf %39 : vector<2x512xf32> to vector<2x512xbf16>
    %c0_54 = arith.constant 0 : index
    %c0_55 = arith.constant 0 : index
    %70 = vector.load %arg10[%c0_54, %c0_55] : memref<512x256xbf16, #tpu.memory_space<vmem>>, vector<512x256xbf16>
    %cst_56 = arith.constant dense<0.000000e+00> : vector<2x256xf32>
    %71 = tpu.matmul %69, %70, %cst_56 {dimension_numbers = #tpu.dot_dimension_numbers<[1], [0], [0], [1], [0, 0, 1, 1], [], []>} : vector<2x512xbf16>, vector<512x256xbf16>, vector<2x256xf32> -> vector<2x256xf32>
    %c0_57 = arith.constant 0 : index
    %c0_58 = arith.constant 0 : index
    %72 = vector.load %arg11[%c0_57, %c0_58] : memref<1x256xf32, #tpu.memory_space<vmem>>, vector<1x256xf32>
    %73 = vector.broadcast %72 : vector<1x256xf32> to vector<2x256xf32>
    %74 = arith.addf %71, %73 : vector<2x256xf32>
    %cst_59 = arith.constant 0.000000e+00 : f32
    %75 = vector.broadcast %cst_59 : f32 to vector<2x256xf32>
    %76 = arith.maximumf %74, %75 : vector<2x256xf32>
    %77 = arith.truncf %76 : vector<2x256xf32> to vector<2x256xbf16>
    %c0_60 = arith.constant 0 : index
    %c0_61 = arith.constant 0 : index
    %78 = vector.load %arg12[%c0_60, %c0_61] : memref<256x128xbf16, #tpu.memory_space<vmem>>, vector<256x128xbf16>
    %cst_62 = arith.constant dense<0.000000e+00> : vector<2x128xf32>
    %79 = tpu.matmul %77, %78, %cst_62 {dimension_numbers = #tpu.dot_dimension_numbers<[1], [0], [0], [1], [0, 0, 1, 1], [], []>} : vector<2x256xbf16>, vector<256x128xbf16>, vector<2x128xf32> -> vector<2x128xf32>
    %c0_63 = arith.constant 0 : index
    %c0_64 = arith.constant 0 : index
    %80 = vector.load %arg13[%c0_63, %c0_64] : memref<1x128xf32, #tpu.memory_space<vmem>>, vector<1x128xf32>
    %81 = vector.broadcast %80 : vector<1x128xf32> to vector<2x128xf32>
    %82 = arith.addf %79, %81 : vector<2x128xf32>
    %c0_65 = arith.constant 0 : index
    %c0_66 = arith.constant 0 : index
    %83 = vector.load %arg16[%c0_65, %c0_66] : memref<2x128xf32, #tpu.memory_space<vmem>>, vector<2x128xf32>
    tpu.vector_store %arg16[%c0_65, %c0_66], %54 {strides = array<i32>} : memref<2x128xf32, #tpu.memory_space<vmem>>, vector<2x128xf32>,
    %c0_67 = arith.constant 0 : index
    %c0_68 = arith.constant 0 : index
    %84 = vector.load %arg17[%c0_67, %c0_68] : memref<2x128xf32, #tpu.memory_space<vmem>>, vector<2x128xf32>
    tpu.vector_store %arg17[%c0_67, %c0_68], %68 {strides = array<i32>} : memref<2x128xf32, #tpu.memory_space<vmem>>, vector<2x128xf32>,
    %c0_69 = arith.constant 0 : index
    %c0_70 = arith.constant 0 : index
    %85 = vector.load %arg18[%c0_69, %c0_70] : memref<2x128xf32, #tpu.memory_space<vmem>>, vector<2x128xf32>
    tpu.vector_store %arg18[%c0_69, %c0_70], %82 {strides = array<i32>} : memref<2x128xf32, #tpu.memory_space<vmem>>, vector<2x128xf32>,
    %c0_71 = arith.constant 0 : index
    %c0_72 = arith.constant 0 : index
    %86 = vector.load %arg19[%c0_71, %c0_72] : memref<2x256xf32, #tpu.memory_space<vmem>>, vector<2x256xf32>
    tpu.vector_store %arg19[%c0_71, %c0_72], %48 {strides = array<i32>} : memref<2x256xf32, #tpu.memory_space<vmem>>, vector<2x256xf32>,
    %c0_73 = arith.constant 0 : index
    %c0_74 = arith.constant 0 : index
    %87 = vector.load %arg20[%c0_73, %c0_74] : memref<2x256xf32, #tpu.memory_space<vmem>>, vector<2x256xf32>
    tpu.vector_store %arg20[%c0_73, %c0_74], %62 {strides = array<i32>} : memref<2x256xf32, #tpu.memory_space<vmem>>, vector<2x256xf32>,
    return
  }
}

</mosaic_0001>

<bundles_post_ra>
// kernel: vae_transgan_forward.1
= control target key start
LH: loop header
LB: loop body
LE: loop exit
PB: predicated region body
PF: predicated region fallthrough
CT: control target
= control target key end

     0   :  { %s9133_s0 = inlined_call_operand.vmem [shape: f32[2,256], index: 0, kind: input, shape index: {}]   ;;  %s9134_s1 = inlined_call_operand.hbm [shape: f32[2,512], index: 1, kind: input, shape index: {}]   ;;  %s9135_s2 = inlined_call_operand.vmem [shape: f32[2,1024], index: 2, kind: input, shape index: {}]   ;;  %s9136_s3 = inlined_call_operand.vmem [shape: f32[2,1024], index: 3, kind: input, shape index: {}]   ;;  %s9137_s4 = inlined_call_operand.hbm [shape: bf16[256,256], index: 4, kind: input, shape index: {}]   ;;  %s9138_s5 = inlined_call_operand.vmem [shape: f32[1,256], index: 5, kind: input, shape index: {}]   ;;  %s9139_s6 = inlined_call_operand.hbm [shape: bf16[256,2048], index: 6, kind: input, shape index: {}]   ;;  %s9140_s7 = inlined_call_operand.vmem [shape: f32[1,2048], index: 7, kind: input, shape index: {}]   ;;  %s9141_s8 = inlined_call_operand.hbm [shape: bf16[1024,512], index: 8, kind: input, shape index: {}]   ;;  %s9142_s9 = inlined_call_operand.hbm [shape: f32[1,512], index: 9, kind: input, shape index: {}]   ;;  %s9143_s10 = inlined_call_operand.hbm [shape: bf16[512,256], index: 10, kind: input, shape index: {}]   ;;  %s9144_s11 = inlined_call_operand.hbm [shape: f32[1,256], index: 11, kind: input, shape index: {}]   ;;  %s9145_s12 = inlined_call_operand.vmem [shape: bf16[256,128], index: 12, kind: input, shape index: {}]   ;;  %s9146_s13 = inlined_call_operand.vmem [shape: f32[1,128], index: 13, kind: input, shape index: {}]   ;;  %s9147_s14 = inlined_call_operand.hbm [shape: f32[2,1024], index: 14, kind: output, shape index: {0}]   ;;  %s9148_s15 = inlined_call_operand.hbm [shape: f32[2,1024], index: 15, kind: output, shape index: {1}]   ;;  %s9149_s16 = inlined_call_operand.vmem [shape: f32[2,128], index: 16, kind: output, shape index: {2}]   ;;  %s9150_s17 = inlined_call_operand.vmem [shape: f32[2,128], index: 17, kind: output, shape index: {3}]   ;;  %s9151_s18 = inlined_call_operand.vmem [shape: f32[2,128], index: 18, kind: output, shape index: {4}]   ;;  %s9152_s19 = inlined_call_operand.hbm [shape: f32[2,256], index: 19, kind: output, shape index: {5}]   ;;  %s9153_s20 = inlined_call_operand.hbm [shape: f32[2,256], index: 20, kind: output, shape index: {6}]  }
   0x1   :  { %9353 = sst [smem:[#allocation154_spill]] %s9133_s0 }
   0x2   :  { %9354 = sst [smem:[#allocation155_spill]] %s9134_s1 }
   0x3   :  { %9355 = sst [smem:[#allocation156_spill]] %s9135_s2 }
   0x4   :  { %9356 = sst [smem:[#allocation157_spill]] %s9136_s3 }
   0x5   :  { %9357 = sst [smem:[#allocation158_spill]] %s9137_s4 }
   0x6   :  { %26 = vsyncpa [#allocation3], 0 }
   0x7   :  { %27 = vsyncpa [#allocation6], 0 }
   0x8   :  { %28 = vsyncpa [#allocation9], 0 }
   0x9   :  { %29 = vsyncpa [#allocation12], 0 }
   0xa   :  { %30 = vsyncpa [#allocation4], 0 }
   0xb   :  { %31 = vsyncpa [#allocation16], 0 }
   0xc   :  { %32 = vsyncpa [#allocation19], 0  ;;  %s7524_s1 = smov [#allocation5]  }
   0xd   :  { %s54_s22 = sshll.u32 %s7524_s1, 4  ;;  %s55_s22 = int_to_ptr.vmem [resolvable:$true] %s54_s22 }
   0xe   :  { %s7298_s23 = scalar_lea.vmem %s55_s22, 4096  ;;  %p7303_p1 = scmp.lt.s32.totalorder %s55_s22, %s55_s22 }
   0xf   :  { %p7299_p0 = scmp.ne.s32.totalorder %s55_s22, %s7298_s23  ;;  %p7304_p2 = scmp.lt.s32.totalorder %s7298_s23, %s7298_s23 }
  0x11   :  { %p7305_p3 = por %p7304_p2, %p7303_p1 }
  0x13   :  { %p7306_p4 = pnand %p7305_p3, %p7299_p0 }
  0x15   :  { %7309 = shalt.err (!%p7306_p4)
}
  0x16   :  { %s7525_s24 = smov 128   ;;  %s7526_s2 = smov 8  }
  0x17   :  { %s9358_s26 = sld [smem:[#allocation158_spill]]  ;;  %s7527_s27 = smov [#allocation8]  }
  0x18   :  { %s82_s28 = sshll.u32 %s7527_s27, 4  ;;  %s83_s28 = int_to_ptr.vmem [resolvable:$true] %s82_s28 }
  0x19   :  { %s7318_s4 = scalar_lea.vmem %s83_s28, 32768  ;;  %p7323_p6 = scmp.lt.s32.totalorder %s83_s28, %s83_s28 }
  0x1a   :  { %p7319_p5 = scmp.ne.s32.totalorder %s83_s28, %s7318_s4  ;;  %p7324_p7 = scmp.lt.s32.totalorder %s7318_s4, %s7318_s4 }
  0x1c   :  { %p7325_p8 = por %p7324_p7, %p7323_p6 }
  0x1d   :  { %60 = dma.hbm_to_vmem [thread:$0]  %s9358_s26, 4096, %s55_s22, [#allocation6], %s7525_s24, %s7525_s24, %s7526_s2  }
  0x1e   :  { %p7326_p9 = pnand %p7325_p8, %p7319_p5 }
  0x20   :  { %7329 = shalt.err (!%p7326_p9)
}
  0x21   :  { %s7528_s29 = smov 256   ;;  %s7529_s30 = smov 16  }
  0x22   :  { %88 = dma.hbm_to_vmem [thread:$0]  %s9141_s8, 32768, %s83_s28, [#allocation9], %s7528_s29, %s7528_s29, %s7529_s30  }
  0x23   :  { %s7530_s1 = smov [#allocation11]   ;;  %s7531_s25 = smov [#allocation2]  }
  0x24   :  { %s104_s23 = sshll.u32 %s7530_s1, 4  ;;  %s41_s22 = sshll.u32 %s7531_s25, 4  ;;  %s105_s23 = int_to_ptr.vmem [resolvable:$true] %s104_s23  ;;  %s42_s22 = int_to_ptr.vmem [resolvable:$true] %s41_s22 }
  0x25   :  { %s7338_s3 = scalar_lea.vmem %s105_s23, 8192  ;;  %p7343_p11 = scmp.lt.s32.totalorder %s105_s23, %s105_s23 }
  0x26   :  { %p7339_p10 = scmp.ne.s32.totalorder %s105_s23, %s7338_s3  ;;  %p7344_p12 = scmp.lt.s32.totalorder %s7338_s3, %s7338_s3 }
  0x28   :  { %p7345_p13 = por %p7344_p12, %p7343_p11 }
  0x2a   :  { %p7346_p0 = pnand %p7345_p13, %p7339_p10 }
  0x2c   :  { %7349 = shalt.err (!%p7346_p0)
}
  0x2d   :  { %110 = dma.hbm_to_vmem [thread:$0]  %s9143_s10, 8192, %s105_s23, [#allocation12], %s7525_s24, %s7525_s24, %s7526_s2  }
  0x2e   :  { %s7358_s8 = scalar_lea.vmem %s42_s22, 128  ;;  %p7363_p2 = scmp.lt.s32.totalorder %s42_s22, %s42_s22 }
  0x2f   :  { %p7359_p1 = scmp.ne.s32.totalorder %s42_s22, %s7358_s8  ;;  %p7364_p3 = scmp.lt.s32.totalorder %s7358_s8, %s7358_s8 }
  0x31   :  { %p7365_p4 = por %p7364_p3, %p7363_p2 }
  0x33   :  { %p7366_p5 = pnand %p7365_p4, %p7359_p1 }
  0x35   :  { %7369 = shalt.err (!%p7366_p5)
}
  0x36   :  { %s9359_s29 = sld [smem:[#allocation155_spill]]  ;;  %s7532_s30 = smov [#allocation7]  }
  0x37   :  { %s68_s0 = sshll.u32 %s7532_s30, 4  ;;  %s69_s0 = int_to_ptr.vmem [resolvable:$true] %s68_s0 }
  0x38   :  { %s7378_s21 = scalar_lea.vmem %s69_s0, 32768  ;;  %p7383_p7 = scmp.lt.s32.totalorder %s69_s0, %s69_s0 }
  0x39   :  { %p7379_p6 = scmp.ne.s32.totalorder %s69_s0, %s7378_s21  ;;  %p7384_p8 = scmp.lt.s32.totalorder %s7378_s21, %s7378_s21 }
  0x3b   :  { %p7385_p9 = por %p7384_p8, %p7383_p7 }
  0x3c   :  { %44 = dma.hbm_to_vmem [thread:$0]  %s9359_s29, 128, %s42_s22, [#allocation3]  }
  0x3d   :  { %p7386_p10 = pnand %p7385_p9, %p7379_p6 }
  0x3f   :  { %7389 = shalt.err (!%p7386_p10)
}
  0x40   :  { %s7533_s10 = smov 1024   ;;  %s7534_s24 = smov 64  }
  0x41   :  { %74 = dma.hbm_to_vmem [thread:$0]  %s9139_s6, 32768, %s69_s0, [#allocation6], %s7533_s10, %s7533_s10, %s7534_s24  }
  0x42   :  { %s7535_s23 = smov [#allocation10]   ;;  %s7536_s22 = smov [#allocation13]  }
  0x43   :  { %s95_s25 = sshll.u32 %s7535_s23, 4  ;;  %s117_s3 = sshll.u32 %s7536_s22, 4  ;;  %s96_s25 = int_to_ptr.vmem [resolvable:$true] %s95_s25  ;;  %s118_s3 = int_to_ptr.vmem [resolvable:$true] %s117_s3 }
  0x44   :  { %s7398_s26 = scalar_lea.vmem %s96_s25, 64  ;;  %p7403_p12 = scmp.lt.s32.totalorder %s96_s25, %s96_s25 }
  0x45   :  { %p7399_p11 = scmp.ne.s32.totalorder %s96_s25, %s7398_s26  ;;  %p7404_p13 = scmp.lt.s32.totalorder %s7398_s26, %s7398_s26 }
  0x47   :  { %p7405_p0 = por %p7404_p13, %p7403_p12 }
  0x49   :  { %p7406_p1 = pnand %p7405_p0, %p7399_p11 }
  0x4b   :  { %7409 = shalt.err (!%p7406_p1)
}
  0x4c   :  { %98 = dma.hbm_to_vmem [thread:$0]  %s9142_s9, 64, %s96_s25, [#allocation9]  }
  0x4d   :  { %s7418_s28 = scalar_lea.vmem %s118_s3, 32  ;;  %p7423_p3 = scmp.lt.s32.totalorder %s118_s3, %s118_s3 }
  0x4e   :  { %p7419_p2 = scmp.ne.s32.totalorder %s118_s3, %s7418_s28  ;;  %p7424_p4 = scmp.lt.s32.totalorder %s7418_s28, %s7418_s28 }
  0x50   :  { %p7425_p5 = por %p7424_p4, %p7423_p3 }
  0x52   :  { %p7426_p6 = pnand %p7425_p5, %p7419_p2 }
  0x54   :  { %7429 = shalt.err (!%p7426_p6)
}
  0x55   :  { %120 = dma.hbm_to_vmem [thread:$0]  %s9144_s11, 32, %s118_s3, [#allocation12]  }
  0x56   :  { %7510 = dma.done.wait [#allocation3], 128  }
  0x57   :  { %7511 = vsyncadd [#allocation3], 4294967168 }
  0x58   :  { %7512 = dma.done.wait [#allocation6], 36864  }
  0x59   :  { %7513 = vsyncadd [#allocation6], 4294930432 }
  0x5a   :  { %7514 = dma.done.wait [#allocation9], 32832  }
  0x5b   :  { %7515 = vsyncadd [#allocation9], 4294934464 }
  0x5c   :  { %7516 = dma.done.wait [#allocation12], 8224  }
  0x5d   :  { %7517 = vsyncadd [#allocation12], 4294959072  ;;  %v6612_v0 = vld [vmem:[#allocation5 + $0x74] ss:$8 sps:$4 sm:$0xff]   ;;  %v6614_v1 = vld [vmem:[#allocation5 + $0x70] ss:$8 sps:$4 sm:$0xff]  }
  0x5e   :  { %365 = vmatprep.subr.bf16.mxu0 %v6612_v0  ;;  %v6615_v2 = vld [vmem:[#allocation5 + $0x64] ss:$8 sps:$4 sm:$0xff]   ;;  %v6617_v3 = vld [vmem:[#allocation5 + $0x60] ss:$8 sps:$4 sm:$0xff]   ;;  %v6618_v4 = vld [vmem:[#allocation5 + $0x54] ss:$8 sps:$4 sm:$0xff]  }
  0x5f   :  { %366 = vmatpush1.bf16.msra.mxu0 %v6614_v1  ;;  %v6620_v5 = vld [vmem:[#allocation5 + $0x50] ss:$8 sps:$4 sm:$0xff]   ;;  %v6621_v6 = vld [vmem:[#allocation5 + $0x44] ss:$8 sps:$4 sm:$0xff]   ;;  %v6623_v7 = vld [vmem:[#allocation5 + $0x40] ss:$8 sps:$4 sm:$0xff]  }
  0x60   :  { %367 = vmatprep.subr.bf16.mxu0 %v6615_v2  ;;  %v6624_v8 = vld [vmem:[#allocation5 + $0x34] ss:$8 sps:$4 sm:$0xff]   ;;  %v6626_v9 = vld [vmem:[#allocation5 + $0x30] ss:$8 sps:$4 sm:$0xff]   ;;  %v6627_v10 = vld [vmem:[#allocation5 + $0x24] ss:$8 sps:$4 sm:$0xff]  }
  0x61   :  { %v6629_v11 = vld [vmem:[#allocation5 + $0x20] ss:$8 sps:$4 sm:$0xff]   ;;  %v6630_v12 = vld [vmem:[#allocation5 + $0x14] ss:$8 sps:$4 sm:$0xff]   ;;  %s9360_s29 = sld [smem:[#allocation154_spill]]  ;;  %s7538_s2 = smov [#allocation15]  }
  0x62   :  { %v522_v15 = vld [vmem:[#allocation7 + $0x380] sm:$0xff]  ;;  %v6632_v17 = vld [vmem:[#allocation5 + $0x10] ss:$8 sps:$4 sm:$0xff]   ;;  %v6636_v30 = vld [vmem:[#allocation5 + $0xf4] ss:$8 sps:$4 sm:$0xff]   ;;  %s9364_s1 = sld [smem:[#allocation156_spill]] }
  0x63   :  { %368 = vmatpush1.bf16.msra.mxu0 %v6617_v3  ;;  %v530_v16 = vld [vmem:[#allocation7 + $0x3c0] sm:$0xff]  ;;  %v6638_v34 = vld [vmem:[#allocation5 + $0xf0] ss:$8 sps:$4 sm:$0xff]   ;;  %v6642_v42 = vld [vmem:[#allocation5 + $0xd4] ss:$8 sps:$4 sm:$0xff]   ;;  %s9472_s26 = sld [smem:[#allocation157_spill]] }
  0x64   :  { %369 = vmatprep.subr.bf16.mxu0 %v6618_v4  ;;  %v6046_v18 = vcombine.high %v522_v15, %v530_v16  ;;  %v6045_v19 = vcombine.low %v522_v15, %v530_v16  ;;  %v506_v20 = vld [vmem:[#allocation7 + $0x300] sm:$0xff]  ;;  %v6644_v46 = vld [vmem:[#allocation5 + $0xd0] ss:$8 sps:$4 sm:$0xff]   ;;  %v6648_v52 = vld [vmem:[#allocation5 + $0xb4] ss:$8 sps:$4 sm:$0xff]  }
  0x65   :  { %v514_v21 = vld [vmem:[#allocation7 + $0x340] sm:$0xff]  ;;  %v6650_v57 = vld [vmem:[#allocation5 + $0xb0] ss:$8 sps:$4 sm:$0xff]   ;;  %v6654_v0 = vld [vmem:[#allocation5 + $0x94] ss:$8 sps:$4 sm:$0xff]  }
  0x66   :  { %v6633_v22 = vld [vmem:[#allocation5 + $0x4] ss:$8 sps:$4 sm:$0xff]   ;;  %v6030_v24 = vcombine.high %v506_v20, %v514_v21  ;;  %2030 = vmatprep.subr.bf16.mxu1 %v6046_v18  ;;  %v6029_v27 = vcombine.low %v506_v20, %v514_v21  ;;  %v6635_v28 = vld [vmem:[#allocation5] ss:$8 sps:$4 sm:$0xff]  }
  0x67   :  { %370 = vmatpush1.bf16.msra.mxu0 %v6620_v5  ;;  %v7677_v13 = vld.sshfl [vmem:[%s9360_s29] sm:$0x33 pattern:$0x76325410]  ;;  %v490_v25 = vld [vmem:[#allocation7 + $0x280] sm:$0xff]  ;;  %2031 = vmatpush1.bf16.msra.mxu1 %v6045_v19  ;;  %v507_v18 = vld [vmem:[#allocation7 + $0x308] sm:$0xff] }
  0x68   :  { %371 = vmatprep.subr.bf16.mxu0 %v6621_v6  ;;  %v156_v14 = vcombine.high %v7677_v13, %v7677_v13  ;;  %v498_v26 = vld [vmem:[#allocation7 + $0x2c0] sm:$0xff]  ;;  %2032 = vmatprep.subr.bf16.mxu1 %v6030_v24  ;;  %v6656_v5 = vld [vmem:[#allocation5 + $0x90] ss:$8 sps:$4 sm:$0xff]   ;;  %v515_v19 = vld [vmem:[#allocation7 + $0x348] sm:$0xff] }
  0x69   :  { %v6014_v29 = vcombine.high %v490_v25, %v498_v26  ;;  %v474_v31 = vld [vmem:[#allocation7 + $0x200] sm:$0xff]  ;;  %v6013_v33 = vcombine.low %v490_v25, %v498_v26 }
  0x6a   :  { %v160_v23 = vpack.c.bf16 %v156_v14, %v156_v14  ;;  %v482_v32 = vld [vmem:[#allocation7 + $0x240] sm:$0xff] }
  0x6b   :  { %372 = vmatpush1.bf16.msra.mxu0 %v6623_v7  ;;  %2033 = vmatpush1.bf16.msra.mxu1 %v6029_v27  ;;  %v5998_v35 = vcombine.high %v474_v31, %v482_v32  ;;  %v6639_v36 = vld [vmem:[#allocation5 + $0xe4] ss:$8 sps:$4 sm:$0xff]   ;;  %v5997_v39 = vcombine.low %v474_v31, %v482_v32  ;;  %v6641_v40 = vld [vmem:[#allocation5 + $0xe0] ss:$8 sps:$4 sm:$0xff]  }
  0x6c   :  { %373 = vmatprep.subr.bf16.mxu0 %v6624_v8  ;;  %397 = vmatprep.mubr.bf16.mxu0 %v160_v23  ;;  %v458_v37 = vld [vmem:[#allocation7 + $0x180] sm:$0xff]  ;;  %v491_v27 = vld [vmem:[#allocation7 + $0x288] sm:$0xff] }
  0x6d   :  { %2034 = vmatprep.subr.bf16.mxu1 %v6014_v29  ;;  %v466_v38 = vld [vmem:[#allocation7 + $0x1c0] sm:$0xff] }
  0x6e   :  { %v5982_v41 = vcombine.high %v458_v37, %v466_v38  ;;  %v442_v43 = vld [vmem:[#allocation7 + $0x100] sm:$0xff]  ;;  %v5981_v45 = vcombine.low %v458_v37, %v466_v38 }
  0x6f   :  { %374 = vmatpush1.bf16.msra.mxu0 %v6626_v9  ;;  %2035 = vmatpush1.bf16.msra.mxu1 %v6013_v33  ;;  %v450_v44 = vld [vmem:[#allocation7 + $0x140] sm:$0xff] }
  0x70   :  { %375 = vmatprep.subr.bf16.mxu0 %v6627_v10  ;;  %2036 = vmatprep.subr.bf16.mxu1 %v5998_v35  ;;  %v5966_v47 = vcombine.high %v442_v43, %v450_v44  ;;  %v6645_v48 = vld [vmem:[#allocation5 + $0xc4] ss:$8 sps:$4 sm:$0xff]   ;;  %v6647_v51 = vld [vmem:[#allocation5 + $0xc0] ss:$8 sps:$4 sm:$0xff]   ;;  %v5965_v53 = vcombine.low %v442_v43, %v450_v44 }
  0x71   :  { %v426_v49 = vld [vmem:[#allocation7 + $0x80] sm:$0xff]  ;;  %v523_v10 = vld [vmem:[#allocation7 + $0x388] sm:$0xff] }
  0x72   :  { %v434_v50 = vld [vmem:[#allocation7 + $0xc0] sm:$0xff]  ;;  %v483_v35 = vld [vmem:[#allocation7 + $0x248] sm:$0xff] }
  0x73   :  { %376 = vmatpush1.bf16.msra.mxu0 %v6629_v11  ;;  %2037 = vmatpush1.bf16.msra.mxu1 %v5997_v39  ;;  %v410_v54 = vld [vmem:[#allocation7] sm:$0xff]  ;;  %v5950_v56 = vcombine.high %v426_v49, %v434_v50  ;;  %v5949_v59 = vcombine.low %v426_v49, %v434_v50  ;;  %v531_v11 = vld [vmem:[#allocation7 + $0x3c8] sm:$0xff] }
  0x74   :  { %377 = vmatprep.subr.bf16.mxu0 %v6630_v12  ;;  %2038 = vmatprep.subr.bf16.mxu1 %v5982_v41  ;;  %v418_v55 = vld [vmem:[#allocation7 + $0x40] sm:$0xff]  ;;  %v6048_v21 = vcombine.high %v523_v10, %v531_v11  ;;  %v6047_v26 = vcombine.low %v523_v10, %v531_v11  ;;  %v467_v41 = vld [vmem:[#allocation7 + $0x1c8] sm:$0xff] }
  0x75   :  { %v6651_v58 = vld [vmem:[#allocation5 + $0xa4] ss:$8 sps:$4 sm:$0xff]   ;;  %v5934_v62 = vcombine.high %v410_v54, %v418_v55  ;;  %v6653_v63 = vld [vmem:[#allocation5 + $0xa0] ss:$8 sps:$4 sm:$0xff]   ;;  %v5933_v1 = vcombine.low %v410_v54, %v418_v55 }
  0x76   :  { %v650_v60 = vld [vmem:[#allocation7 + $0x780] sm:$0xff]  ;;  %v427_v50 = vld [vmem:[#allocation7 + $0x88] sm:$0xff] }
  0x77   :  { %378 = vmatpush1.bf16.msra.mxu0 %v6632_v17  ;;  %2039 = vmatpush1.bf16.msra.mxu1 %v5981_v45  ;;  %v658_v61 = vld [vmem:[#allocation7 + $0x7c0] sm:$0xff]  ;;  %v411_v54 = vld [vmem:[#allocation7 + $0x8] sm:$0xff] }
  0x78   :  { %379 = vmatprep.subr.bf16.mxu0 %v6633_v22  ;;  %2040 = vmatprep.subr.bf16.mxu1 %v5966_v47  ;;  %v634_v2 = vld [vmem:[#allocation7 + $0x700] sm:$0xff]  ;;  %v6174_v4 = vcombine.high %v650_v60, %v658_v61  ;;  %v6173_v7 = vcombine.low %v650_v60, %v658_v61  ;;  %v159_v22 = vpack.c.bf16 %v7677_v13, %v7677_v13  ;;  %v475_v13 = vld [vmem:[#allocation7 + $0x208] sm:$0xff] }
  0x79   :  { %v642_v3 = vld [vmem:[#allocation7 + $0x740] sm:$0xff]  ;;  %v6000_v43 = vcombine.high %v475_v13, %v483_v35  ;;  %v5999_v45 = vcombine.low %v475_v13, %v483_v35  ;;  %v451_v47 = vld [vmem:[#allocation7 + $0x148] sm:$0xff] }
  0x7a   :  { %v6657_v6 = vld [vmem:[#allocation5 + $0x84] ss:$8 sps:$4 sm:$0xff]   ;;  %v6158_v12 = vcombine.high %v634_v2, %v642_v3  ;;  %v6659_v14 = vld [vmem:[#allocation5 + $0x80] ss:$8 sps:$4 sm:$0xff]   ;;  %v6157_v15 = vcombine.low %v634_v2, %v642_v3 }
  0x7b   :  { %380 = vmatpush1.bf16.msra.mxu0 %v6635_v28  ;;  %2041 = vmatpush1.bf16.msra.mxu1 %v5965_v53  ;;  %v618_v8 = vld [vmem:[#allocation7 + $0x680] sm:$0xff]  ;;  %v499_v28 = vld [vmem:[#allocation7 + $0x2c8] sm:$0xff] }
  0x7c   :  { %381 = vmatprep.subr.bf16.mxu0 %v6636_v30  ;;  %2042 = vmatprep.subr.bf16.mxu1 %v5950_v56  ;;  %v626_v9 = vld [vmem:[#allocation7 + $0x6c0] sm:$0xff]  ;;  %v6032_v30 = vcombine.high %v507_v18, %v515_v19  ;;  %v6016_v37 = vcombine.high %v491_v27, %v499_v28  ;;  %v6015_v39 = vcombine.low %v491_v27, %v499_v28  ;;  %v419_v55 = vld [vmem:[#allocation7 + $0x48] sm:$0xff] }
  0x7d   :  { %v602_v16 = vld [vmem:[#allocation7 + $0x600] sm:$0xff]  ;;  %v6142_v20 = vcombine.high %v618_v8, %v626_v9  ;;  %v6141_v23 = vcombine.low %v618_v8, %v626_v9  ;;  %v5936_v60 = vcombine.high %v411_v54, %v419_v55  ;;  %v5935_v61 = vcombine.low %v411_v54, %v419_v55  ;;  %v619_v2 = vld [vmem:[#allocation7 + $0x688] sm:$0xff] }
  0x7e   :  { %v610_v17 = vld [vmem:[#allocation7 + $0x640] sm:$0xff]  ;;  %v627_v3 = vld [vmem:[#allocation7 + $0x6c8] sm:$0xff] }
  0x7f   :  { %382 = vmatpush2.bf16.msra.mxu0 %v6638_v34  ;;  %2043 = vmatpush1.bf16.msra.mxu1 %v5949_v59  ;;  %v586_v24 = vld [vmem:[#allocation7 + $0x580] sm:$0xff]  ;;  %v6126_v29 = vcombine.high %v602_v16, %v610_v17  ;;  %v6125_v31 = vcombine.low %v602_v16, %v610_v17  ;;  %v6031_v34 = vcombine.low %v507_v18, %v515_v19  ;;  %v659_v59 = vld [vmem:[#allocation7 + $0x7c8] sm:$0xff] }
  0x80   :  { %383 = vmatprep.subr.bf16.mxu0 %v6639_v36  ;;  %2044 = vmatprep.subr.bf16.mxu1 %v5934_v62  ;;  %v594_v25 = vld [vmem:[#allocation7 + $0x5c0] sm:$0xff]  ;;  %v635_v62 = vld [vmem:[#allocation7 + $0x708] sm:$0xff]  ;;  %v6144_v8 = vcombine.high %v619_v2, %v627_v3  ;;  %v6143_v9 = vcombine.low %v619_v2, %v627_v3 }
  0x81   :  { %v570_v32 = vld [vmem:[#allocation7 + $0x500] sm:$0xff]  ;;  %v6110_v36 = vcombine.high %v586_v24, %v594_v25  ;;  %v6109_v38 = vcombine.low %v586_v24, %v594_v25  ;;  %v587_v10 = vld [vmem:[#allocation7 + $0x588] sm:$0xff] }
  0x82   :  { %v578_v33 = vld [vmem:[#allocation7 + $0x540] sm:$0xff]  ;;  %v595_v11 = vld [vmem:[#allocation7 + $0x5c8] sm:$0xff] }
  0x83   :  { %384 = vmatpush2.bf16.msra.mxu0 %v6641_v40  ;;  %2045 = vmatpush1.bf16.msra.mxu1 %v5933_v1  ;;  %v459_v40 = vld [vmem:[#allocation7 + $0x188] sm:$0xff]  ;;  %v6093_v44 = vcombine.low %v570_v32, %v578_v33  ;;  %v6112_v17 = vcombine.high %v587_v10, %v595_v11  ;;  %v6111_v18 = vcombine.low %v587_v10, %v595_v11  ;;  %v476_v11 = vld [vmem:[#allocation7 + $0x210] sm:$0xff] }
  0x84   :  { %385 = vmatprep.subr.bf16.mxu0 %v6642_v42  ;;  %2046 = vmatprep.subr.bf16.mxu1 %v6174_v4  ;;  %v6094_v42 = vcombine.high %v570_v32, %v578_v33  ;;  %v5983_v49 = vcombine.low %v459_v40, %v467_v41  ;;  %v579_v16 = vld [vmem:[#allocation7 + $0x548] sm:$0xff] }
  0x85   :  { %v563_v25 = vld [vmem:[#allocation7 + $0x4c8] sm:$0xff] }
  0x86   :  { %v547_v33 = vld [vmem:[#allocation7 + $0x448] sm:$0xff] }
  0x87   :  { %386 = vmatpush2.bf16.msra.mxu0 %v6644_v46  ;;  %2047 = vmatpush2.bf16.msra.mxu1 %v6173_v7  ;;  %v443_v46 = vld [vmem:[#allocation7 + $0x108] sm:$0xff] }
  0x88   :  { %387 = vmatprep.subr.bf16.mxu0 %v6645_v48  ;;  %2048 = vmatprep.subr.bf16.mxu1 %v6158_v12  ;;  %v5984_v48 = vcombine.high %v459_v40, %v467_v41  ;;  %v5967_v53 = vcombine.low %v443_v46, %v451_v47  ;;  %v611_v7 = vld [vmem:[#allocation7 + $0x648] sm:$0xff]  ;;  %v533_v40 = vld [vmem:[#allocation7 + $0x3d8] sm:$0xff] }
  0x8b   :  { %388 = vmatpush2.bf16.msra.mxu0 %v6647_v51  ;;  %2049 = vmatpush2.bf16.msra.mxu1 %v6157_v15  ;;  %v435_v51 = vld [vmem:[#allocation7 + $0xc8] sm:$0xff] }
  0x8c   :  { %389 = vmatprep.subr.bf16.mxu0 %v6648_v52  ;;  %2050 = vmatprep.subr.bf16.mxu1 %v6142_v20  ;;  %v5968_v52 = vcombine.high %v443_v46, %v451_v47  ;;  %v5952_v56 = vcombine.high %v427_v50, %v435_v51  ;;  %v571_v15 = vld [vmem:[#allocation7 + $0x508] sm:$0xff]  ;;  %v193_v47 = vld [vmem:[%s9138_s5] sm:$0x3] }
  0x8d   :  { %v6096_v19 = vcombine.high %v571_v15, %v579_v16  ;;  %v6095_v20 = vcombine.low %v571_v15, %v579_v16  ;;  %v485_v15 = vld [vmem:[#allocation7 + $0x258] sm:$0xff] }
  0x8f   :  { %390 = vmatpush2.bf16.msra.mxu0 %v6650_v57  ;;  %2051 = vmatpush2.bf16.msra.mxu1 %v6141_v23  ;;  %v5951_v57 = vcombine.low %v427_v50, %v435_v51  ;;  %v555_v23 = vld [vmem:[#allocation7 + $0x488] sm:$0xff] }
  0x90   :  { %391 = vmatprep.subr.bf16.mxu0 %v6651_v58  ;;  %2052 = vmatprep.subr.bf16.mxu1 %v6126_v29  ;;  %v651_v58 = vld [vmem:[#allocation7 + $0x788] sm:$0xff]  ;;  %v6080_v27 = vcombine.high %v555_v23, %v563_v25  ;;  %v538_v29 = vld [vmem:[#allocation7 + $0x400] sm:$0xff] }
  0x91   :  { %v6175_v1 = vcombine.low %v651_v58, %v659_v59 }
  0x93   :  { %392 = vmatpush2.bf16.msra.mxu0 %v6653_v63  ;;  %2053 = vmatpush2.bf16.msra.mxu1 %v6125_v31  ;;  %v643_v63 = vld [vmem:[#allocation7 + $0x748] sm:$0xff] }
  0x94   :  { %393 = vmatprep.subr.bf16.mxu0 %v6654_v0  ;;  %2054 = vmatprep.subr.bf16.mxu1 %v6110_v36  ;;  %v6176_v0 = vcombine.high %v651_v58, %v659_v59  ;;  %v6160_v4 = vcombine.high %v635_v62, %v643_v63  ;;  %v539_v31 = vld [vmem:[#allocation7 + $0x408] sm:$0xff]  ;;  %v524_v36 = vld [vmem:[#allocation7 + $0x390] sm:$0xff] }
  0x95   :  { %v6064_v13 = vcombine.high %v539_v31, %v547_v33  ;;  %v508_v58 = vld [vmem:[#allocation7 + $0x310] sm:$0xff] }
  0x97   :  { %394 = vmatpush2.bf16.msra.mxu0 %v6656_v5  ;;  %2055 = vmatpush2.bf16.msra.mxu1 %v6109_v38  ;;  %v6159_v5 = vcombine.low %v635_v62, %v643_v63  ;;  %v525_v38 = vld [vmem:[#allocation7 + $0x398] sm:$0xff] }
  0x98   :  { %395 = vmatprep.subr.bf16.mxu0 %v6657_v6  ;;  %2056 = vmatprep.subr.bf16.mxu1 %v6094_v42  ;;  %v603_v6 = vld [vmem:[#allocation7 + $0x608] sm:$0xff]  ;;  %v6051_v42 = vcombine.low %v525_v38, %v533_v40  ;;  %v517_v62 = vld [vmem:[#allocation7 + $0x358] sm:$0xff] }
  0x99   :  { %v6128_v12 = vcombine.high %v603_v6, %v611_v7 }
  0x9b   :  { %396 = vmatpush2.bf16.msra.mxu0 %v6659_v14  ;;  %2057 = vmatpush2.bf16.msra.mxu1 %v6093_v44  ;;  %v6127_v14 = vcombine.low %v603_v6, %v611_v7  ;;  %v195_v44 = vlaneseq  ;;  %v501_v6 = vld [vmem:[#allocation7 + $0x2d8] sm:$0xff] }
  0x9c   :  { %2071 = vmatprep.subr.bf16.mxu0 %v6048_v21  ;;  %v554_v21 = vld [vmem:[#allocation7 + $0x480] sm:$0xff] }
  0x9e   :  { %398 = vmatmul.mubr.bf16.vlgmr.msra.gmra.mxu0 %v159_v22  ;;  %v562_v22 = vld [vmem:[#allocation7 + $0x4c0] sm:$0xff] }
  0x9f   :  { %2072 = vmatpush1.bf16.msra.mxu0 %v6047_v26  ;;  %v6078_v24 = vcombine.high %v554_v21, %v562_v22  ;;  %v6079_v26 = vcombine.low %v555_v23, %v563_v25  ;;  %v6077_v28 = vcombine.low %v554_v21, %v562_v22  ;;  %v468_v21 = vld [vmem:[#allocation7 + $0x1d0] sm:$0xff]  ;;  %v461_v22 = vld [vmem:[#allocation7 + $0x198] sm:$0xff] }
  0xa0   :  { %2073 = vmatprep.subr.bf16.mxu0 %v6032_v30  ;;  %v546_v30 = vld [vmem:[#allocation7 + $0x440] sm:$0xff]  ;;  %v469_v23 = vld [vmem:[#allocation7 + $0x1d8] sm:$0xff] }
  0xa1   :  { %2058 = vmatprep.subr.bf16.mxu1 %v6078_v24  ;;  %v6062_v32 = vcombine.high %v538_v29, %v546_v30  ;;  %v6061_v35 = vcombine.low %v538_v29, %v546_v30  ;;  %v452_v29 = vld [vmem:[#allocation7 + $0x150] sm:$0xff]  ;;  %v445_v30 = vld [vmem:[#allocation7 + $0x118] sm:$0xff] }
  0xa2   :  { %2059 = vmatpush2.bf16.msra.mxu1 %v6077_v28  ;;  %v444_v28 = vld [vmem:[#allocation7 + $0x110] sm:$0xff] }
  0xa3   :  { %2074 = vmatpush1.bf16.msra.mxu0 %v6031_v34  ;;  %v6063_v34 = vcombine.low %v539_v31, %v547_v33  ;;  %2060 = vmatprep.subr.bf16.mxu1 %v6062_v32  ;;  %v453_v31 = vld [vmem:[#allocation7 + $0x158] sm:$0xff]  ;;  %v5987_v33 = vcombine.low %v461_v22, %v469_v23 }
  0xa4   :  { %2075 = vmatprep.subr.bf16.mxu0 %v6016_v37  ;;  %v532_v37 = vld [vmem:[#allocation7 + $0x3d0] sm:$0xff] }
  0xa5   :  { %v6049_v41 = vcombine.low %v524_v36, %v532_v37 }
  0xa6   :  { %2061 = vmatpush2.bf16.msra.mxu1 %v6061_v35  ;;  %v428_v35 = vld [vmem:[#allocation7 + $0x90] sm:$0xff] }
  0xa7   :  { %2076 = vmatpush1.bf16.msra.mxu0 %v6015_v39  ;;  %v6050_v39 = vcombine.high %v524_v36, %v532_v37  ;;  %v436_v36 = vld [vmem:[#allocation7 + $0xd0] sm:$0xff]  ;;  %v429_v37 = vld [vmem:[#allocation7 + $0x98] sm:$0xff] }
  0xa8   :  { %2077 = vmatprep.subr.bf16.mxu0 %v6000_v43  ;;  %v6052_v43 = vcombine.high %v525_v38, %v533_v40  ;;  %v437_v38 = vld [vmem:[#allocation7 + $0xd8] sm:$0xff]  ;;  %v5971_v40 = vcombine.low %v445_v30, %v453_v31 }
  0xa9   :  { %2112 = vmatprep.subr.bf16.mxu1 %v6050_v39  ;;  %v5969_v39 = vcombine.low %v444_v28, %v452_v29 }
  0xab   :  { %2078 = vmatpush1.bf16.msra.mxu0 %v5999_v45  ;;  %v7683_v45 = vshrl.u32 %v195_v44, 7  ;;  %v420_v44 = vld [vmem:[#allocation7 + $0x50] sm:$0xff] }
  0xac   :  { %2079 = vmatprep.subr.bf16.mxu0 %v5984_v48 }
  0xad   :  { %v7686_v46 = vsub.s32 0, %v7683_v45  ;;  %v7692_v48 = vsub.s32 1, %v7683_v45 }
  0xaf   :  { %2080 = vmatpush1.bf16.msra.mxu0 %v5983_v49  ;;  %9361 = vst [vmem:[#allocation27_spill] sm:$0xff] %v7686_v46  ;;  %9362 = vst [vmem:[#allocation28_spill] sm:$0xff] %v7692_v48  ;;  %v198_v49 = vrot.slane %v193_v47, %v7686_v46  ;;  %v202_v50 = vrot.slane %v193_v47, %v7692_v48  ;;  %v413_v47 = vld [vmem:[#allocation7 + $0x18] sm:$0xff] }
  0xb0   :  { %2081 = vmatprep.subr.bf16.mxu0 %v5968_v52 }
  0xb3   :  { %2082 = vmatpush1.bf16.msra.mxu0 %v5967_v53 }
  0xb4   :  { %2083 = vmatprep.subr.bf16.mxu0 %v5952_v56 }
  0xb7   :  { %2084 = vmatpush1.bf16.msra.mxu0 %v5951_v57 }
  0xb8   :  { %2085 = vmatprep.subr.bf16.mxu0 %v5936_v60  ;;  %v516_v60 = vld [vmem:[#allocation7 + $0x350] sm:$0xff] }
  0xb9   :  { %v6034_v2 = vcombine.high %v508_v58, %v516_v60  ;;  %v6033_v7 = vcombine.low %v508_v58, %v516_v60 }
  0xbb   :  { %2086 = vmatpush1.bf16.msra.mxu0 %v5935_v61  ;;  %v509_v61 = vld [vmem:[#allocation7 + $0x318] sm:$0xff] }
  0xbc   :  { %2087 = vmatprep.subr.bf16.mxu0 %v6176_v0  ;;  %v6036_v3 = vcombine.high %v509_v61, %v517_v62 }
  0xbf   :  { %2088 = vmatpush2.bf16.msra.mxu0 %v6175_v1  ;;  %v492_v1 = vld [vmem:[#allocation7 + $0x290] sm:$0xff] }
  0xc0   :  { %2089 = vmatprep.subr.bf16.mxu0 %v6160_v4  ;;  %v500_v4 = vld [vmem:[#allocation7 + $0x2d0] sm:$0xff] }
  0xc1   :  { %v6017_v16 = vcombine.low %v492_v1, %v500_v4 }
  0xc3   :  { %2090 = vmatpush2.bf16.msra.mxu0 %v6159_v5  ;;  %v493_v5 = vld [vmem:[#allocation7 + $0x298] sm:$0xff] }
  0xc4   :  { %2091 = vmatprep.subr.bf16.mxu0 %v6144_v8  ;;  %v6035_v8 = vcombine.low %v509_v61, %v517_v62  ;;  %v6020_v10 = vcombine.high %v493_v5, %v501_v6  ;;  %v636_v62 = vld [vmem:[#allocation7 + $0x710] sm:$0xff] }
  0xc7   :  { %2092 = vmatpush2.bf16.msra.mxu0 %v6143_v9  ;;  %v6018_v9 = vcombine.high %v492_v1, %v500_v4  ;;  %v644_v1 = vld [vmem:[#allocation7 + $0x750] sm:$0xff] }
  0xc8   :  { %2093 = vmatprep.subr.bf16.mxu0 %v6128_v12  ;;  %v484_v12 = vld [vmem:[#allocation7 + $0x250] sm:$0xff] }
  0xc9   :  { %v6001_v24 = vcombine.low %v476_v11, %v484_v12 }
  0xcb   :  { %2094 = vmatpush2.bf16.msra.mxu0 %v6127_v14  ;;  %v477_v14 = vld [vmem:[#allocation7 + $0x218] sm:$0xff] }
  0xcc   :  { %2095 = vmatprep.subr.bf16.mxu0 %v6112_v17  ;;  %v6019_v17 = vcombine.low %v493_v5, %v501_v6  ;;  %v6003_v25 = vcombine.low %v477_v14, %v485_v15  ;;  %v6162_v6 = vcombine.high %v636_v62, %v644_v1 }
  0xcf   :  { %2096 = vmatpush2.bf16.msra.mxu0 %v6111_v18  ;;  %v6002_v18 = vcombine.high %v476_v11, %v484_v12  ;;  %v629_v11 = vld [vmem:[#allocation7 + $0x6d8] sm:$0xff]  ;;  %v6161_v12 = vcombine.low %v636_v62, %v644_v1  ;;  %v535_v62 = vld [vmem:[#allocation7 + $0x3e8] sm:$0xff] }
  0xd0   :  { %2097 = vmatprep.subr.bf16.mxu0 %v6096_v19  ;;  %v6004_v19 = vcombine.high %v477_v14, %v485_v15 }
  0xd3   :  { %2098 = vmatpush2.bf16.msra.mxu0 %v6095_v20  ;;  %v460_v20 = vld [vmem:[#allocation7 + $0x190] sm:$0xff] }
  0xd4   :  { %2099 = vmatprep.subr.bf16.mxu0 %v6080_v27  ;;  %v5988_v27 = vcombine.high %v461_v22, %v469_v23  ;;  %v5985_v32 = vcombine.low %v460_v20, %v468_v21 }
  0xd7   :  { %2100 = vmatpush2.bf16.msra.mxu0 %v6079_v26  ;;  %v5986_v26 = vcombine.high %v460_v20, %v468_v21  ;;  %v613_v20 = vld [vmem:[#allocation7 + $0x658] sm:$0xff] }
  0xd8   :  { %2101 = vmatprep.subr.bf16.mxu0 %v6064_v13  ;;  %v5972_v13 = vcombine.high %v445_v30, %v453_v31 }
  0xdb   :  { %2102 = vmatpush2.bf16.msra.mxu0 %v6063_v34  ;;  %v5970_v34 = vcombine.high %v444_v28, %v452_v29  ;;  %v597_v28 = vld [vmem:[#allocation7 + $0x5d8] sm:$0xff] }
  0xdc   :  { %2153 = vmatprep.subr.bf16.mxu0 %v6052_v43  ;;  %v412_v43 = vld [vmem:[#allocation7 + $0x10] sm:$0xff] }
  0xdd   :  { %v5937_v58 = vcombine.low %v412_v43, %v420_v44 }
 0x15e   :  { %v399_v51 = vpop.f32.mrf.mxu0 }
 0x15f   :  { %v400_v52 = vadd.f32 %v399_v51, %v198_v49  ;;  %v421_v49 = vld [vmem:[#allocation7 + $0x58] sm:$0xff]  ;;  %v5955_v51 = vcombine.low %v429_v37, %v437_v38 }
 0x160   :  { %v401_v53 = vpop.f32.mrf.mxu0 }
 0x161   :  { %v402_v54 = vadd.f32 %v401_v53, %v202_v50  ;;  %v406_v55 = vmax.f32 %v400_v52, 0.0  ;;  %v5953_v50 = vcombine.low %v428_v35, %v436_v36  ;;  %v5938_v52 = vcombine.high %v412_v43, %v420_v44  ;;  %v565_v43 = vld [vmem:[#allocation7 + $0x4d8] sm:$0xff] }
 0x162   :  { %v403_v56 = vpop.f32.mrf.mxu0  ;;  %v5940_v53 = vcombine.high %v413_v47, %v421_v49 }
 0x163   :  { %v407_v57 = vmax.f32 %v402_v54, 0.0  ;;  %v7698_v0 = vpack.c.bf16 %v406_v55, %v406_v55  ;;  %v652_v54 = vld [vmem:[#allocation7 + $0x790] sm:$0xff]  ;;  %v653_v56 = vld [vmem:[#allocation7 + $0x798] sm:$0xff] }
 0x164   :  { %v404_v59 = vpop.f32.mrf.mxu0  ;;  %v660_v55 = vld [vmem:[#allocation7 + $0x7d0] sm:$0xff] }
 0x165   :  { %v7696_v63 = vpack.c.bf16 %v407_v57, %v407_v57  ;;  %v661_v57 = vld [vmem:[#allocation7 + $0x7d8] sm:$0xff]  ;;  %v5939_v59 = vcombine.low %v413_v47, %v421_v49  ;;  %v6178_v60 = vcombine.high %v652_v54, %v660_v55  ;;  %v6177_v4 = vcombine.low %v652_v54, %v660_v55 }
 0x166   :  { %v6180_v61 = vcombine.high %v653_v56, %v661_v57  ;;  %v6179_v5 = vcombine.low %v653_v56, %v661_v57  ;;  %v549_v54 = vld [vmem:[#allocation7 + $0x458] sm:$0xff] }
 0x167   :  { %2062 = vmatprep.mubr.bf16.mxu1 %v7696_v63  ;;  %2103 = vmatprep.mubr.bf16.mxu0 %v7696_v63 }
 0x168   :  { %2063 = vmatmul.mubr.bf16.vlgmr.msra.gmra.mxu1 %v7698_v0  ;;  %2104 = vmatmul.mubr.bf16.vlgmr.msra.gmra.mxu0 %v7698_v0 }
 0x169   :  { %2113 = vmatpush1.bf16.msra.mxu1 %v6049_v41  ;;  %2154 = vmatpush1.bf16.msra.mxu0 %v6051_v42  ;;  %v5954_v41 = vcombine.high %v428_v35, %v436_v36  ;;  %v5956_v42 = vcombine.high %v429_v37, %v437_v38  ;;  %v581_v35 = vld [vmem:[#allocation7 + $0x558] sm:$0xff] }
 0x16a   :  { %2144 = vmatprep.mubr.bf16.mxu1 %v7696_v63  ;;  %2185 = vmatprep.mubr.bf16.mxu0 %v7696_v63 }
 0x16b   :  { %2114 = vmatprep.subr.bf16.mxu1 %v6034_v2  ;;  %2155 = vmatprep.subr.bf16.mxu0 %v6036_v3  ;;  %v637_v2 = vld [vmem:[#allocation7 + $0x718] sm:$0xff] }
 0x16c   :  { %v645_v3 = vld [vmem:[#allocation7 + $0x758] sm:$0xff] }
 0x16d   :  { %2115 = vmatpush1.bf16.msra.mxu1 %v6033_v7  ;;  %2156 = vmatpush1.bf16.msra.mxu0 %v6035_v8  ;;  %v6164_v7 = vcombine.high %v637_v2, %v645_v3  ;;  %v620_v8 = vld [vmem:[#allocation7 + $0x690] sm:$0xff]  ;;  %v6163_v14 = vcombine.low %v637_v2, %v645_v3 }
 0x16e   :  { %2116 = vmatprep.subr.bf16.mxu1 %v6018_v9  ;;  %2157 = vmatprep.subr.bf16.mxu0 %v6020_v10  ;;  %v628_v9 = vld [vmem:[#allocation7 + $0x6d0] sm:$0xff]  ;;  %v621_v10 = vld [vmem:[#allocation7 + $0x698] sm:$0xff] }
 0x16f   :  { %v6146_v15 = vcombine.high %v620_v8, %v628_v9  ;;  %v6145_v21 = vcombine.low %v620_v8, %v628_v9  ;;  %v6147_v22 = vcombine.low %v621_v10, %v629_v11  ;;  %v519_v8 = vld [vmem:[#allocation7 + $0x368] sm:$0xff] }
 0x171   :  { %2117 = vmatpush1.bf16.msra.mxu1 %v6017_v16  ;;  %2158 = vmatpush1.bf16.msra.mxu0 %v6019_v17  ;;  %v6148_v16 = vcombine.high %v621_v10, %v629_v11  ;;  %v604_v17 = vld [vmem:[#allocation7 + $0x610] sm:$0xff] }
 0x172   :  { %2118 = vmatprep.subr.bf16.mxu1 %v6002_v18  ;;  %2159 = vmatprep.subr.bf16.mxu0 %v6004_v19  ;;  %v612_v18 = vld [vmem:[#allocation7 + $0x650] sm:$0xff]  ;;  %v605_v19 = vld [vmem:[#allocation7 + $0x618] sm:$0xff] }
 0x173   :  { %v6130_v23 = vcombine.high %v604_v17, %v612_v18  ;;  %v6129_v29 = vcombine.low %v604_v17, %v612_v18  ;;  %v6131_v30 = vcombine.low %v605_v19, %v613_v20  ;;  %v503_v17 = vld [vmem:[#allocation7 + $0x2e8] sm:$0xff] }
 0x175   :  { %2119 = vmatpush1.bf16.msra.mxu1 %v6001_v24  ;;  %2160 = vmatpush1.bf16.msra.mxu0 %v6003_v25  ;;  %v6132_v24 = vcombine.high %v605_v19, %v613_v20  ;;  %v588_v25 = vld [vmem:[#allocation7 + $0x590] sm:$0xff] }
 0x176   :  { %2120 = vmatprep.subr.bf16.mxu1 %v5986_v26  ;;  %2161 = vmatprep.subr.bf16.mxu0 %v5988_v27  ;;  %v596_v26 = vld [vmem:[#allocation7 + $0x5d0] sm:$0xff]  ;;  %v589_v27 = vld [vmem:[#allocation7 + $0x598] sm:$0xff] }
 0x177   :  { %v6114_v31 = vcombine.high %v588_v25, %v596_v26  ;;  %v6113_v36 = vcombine.low %v588_v25, %v596_v26  ;;  %v6115_v37 = vcombine.low %v589_v27, %v597_v28  ;;  %v487_v25 = vld [vmem:[#allocation7 + $0x268] sm:$0xff] }
 0x179   :  { %2121 = vmatpush1.bf16.msra.mxu1 %v5985_v32  ;;  %2162 = vmatpush1.bf16.msra.mxu0 %v5987_v33  ;;  %v6116_v32 = vcombine.high %v589_v27, %v597_v28  ;;  %v572_v33 = vld [vmem:[#allocation7 + $0x510] sm:$0xff] }
 0x17a   :  { %2122 = vmatprep.subr.bf16.mxu1 %v5970_v34  ;;  %2163 = vmatprep.subr.bf16.mxu0 %v5972_v13  ;;  %v580_v34 = vld [vmem:[#allocation7 + $0x550] sm:$0xff]  ;;  %v573_v13 = vld [vmem:[#allocation7 + $0x518] sm:$0xff] }
 0x17b   :  { %v6098_v38 = vcombine.high %v572_v33, %v580_v34  ;;  %v6097_v44 = vcombine.low %v572_v33, %v580_v34  ;;  %v6099_v47 = vcombine.low %v573_v13, %v581_v35  ;;  %v471_v33 = vld [vmem:[#allocation7 + $0x1e8] sm:$0xff] }
 0x17d   :  { %2123 = vmatpush1.bf16.msra.mxu1 %v5969_v39  ;;  %2164 = vmatpush1.bf16.msra.mxu0 %v5971_v40  ;;  %v6100_v39 = vcombine.high %v573_v13, %v581_v35  ;;  %v556_v40 = vld [vmem:[#allocation7 + $0x490] sm:$0xff] }
 0x17e   :  { %2124 = vmatprep.subr.bf16.mxu1 %v5954_v41  ;;  %2165 = vmatprep.subr.bf16.mxu0 %v5956_v42  ;;  %v564_v41 = vld [vmem:[#allocation7 + $0x4d0] sm:$0xff]  ;;  %v557_v42 = vld [vmem:[#allocation7 + $0x498] sm:$0xff] }
 0x17f   :  { %v6082_v49 = vcombine.high %v556_v40, %v564_v41  ;;  %v6081_v55 = vcombine.low %v556_v40, %v564_v41  ;;  %v6083_v56 = vcombine.low %v557_v42, %v565_v43  ;;  %v455_v40 = vld [vmem:[#allocation7 + $0x168] sm:$0xff] }
 0x181   :  { %2125 = vmatpush1.bf16.msra.mxu1 %v5953_v50  ;;  %2166 = vmatpush1.bf16.msra.mxu0 %v5955_v51  ;;  %v6084_v50 = vcombine.high %v557_v42, %v565_v43  ;;  %v540_v51 = vld [vmem:[#allocation7 + $0x410] sm:$0xff] }
 0x182   :  { %2126 = vmatprep.subr.bf16.mxu1 %v5938_v52  ;;  %2167 = vmatprep.subr.bf16.mxu0 %v5940_v53  ;;  %v548_v52 = vld [vmem:[#allocation7 + $0x450] sm:$0xff]  ;;  %v541_v53 = vld [vmem:[#allocation7 + $0x418] sm:$0xff] }
 0x183   :  { %v6066_v57 = vcombine.high %v540_v51, %v548_v52  ;;  %v6065_v1 = vcombine.low %v540_v51, %v548_v52  ;;  %v6067_v2 = vcombine.low %v541_v53, %v549_v54  ;;  %v439_v51 = vld [vmem:[#allocation7 + $0xe8] sm:$0xff] }
 0x185   :  { %2127 = vmatpush1.bf16.msra.mxu1 %v5937_v58  ;;  %2168 = vmatpush1.bf16.msra.mxu0 %v5939_v59  ;;  %v6068_v58 = vcombine.high %v541_v53, %v549_v54  ;;  %v526_v59 = vld [vmem:[#allocation7 + $0x3a0] sm:$0xff] }
 0x186   :  { %2128 = vmatprep.subr.bf16.mxu1 %v6178_v60  ;;  %2169 = vmatprep.subr.bf16.mxu0 %v6180_v61  ;;  %v534_v60 = vld [vmem:[#allocation7 + $0x3e0] sm:$0xff]  ;;  %v527_v61 = vld [vmem:[#allocation7 + $0x3a8] sm:$0xff] }
 0x187   :  { %v6054_v3 = vcombine.high %v526_v59, %v534_v60  ;;  %v6053_v9 = vcombine.low %v526_v59, %v534_v60  ;;  %v6055_v10 = vcombine.low %v527_v61, %v535_v62  ;;  %v423_v59 = vld [vmem:[#allocation7 + $0x68] sm:$0xff] }
 0x189   :  { %2129 = vmatpush2.bf16.msra.mxu1 %v6177_v4  ;;  %2170 = vmatpush2.bf16.msra.mxu0 %v6179_v5  ;;  %v6056_v4 = vcombine.high %v527_v61, %v535_v62  ;;  %v510_v5 = vld [vmem:[#allocation7 + $0x320] sm:$0xff] }
 0x18a   :  { %2130 = vmatprep.subr.bf16.mxu1 %v6162_v6  ;;  %2171 = vmatprep.subr.bf16.mxu0 %v6164_v7  ;;  %v518_v6 = vld [vmem:[#allocation7 + $0x360] sm:$0xff]  ;;  %v511_v7 = vld [vmem:[#allocation7 + $0x328] sm:$0xff] }
 0x18b   :  { %v6038_v11 = vcombine.high %v510_v5, %v518_v6  ;;  %v6037_v18 = vcombine.low %v510_v5, %v518_v6  ;;  %v6039_v19 = vcombine.low %v511_v7, %v519_v8  ;;  %v663_v5 = vld [vmem:[#allocation7 + $0x7e8] sm:$0xff] }
 0x18d   :  { %2131 = vmatpush2.bf16.msra.mxu1 %v6161_v12  ;;  %2172 = vmatpush2.bf16.msra.mxu0 %v6163_v14  ;;  %v6040_v12 = vcombine.high %v511_v7, %v519_v8  ;;  %v494_v14 = vld [vmem:[#allocation7 + $0x2a0] sm:$0xff] }
 0x18e   :  { %2132 = vmatprep.subr.bf16.mxu1 %v6146_v15  ;;  %2173 = vmatprep.subr.bf16.mxu0 %v6148_v16  ;;  %v502_v15 = vld [vmem:[#allocation7 + $0x2e0] sm:$0xff]  ;;  %v495_v16 = vld [vmem:[#allocation7 + $0x2a8] sm:$0xff] }
 0x18f   :  { %v6022_v20 = vcombine.high %v494_v14, %v502_v15  ;;  %v6021_v26 = vcombine.low %v494_v14, %v502_v15  ;;  %v6023_v27 = vcombine.low %v495_v16, %v503_v17  ;;  %v647_v14 = vld [vmem:[#allocation7 + $0x768] sm:$0xff] }
 0x191   :  { %2133 = vmatpush2.bf16.msra.mxu1 %v6145_v21  ;;  %2174 = vmatpush2.bf16.msra.mxu0 %v6147_v22  ;;  %v6024_v21 = vcombine.high %v495_v16, %v503_v17  ;;  %v478_v22 = vld [vmem:[#allocation7 + $0x220] sm:$0xff] }
 0x192   :  { %2134 = vmatprep.subr.bf16.mxu1 %v6130_v23  ;;  %2175 = vmatprep.subr.bf16.mxu0 %v6132_v24  ;;  %v486_v23 = vld [vmem:[#allocation7 + $0x260] sm:$0xff]  ;;  %v479_v24 = vld [vmem:[#allocation7 + $0x228] sm:$0xff] }
 0x193   :  { %v6006_v28 = vcombine.high %v478_v22, %v486_v23  ;;  %v6005_v34 = vcombine.low %v478_v22, %v486_v23  ;;  %v6007_v13 = vcombine.low %v479_v24, %v487_v25  ;;  %v631_v22 = vld [vmem:[#allocation7 + $0x6e8] sm:$0xff] }
 0x195   :  { %2135 = vmatpush2.bf16.msra.mxu1 %v6129_v29  ;;  %2176 = vmatpush2.bf16.msra.mxu0 %v6131_v30  ;;  %v6008_v29 = vcombine.high %v479_v24, %v487_v25  ;;  %v462_v30 = vld [vmem:[#allocation7 + $0x1a0] sm:$0xff] }
 0x196   :  { %2136 = vmatprep.subr.bf16.mxu1 %v6114_v31  ;;  %2177 = vmatprep.subr.bf16.mxu0 %v6116_v32  ;;  %v470_v31 = vld [vmem:[#allocation7 + $0x1e0] sm:$0xff]  ;;  %v463_v32 = vld [vmem:[#allocation7 + $0x1a8] sm:$0xff] }
 0x197   :  { %v5990_v35 = vcombine.high %v462_v30, %v470_v31  ;;  %v5989_v41 = vcombine.low %v462_v30, %v470_v31  ;;  %v5991_v42 = vcombine.low %v463_v32, %v471_v33  ;;  %v615_v30 = vld [vmem:[#allocation7 + $0x668] sm:$0xff] }
 0x199   :  { %2137 = vmatpush2.bf16.msra.mxu1 %v6113_v36  ;;  %2178 = vmatpush2.bf16.msra.mxu0 %v6115_v37  ;;  %v5992_v36 = vcombine.high %v463_v32, %v471_v33  ;;  %v446_v37 = vld [vmem:[#allocation7 + $0x120] sm:$0xff] }
 0x19a   :  { %2138 = vmatprep.subr.bf16.mxu1 %v6098_v38  ;;  %2179 = vmatprep.subr.bf16.mxu0 %v6100_v39  ;;  %v454_v38 = vld [vmem:[#allocation7 + $0x160] sm:$0xff]  ;;  %v447_v39 = vld [vmem:[#allocation7 + $0x128] sm:$0xff] }
 0x19b   :  { %v5974_v43 = vcombine.high %v446_v37, %v454_v38  ;;  %v5973_v52 = vcombine.low %v446_v37, %v454_v38  ;;  %v5975_v53 = vcombine.low %v447_v39, %v455_v40  ;;  %v599_v37 = vld [vmem:[#allocation7 + $0x5e8] sm:$0xff] }
 0x19d   :  { %2139 = vmatpush2.bf16.msra.mxu1 %v6097_v44  ;;  %2180 = vmatpush2.bf16.msra.mxu0 %v6099_v47  ;;  %v5976_v44 = vcombine.high %v447_v39, %v455_v40  ;;  %v430_v47 = vld [vmem:[#allocation7 + $0xa0] sm:$0xff] }
 0x19e   :  { %2140 = vmatprep.subr.bf16.mxu1 %v6082_v49  ;;  %2181 = vmatprep.subr.bf16.mxu0 %v6084_v50  ;;  %v438_v49 = vld [vmem:[#allocation7 + $0xe0] sm:$0xff]  ;;  %v431_v50 = vld [vmem:[#allocation7 + $0xa8] sm:$0xff] }
 0x19f   :  { %v5958_v54 = vcombine.high %v430_v47, %v438_v49  ;;  %v5957_v60 = vcombine.low %v430_v47, %v438_v49  ;;  %v5959_v61 = vcombine.low %v431_v50, %v439_v51  ;;  %v583_v47 = vld [vmem:[#allocation7 + $0x568] sm:$0xff] }
 0x1a1   :  { %2141 = vmatpush2.bf16.msra.mxu1 %v6081_v55  ;;  %2182 = vmatpush2.bf16.msra.mxu0 %v6083_v56  ;;  %v5960_v55 = vcombine.high %v431_v50, %v439_v51  ;;  %v414_v56 = vld [vmem:[#allocation7 + $0x20] sm:$0xff] }
 0x1a2   :  { %2142 = vmatprep.subr.bf16.mxu1 %v6066_v57  ;;  %2183 = vmatprep.subr.bf16.mxu0 %v6068_v58  ;;  %v422_v57 = vld [vmem:[#allocation7 + $0x60] sm:$0xff]  ;;  %v415_v58 = vld [vmem:[#allocation7 + $0x28] sm:$0xff] }
 0x1a3   :  { %v5942_v62 = vcombine.high %v414_v56, %v422_v57  ;;  %v5941_v6 = vcombine.low %v414_v56, %v422_v57  ;;  %v5943_v7 = vcombine.low %v415_v58, %v423_v59  ;;  %v567_v56 = vld [vmem:[#allocation7 + $0x4e8] sm:$0xff] }
 0x1a5   :  { %2143 = vmatpush2.bf16.msra.mxu1 %v6065_v1  ;;  %2184 = vmatpush2.bf16.msra.mxu0 %v6067_v2  ;;  %v5944_v1 = vcombine.high %v415_v58, %v423_v59  ;;  %v654_v2 = vld [vmem:[#allocation7 + $0x7a0] sm:$0xff] }
 0x1a6   :  { %2194 = vmatprep.subr.bf16.mxu1 %v6054_v3  ;;  %2235 = vmatprep.subr.bf16.mxu0 %v6056_v4  ;;  %v662_v3 = vld [vmem:[#allocation7 + $0x7e0] sm:$0xff]  ;;  %v655_v4 = vld [vmem:[#allocation7 + $0x7a8] sm:$0xff] }
 0x1a7   :  { %v6182_v8 = vcombine.high %v654_v2, %v662_v3  ;;  %v6181_v15 = vcombine.low %v654_v2, %v662_v3  ;;  %v6183_v16 = vcombine.low %v655_v4, %v663_v5  ;;  %v551_v2 = vld [vmem:[#allocation7 + $0x468] sm:$0xff] }
 0x1a8   :  { %2145 = vmatmul.mubr.bf16.vlgmr.msra.gmra.mxu1 %v7698_v0  ;;  %2186 = vmatmul.mubr.bf16.vlgmr.msra.gmra.mxu0 %v7698_v0 }
 0x1a9   :  { %2195 = vmatpush1.bf16.msra.mxu1 %v6053_v9  ;;  %2226 = vmatprep.mubr.bf16.mxu1 %v7696_v63  ;;  %v6184_v9 = vcombine.high %v655_v4, %v663_v5 }
 0x1aa   :  { %2236 = vmatpush1.bf16.msra.mxu0 %v6055_v10  ;;  %2267 = vmatprep.mubr.bf16.mxu0 %v7696_v63  ;;  %v638_v10 = vld [vmem:[#allocation7 + $0x720] sm:$0xff] }
 0x1ab   :  { %2196 = vmatprep.subr.bf16.mxu1 %v6038_v11  ;;  %2237 = vmatprep.subr.bf16.mxu0 %v6040_v12  ;;  %v646_v11 = vld [vmem:[#allocation7 + $0x760] sm:$0xff]  ;;  %v639_v12 = vld [vmem:[#allocation7 + $0x728] sm:$0xff] }
 0x1ac   :  { %v6166_v17 = vcombine.high %v638_v10, %v646_v11  ;;  %v6165_v23 = vcombine.low %v638_v10, %v646_v11  ;;  %v6167_v24 = vcombine.low %v639_v12, %v647_v14  ;;  %v537_v10 = vld [vmem:[#allocation7 + $0x3f8] sm:$0xff] }
 0x1ad   :  { %2197 = vmatpush1.bf16.msra.mxu1 %v6037_v18  ;;  %v6168_v18 = vcombine.high %v639_v12, %v647_v14 }
 0x1ae   :  { %2238 = vmatpush1.bf16.msra.mxu0 %v6039_v19  ;;  %2198 = vmatprep.subr.bf16.mxu1 %v6022_v20  ;;  %v622_v19 = vld [vmem:[#allocation7 + $0x6a0] sm:$0xff] }
 0x1af   :  { %2239 = vmatprep.subr.bf16.mxu0 %v6024_v21  ;;  %v630_v20 = vld [vmem:[#allocation7 + $0x6e0] sm:$0xff]  ;;  %v623_v21 = vld [vmem:[#allocation7 + $0x6a8] sm:$0xff] }
 0x1b0   :  { %v6150_v25 = vcombine.high %v622_v19, %v630_v20  ;;  %v6149_v31 = vcombine.low %v622_v19, %v630_v20  ;;  %v6151_v32 = vcombine.low %v623_v21, %v631_v22  ;;  %v513_v19 = vld [vmem:[#allocation7 + $0x338] sm:$0xff] }
 0x1b1   :  { %2199 = vmatpush1.bf16.msra.mxu1 %v6021_v26  ;;  %v6152_v26 = vcombine.high %v623_v21, %v631_v22  ;;  %v521_v20 = vld [vmem:[#allocation7 + $0x378] sm:$0xff] }
 0x1b2   :  { %2240 = vmatpush1.bf16.msra.mxu0 %v6023_v27  ;;  %2200 = vmatprep.subr.bf16.mxu1 %v6006_v28  ;;  %v606_v27 = vld [vmem:[#allocation7 + $0x620] sm:$0xff] }
 0x1b3   :  { %2241 = vmatprep.subr.bf16.mxu0 %v6008_v29  ;;  %v614_v28 = vld [vmem:[#allocation7 + $0x660] sm:$0xff]  ;;  %v607_v29 = vld [vmem:[#allocation7 + $0x628] sm:$0xff] }
 0x1b4   :  { %v6134_v33 = vcombine.high %v606_v27, %v614_v28  ;;  %v6133_v38 = vcombine.low %v606_v27, %v614_v28  ;;  %v6135_v39 = vcombine.low %v607_v29, %v615_v30  ;;  %v505_v27 = vld [vmem:[#allocation7 + $0x2f8] sm:$0xff] }
 0x1b5   :  { %2201 = vmatpush1.bf16.msra.mxu1 %v6005_v34  ;;  %v6136_v34 = vcombine.high %v607_v29, %v615_v30  ;;  %v6043_v29 = vcombine.low %v513_v19, %v521_v20 }
 0x1b6   :  { %2242 = vmatpush1.bf16.msra.mxu0 %v6007_v13  ;;  %2202 = vmatprep.subr.bf16.mxu1 %v5990_v35  ;;  %v590_v13 = vld [vmem:[#allocation7 + $0x5a0] sm:$0xff] }
 0x1b7   :  { %2243 = vmatprep.subr.bf16.mxu0 %v5992_v36  ;;  %v598_v35 = vld [vmem:[#allocation7 + $0x5e0] sm:$0xff]  ;;  %v591_v36 = vld [vmem:[#allocation7 + $0x5a8] sm:$0xff] }
 0x1b8   :  { %v6118_v40 = vcombine.high %v590_v13, %v598_v35  ;;  %v6117_v49 = vcombine.low %v590_v13, %v598_v35  ;;  %v6119_v50 = vcombine.low %v591_v36, %v599_v37  ;;  %v489_v13 = vld [vmem:[#allocation7 + $0x278] sm:$0xff] }
 0x1b9   :  { %2203 = vmatpush1.bf16.msra.mxu1 %v5989_v41  ;;  %v6120_v41 = vcombine.high %v591_v36, %v599_v37 }
 0x1ba   :  { %2244 = vmatpush1.bf16.msra.mxu0 %v5991_v42  ;;  %2204 = vmatprep.subr.bf16.mxu1 %v5974_v43  ;;  %v574_v42 = vld [vmem:[#allocation7 + $0x520] sm:$0xff] }
 0x1bb   :  { %2245 = vmatprep.subr.bf16.mxu0 %v5976_v44  ;;  %v582_v43 = vld [vmem:[#allocation7 + $0x560] sm:$0xff]  ;;  %v575_v44 = vld [vmem:[#allocation7 + $0x528] sm:$0xff] }
 0x1bc   :  { %v6102_v51 = vcombine.high %v574_v42, %v582_v43  ;;  %v6101_v57 = vcombine.low %v574_v42, %v582_v43  ;;  %v6103_v58 = vcombine.low %v575_v44, %v583_v47  ;;  %v473_v42 = vld [vmem:[#allocation7 + $0x1f8] sm:$0xff] }
 0x1bd   :  { %2205 = vmatpush1.bf16.msra.mxu1 %v5973_v52  ;;  %v6104_v52 = vcombine.high %v575_v44, %v583_v47 }
 0x1be   :  { %2246 = vmatpush1.bf16.msra.mxu0 %v5975_v53  ;;  %2206 = vmatprep.subr.bf16.mxu1 %v5958_v54  ;;  %v558_v53 = vld [vmem:[#allocation7 + $0x4a0] sm:$0xff] }
 0x1bf   :  { %2247 = vmatprep.subr.bf16.mxu0 %v5960_v55  ;;  %v566_v54 = vld [vmem:[#allocation7 + $0x4e0] sm:$0xff]  ;;  %v559_v55 = vld [vmem:[#allocation7 + $0x4a8] sm:$0xff] }
 0x1c0   :  { %v6086_v59 = vcombine.high %v558_v53, %v566_v54  ;;  %v6085_v3 = vcombine.low %v558_v53, %v566_v54  ;;  %v6087_v4 = vcombine.low %v559_v55, %v567_v56 }
 0x1c1   :  { %2207 = vmatpush1.bf16.msra.mxu1 %v5957_v60  ;;  %v6088_v60 = vcombine.high %v559_v55, %v567_v56 }
 0x1c2   :  { %2248 = vmatpush1.bf16.msra.mxu0 %v5959_v61  ;;  %2208 = vmatprep.subr.bf16.mxu1 %v5942_v62  ;;  %v542_v61 = vld [vmem:[#allocation7 + $0x420] sm:$0xff] }
 0x1c3   :  { %2249 = vmatprep.subr.bf16.mxu0 %v5944_v1  ;;  %v550_v62 = vld [vmem:[#allocation7 + $0x460] sm:$0xff]  ;;  %v543_v1 = vld [vmem:[#allocation7 + $0x428] sm:$0xff] }
 0x1c4   :  { %v6070_v5 = vcombine.high %v542_v61, %v550_v62  ;;  %v6069_v11 = vcombine.low %v542_v61, %v550_v62  ;;  %v6071_v12 = vcombine.low %v543_v1, %v551_v2 }
 0x1c5   :  { %2209 = vmatpush1.bf16.msra.mxu1 %v5941_v6  ;;  %v6072_v6 = vcombine.high %v543_v1, %v551_v2 }
 0x1c6   :  { %2250 = vmatpush1.bf16.msra.mxu0 %v5943_v7  ;;  %2210 = vmatprep.subr.bf16.mxu1 %v6182_v8  ;;  %v528_v7 = vld [vmem:[#allocation7 + $0x3b0] sm:$0xff] }
 0x1c7   :  { %2251 = vmatprep.subr.bf16.mxu0 %v6184_v9  ;;  %v536_v8 = vld [vmem:[#allocation7 + $0x3f0] sm:$0xff]  ;;  %v529_v9 = vld [vmem:[#allocation7 + $0x3b8] sm:$0xff] }
 0x1c8   :  { %v6058_v14 = vcombine.high %v528_v7, %v536_v8  ;;  %v6059_v21 = vcombine.low %v529_v9, %v537_v10 }
 0x1c9   :  { %2211 = vmatpush2.bf16.msra.mxu1 %v6181_v15  ;;  %v6060_v15 = vcombine.high %v529_v9, %v537_v10 }
 0x1ca   :  { %2252 = vmatpush2.bf16.msra.mxu0 %v6183_v16  ;;  %2212 = vmatprep.subr.bf16.mxu1 %v6166_v17  ;;  %v512_v16 = vld [vmem:[#allocation7 + $0x330] sm:$0xff] }
 0x1cb   :  { %2253 = vmatprep.subr.bf16.mxu0 %v6168_v18  ;;  %v520_v17 = vld [vmem:[#allocation7 + $0x370] sm:$0xff]  ;;  %v6057_v18 = vcombine.low %v528_v7, %v536_v8 }
 0x1cc   :  { %v6042_v22 = vcombine.high %v512_v16, %v520_v17  ;;  %v6041_v28 = vcombine.low %v512_v16, %v520_v17 }
 0x1cd   :  { %2213 = vmatpush2.bf16.msra.mxu1 %v6165_v23  ;;  %v496_v23 = vld [vmem:[#allocation7 + $0x2b0] sm:$0xff] }
 0x1ce   :  { %2254 = vmatpush2.bf16.msra.mxu0 %v6167_v24  ;;  %2214 = vmatprep.subr.bf16.mxu1 %v6150_v25  ;;  %v504_v24 = vld [vmem:[#allocation7 + $0x2f0] sm:$0xff]  ;;  %v6044_v25 = vcombine.high %v513_v19, %v521_v20 }
 0x1cf   :  { %2255 = vmatprep.subr.bf16.mxu0 %v6152_v26  ;;  %v497_v26 = vld [vmem:[#allocation7 + $0x2b8] sm:$0xff]  ;;  %v6026_v30 = vcombine.high %v496_v23, %v504_v24  ;;  %v6025_v35 = vcombine.low %v496_v23, %v504_v24  ;;  %v640_v20 = vld [vmem:[#allocation7 + $0x730] sm:$0xff] }
 0x1d0   :  { %v6027_v36 = vcombine.low %v497_v26, %v505_v27  ;;  %v649_v23 = vld [vmem:[#allocation7 + $0x778] sm:$0xff] }
 0x1d1   :  { %2215 = vmatpush2.bf16.msra.mxu1 %v6149_v31  ;;  %v6028_v31 = vcombine.high %v497_v26, %v505_v27 }
 0x1d2   :  { %2256 = vmatpush2.bf16.msra.mxu0 %v6151_v32  ;;  %2216 = vmatprep.subr.bf16.mxu1 %v6134_v33  ;;  %v480_v32 = vld [vmem:[#allocation7 + $0x230] sm:$0xff] }
 0x1d3   :  { %2257 = vmatprep.subr.bf16.mxu0 %v6136_v34  ;;  %v488_v33 = vld [vmem:[#allocation7 + $0x270] sm:$0xff]  ;;  %v481_v34 = vld [vmem:[#allocation7 + $0x238] sm:$0xff] }
 0x1d4   :  { %v6010_v37 = vcombine.high %v480_v32, %v488_v33  ;;  %v6011_v43 = vcombine.low %v481_v34, %v489_v13 }
 0x1d5   :  { %2217 = vmatpush2.bf16.msra.mxu1 %v6133_v38  ;;  %v6012_v38 = vcombine.high %v481_v34, %v489_v13 }
 0x1d6   :  { %2258 = vmatpush2.bf16.msra.mxu0 %v6135_v39  ;;  %2218 = vmatprep.subr.bf16.mxu1 %v6118_v40  ;;  %v464_v39 = vld [vmem:[#allocation7 + $0x1b0] sm:$0xff] }
 0x1d7   :  { %2259 = vmatprep.subr.bf16.mxu0 %v6120_v41  ;;  %v472_v40 = vld [vmem:[#allocation7 + $0x1f0] sm:$0xff]  ;;  %v465_v41 = vld [vmem:[#allocation7 + $0x1b8] sm:$0xff] }
 0x1d8   :  { %v5994_v44 = vcombine.high %v464_v39, %v472_v40  ;;  %v5996_v47 = vcombine.high %v465_v41, %v473_v42  ;;  %v5993_v53 = vcombine.low %v464_v39, %v472_v40  ;;  %v5995_v54 = vcombine.low %v465_v41, %v473_v42 }
 0x1d9   :  { %2219 = vmatpush2.bf16.msra.mxu1 %v6117_v49  ;;  %v448_v49 = vld [vmem:[#allocation7 + $0x130] sm:$0xff] }
 0x1da   :  { %2260 = vmatpush2.bf16.msra.mxu0 %v6119_v50  ;;  %2220 = vmatprep.subr.bf16.mxu1 %v6102_v51  ;;  %v456_v50 = vld [vmem:[#allocation7 + $0x170] sm:$0xff]  ;;  %v449_v51 = vld [vmem:[#allocation7 + $0x138] sm:$0xff] }
 0x1db   :  { %2261 = vmatprep.subr.bf16.mxu0 %v6104_v52  ;;  %v457_v52 = vld [vmem:[#allocation7 + $0x178] sm:$0xff]  ;;  %v5978_v55 = vcombine.high %v448_v49, %v456_v50  ;;  %v5977_v61 = vcombine.low %v448_v49, %v456_v50 }
 0x1dc   :  { %v5980_v56 = vcombine.high %v449_v51, %v457_v52  ;;  %v5979_v62 = vcombine.low %v449_v51, %v457_v52 }
 0x1dd   :  { %2221 = vmatpush2.bf16.msra.mxu1 %v6101_v57  ;;  %v432_v57 = vld [vmem:[#allocation7 + $0xb0] sm:$0xff] }
 0x1de   :  { %2262 = vmatpush2.bf16.msra.mxu0 %v6103_v58  ;;  %2222 = vmatprep.subr.bf16.mxu1 %v6086_v59  ;;  %v440_v58 = vld [vmem:[#allocation7 + $0xf0] sm:$0xff]  ;;  %v433_v59 = vld [vmem:[#allocation7 + $0xb8] sm:$0xff] }
 0x1df   :  { %2263 = vmatprep.subr.bf16.mxu0 %v6088_v60  ;;  %v441_v60 = vld [vmem:[#allocation7 + $0xf8] sm:$0xff]  ;;  %v5962_v1 = vcombine.high %v432_v57, %v440_v58  ;;  %v5961_v7 = vcombine.low %v432_v57, %v440_v58 }
 0x1e0   :  { %v5964_v2 = vcombine.high %v433_v59, %v441_v60  ;;  %v5963_v8 = vcombine.low %v433_v59, %v441_v60 }
 0x1e1   :  { %2223 = vmatpush2.bf16.msra.mxu1 %v6085_v3  ;;  %v416_v3 = vld [vmem:[#allocation7 + $0x30] sm:$0xff] }
 0x1e2   :  { %2264 = vmatpush2.bf16.msra.mxu0 %v6087_v4  ;;  %2224 = vmatprep.subr.bf16.mxu1 %v6070_v5  ;;  %v424_v4 = vld [vmem:[#allocation7 + $0x70] sm:$0xff]  ;;  %v417_v5 = vld [vmem:[#allocation7 + $0x38] sm:$0xff] }
 0x1e3   :  { %2265 = vmatprep.subr.bf16.mxu0 %v6072_v6  ;;  %v425_v6 = vld [vmem:[#allocation7 + $0x78] sm:$0xff]  ;;  %v5946_v9 = vcombine.high %v416_v3, %v424_v4  ;;  %v5945_v16 = vcombine.low %v416_v3, %v424_v4 }
 0x1e4   :  { %v5948_v10 = vcombine.high %v417_v5, %v425_v6  ;;  %v5947_v17 = vcombine.low %v417_v5, %v425_v6 }
 0x1e5   :  { %2225 = vmatpush2.bf16.msra.mxu1 %v6069_v11  ;;  %v656_v11 = vld [vmem:[#allocation7 + $0x7b0] sm:$0xff] }
 0x1e6   :  { %2266 = vmatpush2.bf16.msra.mxu0 %v6071_v12  ;;  %2276 = vmatprep.subr.bf16.mxu1 %v6058_v14  ;;  %v664_v12 = vld [vmem:[#allocation7 + $0x7f0] sm:$0xff]  ;;  %v657_v14 = vld [vmem:[#allocation7 + $0x7b8] sm:$0xff] }
 0x1e7   :  { %2317 = vmatprep.subr.bf16.mxu0 %v6060_v15  ;;  %v665_v15 = vld [vmem:[#allocation7 + $0x7f8] sm:$0xff]  ;;  %v6185_v24 = vcombine.low %v656_v11, %v664_v12 }
 0x1e8   :  { %2227 = vmatmul.mubr.bf16.vlgmr.msra.gmra.mxu1 %v7698_v0  ;;  %v6188_v19 = vcombine.high %v657_v14, %v665_v15 }
 0x1e9   :  { %2268 = vmatmul.mubr.bf16.vlgmr.msra.gmra.mxu0 %v7698_v0  ;;  %2277 = vmatpush1.bf16.msra.mxu1 %v6057_v18  ;;  %v6186_v18 = vcombine.high %v656_v11, %v664_v12 }
 0x1ea   :  { %2308 = vmatprep.mubr.bf16.mxu1 %v7696_v63  ;;  %2318 = vmatpush1.bf16.msra.mxu0 %v6059_v21  ;;  %v648_v21 = vld [vmem:[#allocation7 + $0x770] sm:$0xff] }
 0x1eb   :  { %2349 = vmatprep.mubr.bf16.mxu0 %v7696_v63  ;;  %2278 = vmatprep.subr.bf16.mxu1 %v6042_v22  ;;  %v6009_v63 = vcombine.low %v480_v32, %v488_v33  ;;  %v641_v22 = vld [vmem:[#allocation7 + $0x738] sm:$0xff]  ;;  %v6170_v26 = vcombine.high %v640_v20, %v648_v21  ;;  %v6169_v32 = vcombine.low %v640_v20, %v648_v21  ;;  %v6662_v20 = vld [vmem:[#allocation8 + $0xe4] ss:$16 sps:$4 sm:$0xff]   ;;  %v7715_v21 = vsub.s32 2, %v7683_v45 }
 0x1ec   :  { %2319 = vmatprep.subr.bf16.mxu0 %v6044_v25  ;;  %v6187_v25 = vcombine.low %v657_v14, %v665_v15  ;;  %v6172_v27 = vcombine.high %v641_v22, %v649_v23  ;;  %v6171_v33 = vcombine.low %v641_v22, %v649_v23  ;;  %v7718_v22 = vsub.s32 3, %v7683_v45  ;;  %v6665_v23 = vld [vmem:[#allocation8 + $0x2e4] ss:$16 sps:$4 sm:$0xff]  }
 0x1ed   :  { %2279 = vmatpush1.bf16.msra.mxu1 %v6041_v28  ;;  %v624_v28 = vld [vmem:[#allocation7 + $0x6b0] sm:$0xff] }
 0x1ee   :  { %2320 = vmatpush1.bf16.msra.mxu0 %v6043_v29  ;;  %2280 = vmatprep.subr.bf16.mxu1 %v6026_v30  ;;  %v632_v29 = vld [vmem:[#allocation7 + $0x6f0] sm:$0xff]  ;;  %v625_v30 = vld [vmem:[#allocation7 + $0x6b8] sm:$0xff] }
 0x1ef   :  { %2321 = vmatprep.subr.bf16.mxu0 %v6028_v31  ;;  %v633_v31 = vld [vmem:[#allocation7 + $0x6f8] sm:$0xff]  ;;  %v6154_v34 = vcombine.high %v624_v28, %v632_v29  ;;  %v6153_v39 = vcombine.low %v624_v28, %v632_v29  ;;  %v6668_v28 = vld [vmem:[#allocation8 + $0xc4] ss:$16 sps:$4 sm:$0xff]  }
 0x1f0   :  { %v6156_v13 = vcombine.high %v625_v30, %v633_v31  ;;  %v6155_v40 = vcombine.low %v625_v30, %v633_v31 }
 0x1f1   :  { %2281 = vmatpush1.bf16.msra.mxu1 %v6025_v35  ;;  %v608_v35 = vld [vmem:[#allocation7 + $0x630] sm:$0xff] }
 0x1f2   :  { %2322 = vmatpush1.bf16.msra.mxu0 %v6027_v36  ;;  %2282 = vmatprep.subr.bf16.mxu1 %v6010_v37  ;;  %v616_v36 = vld [vmem:[#allocation7 + $0x670] sm:$0xff]  ;;  %v609_v37 = vld [vmem:[#allocation7 + $0x638] sm:$0xff] }
 0x1f3   :  { %2323 = vmatprep.subr.bf16.mxu0 %v6012_v38  ;;  %v617_v38 = vld [vmem:[#allocation7 + $0x678] sm:$0xff]  ;;  %v6138_v41 = vcombine.high %v608_v35, %v616_v36  ;;  %v6137_v49 = vcombine.low %v608_v35, %v616_v36  ;;  %v6666_v35 = vld [vmem:[#allocation8 + $0xc0] ss:$16 sps:$4 sm:$0xff]  }
 0x1f4   :  { %v6140_v42 = vcombine.high %v609_v37, %v617_v38  ;;  %v6139_v50 = vcombine.low %v609_v37, %v617_v38 }
 0x1f5   :  { %2283 = vmatpush1.bf16.msra.mxu1 %v6009_v63  ;;  %v592_v63 = vld [vmem:[#allocation7 + $0x5b0] sm:$0xff] }
 0x1f6   :  { %2324 = vmatpush1.bf16.msra.mxu0 %v6011_v43  ;;  %2284 = vmatprep.subr.bf16.mxu1 %v5994_v44  ;;  %v600_v43 = vld [vmem:[#allocation7 + $0x5f0] sm:$0xff]  ;;  %v593_v44 = vld [vmem:[#allocation7 + $0x5b8] sm:$0xff] }
 0x1f7   :  { %2325 = vmatprep.subr.bf16.mxu0 %v5996_v47  ;;  %v601_v47 = vld [vmem:[#allocation7 + $0x5f8] sm:$0xff]  ;;  %v6122_v51 = vcombine.high %v592_v63, %v600_v43  ;;  %v6121_v57 = vcombine.low %v592_v63, %v600_v43 }
 0x1f8   :  { %v6124_v52 = vcombine.high %v593_v44, %v601_v47  ;;  %v6123_v58 = vcombine.low %v593_v44, %v601_v47 }
 0x1f9   :  { %2285 = vmatpush1.bf16.msra.mxu1 %v5993_v53  ;;  %v576_v53 = vld [vmem:[#allocation7 + $0x530] sm:$0xff] }
 0x1fa   :  { %2326 = vmatpush1.bf16.msra.mxu0 %v5995_v54  ;;  %2286 = vmatprep.subr.bf16.mxu1 %v5978_v55  ;;  %v584_v54 = vld [vmem:[#allocation7 + $0x570] sm:$0xff]  ;;  %v577_v55 = vld [vmem:[#allocation7 + $0x538] sm:$0xff] }
 0x1fb   :  { %2327 = vmatprep.subr.bf16.mxu0 %v5980_v56  ;;  %v585_v56 = vld [vmem:[#allocation7 + $0x578] sm:$0xff]  ;;  %v6106_v59 = vcombine.high %v576_v53, %v584_v54  ;;  %v6105_v3 = vcombine.low %v576_v53, %v584_v54  ;;  %v6675_v54 = vld [vmem:[#allocation8 + $0x2a0] ss:$16 sps:$4 sm:$0xff]  }
 0x1fc   :  { %v6108_v60 = vcombine.high %v577_v55, %v585_v56  ;;  %v6107_v4 = vcombine.low %v577_v55, %v585_v56  ;;  %v6680_v55 = vld [vmem:[#allocation8 + $0x84] ss:$16 sps:$4 sm:$0xff]  }
 0x1fd   :  { %2287 = vmatpush1.bf16.msra.mxu1 %v5977_v61  ;;  %v560_v61 = vld [vmem:[#allocation7 + $0x4b0] sm:$0xff] }
 0x1fe   :  { %2328 = vmatpush1.bf16.msra.mxu0 %v5979_v62  ;;  %2288 = vmatprep.subr.bf16.mxu1 %v5962_v1  ;;  %v568_v62 = vld [vmem:[#allocation7 + $0x4f0] sm:$0xff]  ;;  %v561_v1 = vld [vmem:[#allocation7 + $0x4b8] sm:$0xff] }
 0x1ff   :  { %2329 = vmatprep.subr.bf16.mxu0 %v5964_v2  ;;  %v569_v2 = vld [vmem:[#allocation7 + $0x4f8] sm:$0xff]  ;;  %v6090_v5 = vcombine.high %v560_v61, %v568_v62  ;;  %v6089_v11 = vcombine.low %v560_v61, %v568_v62  ;;  %v6681_v61 = vld [vmem:[#allocation8 + $0x280] ss:$16 sps:$4 sm:$0xff]   ;;  %v6686_v62 = vld [vmem:[#allocation8 + $0x64] ss:$16 sps:$4 sm:$0xff]  }
 0x200   :  { %v6092_v6 = vcombine.high %v561_v1, %v569_v2  ;;  %v6091_v12 = vcombine.low %v561_v1, %v569_v2  ;;  %v6689_v1 = vld [vmem:[#allocation8 + $0x264] ss:$16 sps:$4 sm:$0xff]   ;;  %v6684_v2 = vld [vmem:[#allocation8 + $0x60] ss:$16 sps:$4 sm:$0xff]  }
 0x201   :  { %2289 = vmatpush1.bf16.msra.mxu1 %v5961_v7  ;;  %v544_v7 = vld [vmem:[#allocation7 + $0x430] sm:$0xff] }
 0x202   :  { %2330 = vmatpush1.bf16.msra.mxu0 %v5963_v8  ;;  %2290 = vmatprep.subr.bf16.mxu1 %v5946_v9  ;;  %v552_v8 = vld [vmem:[#allocation7 + $0x470] sm:$0xff]  ;;  %v545_v9 = vld [vmem:[#allocation7 + $0x438] sm:$0xff] }
 0x203   :  { %2331 = vmatprep.subr.bf16.mxu0 %v5948_v10  ;;  %v553_v10 = vld [vmem:[#allocation7 + $0x478] sm:$0xff]  ;;  %v6074_v14 = vcombine.high %v544_v7, %v552_v8 }
 0x204   :  { %v6076_v15 = vcombine.high %v545_v9, %v553_v10 }
 0x205   :  { %2291 = vmatpush1.bf16.msra.mxu1 %v5945_v16  ;;  %v6073_v16 = vcombine.low %v544_v7, %v552_v8  ;;  %v6693_v7 = vld [vmem:[#allocation8 + $0x240] ss:$16 sps:$4 sm:$0xff]   ;;  %v6698_v8 = vld [vmem:[#allocation8 + $0x24] ss:$16 sps:$4 sm:$0xff]  }
 0x206   :  { %2332 = vmatpush1.bf16.msra.mxu0 %v5947_v17  ;;  %2292 = vmatprep.subr.bf16.mxu1 %v6186_v18  ;;  %v7537_v17 = vmov 1983009808  }
 0x207   :  { %2333 = vmatprep.subr.bf16.mxu0 %v6188_v19  ;;  %v2369_v18 = vunpack.c.l.s4 %v7537_v17  ;;  %v6075_v19 = vcombine.low %v545_v9, %v553_v10  ;;  %v6701_v9 = vld [vmem:[#allocation8 + $0x224] ss:$16 sps:$4 sm:$0xff]   ;;  %v6696_v10 = vld [vmem:[#allocation8 + $0x20] ss:$16 sps:$4 sm:$0xff]  }
 0x208   :  { %v6710_v17 = vld [vmem:[#allocation8 + $0x1e4] ss:$16 sps:$4 sm:$0xff]  }
 0x209   :  { %2293 = vmatpush2.bf16.msra.mxu1 %v6185_v24  ;;  %v7723_v24 = vld [vmem:[%s9140_s7] sm:$0xff] }
 0x20a   :  { %2334 = vmatpush2.bf16.msra.mxu0 %v6187_v25  ;;  %2294 = vmatprep.subr.bf16.mxu1 %v6170_v26  ;;  %v6660_v25 = vld [vmem:[#allocation8 + $0xe0] ss:$16 sps:$4 sm:$0xff]   ;;  %v2370_v26 = vunpack.c.0.s8 %v2369_v18  ;;  %v673_v29 = vrot.slane %v7723_v24, %v7686_v46  ;;  %v681_v30 = vrot.slane %v7723_v24, %v7715_v21  ;;  %v677_v31 = vrot.slane %v7723_v24, %v7692_v48  ;;  %v6713_v18 = vld [vmem:[#allocation8 + $0x3e4] ss:$16 sps:$4 sm:$0xff]  }
 0x20b   :  { %2335 = vmatprep.subr.bf16.mxu0 %v6172_v27  ;;  %v6663_v27 = vld [vmem:[#allocation8 + $0x2e0] ss:$16 sps:$4 sm:$0xff]  }
 0x20c   :  { %v7736_v36 = vsub.s32 %v2370_v26, %v7683_v45  ;;  %v6714_v26 = vld [vmem:[#allocation8 + $0x1c0] ss:$16 sps:$4 sm:$0xff]  }
 0x20d   :  { %2295 = vmatpush2.bf16.msra.mxu1 %v6169_v32  ;;  %v685_v32 = vrot.slane %v7723_v24, %v7718_v22 }
 0x20e   :  { %2336 = vmatpush2.bf16.msra.mxu0 %v6171_v33  ;;  %2296 = vmatprep.subr.bf16.mxu1 %v6154_v34  ;;  %v6671_v33 = vld [vmem:[#allocation8 + $0x2c4] ss:$16 sps:$4 sm:$0xff]   ;;  %9363 = vst [vmem:[#allocation29_spill] sm:$0xff] %v7736_v36 }
 0x20f   :  { %2337 = vmatprep.subr.bf16.mxu0 %v6156_v13 }
 0x211   :  { %2297 = vmatpush2.bf16.msra.mxu1 %v6153_v39  ;;  %v6669_v39 = vld [vmem:[#allocation8 + $0x2c0] ss:$16 sps:$4 sm:$0xff]  }
 0x212   :  { %2338 = vmatpush2.bf16.msra.mxu0 %v6155_v40  ;;  %2298 = vmatprep.subr.bf16.mxu1 %v6138_v41  ;;  %v6674_v40 = vld [vmem:[#allocation8 + $0xa4] ss:$16 sps:$4 sm:$0xff]  }
 0x213   :  { %2339 = vmatprep.subr.bf16.mxu0 %v6140_v42 }
 0x215   :  { %2299 = vmatpush2.bf16.msra.mxu1 %v6137_v49 }
 0x216   :  { %2340 = vmatpush2.bf16.msra.mxu0 %v6139_v50  ;;  %2300 = vmatprep.subr.bf16.mxu1 %v6122_v51  ;;  %v6672_v51 = vld [vmem:[#allocation8 + $0xa0] ss:$16 sps:$4 sm:$0xff]  }
 0x217   :  { %2341 = vmatprep.subr.bf16.mxu0 %v6124_v52 }
 0x219   :  { %2301 = vmatpush2.bf16.msra.mxu1 %v6121_v57 }
 0x21a   :  { %2342 = vmatpush2.bf16.msra.mxu0 %v6123_v58  ;;  %2302 = vmatprep.subr.bf16.mxu1 %v6106_v59  ;;  %v6683_v58 = vld [vmem:[#allocation8 + $0x284] ss:$16 sps:$4 sm:$0xff]   ;;  %v6678_v59 = vld [vmem:[#allocation8 + $0x80] ss:$16 sps:$4 sm:$0xff]  }
 0x21b   :  { %2343 = vmatprep.subr.bf16.mxu0 %v6108_v60 }
 0x21d   :  { %2303 = vmatpush2.bf16.msra.mxu1 %v6105_v3  ;;  %v6687_v3 = vld [vmem:[#allocation8 + $0x260] ss:$16 sps:$4 sm:$0xff]  }
 0x21e   :  { %2344 = vmatpush2.bf16.msra.mxu0 %v6107_v4  ;;  %2304 = vmatprep.subr.bf16.mxu1 %v6090_v5  ;;  %v6692_v4 = vld [vmem:[#allocation8 + $0x44] ss:$16 sps:$4 sm:$0xff]  }
 0x21f   :  { %2345 = vmatprep.subr.bf16.mxu0 %v6092_v6  ;;  %v6695_v5 = vld [vmem:[#allocation8 + $0x244] ss:$16 sps:$4 sm:$0xff]   ;;  %v6690_v6 = vld [vmem:[#allocation8 + $0x40] ss:$16 sps:$4 sm:$0xff]  }
 0x221   :  { %2305 = vmatpush2.bf16.msra.mxu1 %v6089_v11  ;;  %v6699_v11 = vld [vmem:[#allocation8 + $0x220] ss:$16 sps:$4 sm:$0xff]  }
 0x222   :  { %2346 = vmatpush2.bf16.msra.mxu0 %v6091_v12  ;;  %2306 = vmatprep.subr.bf16.mxu1 %v6074_v14  ;;  %v6704_v12 = vld [vmem:[#allocation8 + $0x4] ss:$16 sps:$4 sm:$0xff]  }
 0x223   :  { %2347 = vmatprep.subr.bf16.mxu0 %v6076_v15  ;;  %v6707_v14 = vld [vmem:[#allocation8 + $0x204] ss:$16 sps:$4 sm:$0xff]   ;;  %v6702_v15 = vld [vmem:[#allocation8] ss:$16 sps:$4 sm:$0xff]  }
 0x225   :  { %2307 = vmatpush2.bf16.msra.mxu1 %v6073_v16  ;;  %v6705_v16 = vld [vmem:[#allocation8 + $0x200] ss:$16 sps:$4 sm:$0xff]  }
 0x226   :  { %2348 = vmatpush2.bf16.msra.mxu0 %v6075_v19  ;;  %4140 = vmatprep.subr.bf16.mxu1 %v6662_v20  ;;  %v6708_v19 = vld [vmem:[#allocation8 + $0x1e0] ss:$16 sps:$4 sm:$0xff]  }
 0x227   :  { %4181 = vmatprep.subr.bf16.mxu0 %v6665_v23  ;;  %v6711_v20 = vld [vmem:[#allocation8 + $0x3e0] ss:$16 sps:$4 sm:$0xff]   ;;  %v6716_v23 = vld [vmem:[#allocation8 + $0x1c4] ss:$16 sps:$4 sm:$0xff]  }
 0x228   :  { %2309 = vmatmul.mubr.bf16.vlgmr.msra.gmra.mxu1 %v7698_v0  ;;  %v2064_v34 = vpop.f32.mrf.mxu1  ;;  %v2105_v13 = vpop.f32.mrf.mxu0 }
 0x229   :  { %2350 = vmatmul.mubr.bf16.vlgmr.msra.gmra.mxu0 %v7698_v0  ;;  %4141 = vmatpush1.bf16.msra.mxu1 %v6660_v25  ;;  %v7738_v41 = vadd.f32 %v2064_v34, %v673_v29  ;;  %v7740_v42 = vadd.f32 %v2105_v13, %v681_v30  ;;  %v6677_v0 = vld [vmem:[#allocation8 + $0x2a4] ss:$16 sps:$4 sm:$0xff]   ;;  %v6720_v30 = vld [vmem:[#allocation8 + $0x1a0] ss:$16 sps:$4 sm:$0xff]  }
 0x22a   :  { %v2066_v37 = vpop.f32.mrf.mxu1  ;;  %v2107_v38 = vpop.f32.mrf.mxu0  ;;  %4182 = vmatpush1.bf16.msra.mxu0 %v6663_v27  ;;  %4142 = vmatprep.subr.bf16.mxu1 %v6668_v28  ;;  %v6719_v25 = vld [vmem:[#allocation8 + $0x3c4] ss:$16 sps:$4 sm:$0xff]   ;;  %v6717_v27 = vld [vmem:[#allocation8 + $0x3c0] ss:$16 sps:$4 sm:$0xff]  }
 0x22b   :  { %v7742_v63 = vadd.f32 %v2066_v37, %v677_v31  ;;  %v7744_v43 = vadd.f32 %v2107_v38, %v685_v32  ;;  %4183 = vmatprep.subr.bf16.mxu0 %v6671_v33  ;;  %v6722_v28 = vld [vmem:[#allocation8 + $0x1a4] ss:$16 sps:$4 sm:$0xff]   ;;  %v6723_v31 = vld [vmem:[#allocation8 + $0x3a0] ss:$16 sps:$4 sm:$0xff]  }
 0x22c   :  { %v2068_v44 = vpop.f32.mrf.mxu1  ;;  %v2109_v47 = vpop.f32.mrf.mxu0  ;;  %v6725_v29 = vld [vmem:[#allocation8 + $0x3a4] ss:$16 sps:$4 sm:$0xff]   ;;  %v6726_v34 = vld [vmem:[#allocation8 + $0x180] ss:$16 sps:$4 sm:$0xff]  }
 0x22d   :  { %v2366_v49 = vcombine.low %v7738_v41, %v7742_v63  ;;  %v2367_v50 = vcombine.low %v7740_v42, %v7744_v43  ;;  %4143 = vmatpush1.bf16.msra.mxu1 %v6666_v35  ;;  %v6728_v32 = vld [vmem:[#allocation8 + $0x184] ss:$16 sps:$4 sm:$0xff]   ;;  %v6729_v13 = vld [vmem:[#allocation8 + $0x380] ss:$16 sps:$4 sm:$0xff]  }
 0x22e   :  { %v2069_v52 = vpop.f32.mrf.mxu1  ;;  %v2110_v53 = vpop.f32.mrf.mxu0  ;;  %4184 = vmatpush1.bf16.msra.mxu0 %v6669_v39  ;;  %4144 = vmatprep.subr.bf16.mxu1 %v6674_v40  ;;  %v6731_v33 = vld [vmem:[#allocation8 + $0x384] ss:$16 sps:$4 sm:$0xff]   ;;  %v6732_v38 = vld [vmem:[#allocation8 + $0x160] ss:$16 sps:$4 sm:$0xff]  }
 0x22f   :  { %v2374_v56 = vrot.slane %v2366_v49, %v7736_v36  ;;  %v2381_v57 = vrot.slane %v2367_v50, %v7736_v36  ;;  %4185 = vmatprep.subr.bf16.mxu0 %v6677_v0  ;;  %v6734_v35 = vld [vmem:[#allocation8 + $0x164] ss:$16 sps:$4 sm:$0xff]   ;;  %v6735_v39 = vld [vmem:[#allocation8 + $0x360] ss:$16 sps:$4 sm:$0xff]  }
 0x230   :  { %v6737_v37 = vld [vmem:[#allocation8 + $0x364] ss:$16 sps:$4 sm:$0xff]   ;;  %v6738_v44 = vld [vmem:[#allocation8 + $0x140] ss:$16 sps:$4 sm:$0xff]  }
 0x231   :  { %4145 = vmatpush1.bf16.msra.mxu1 %v6672_v51  ;;  %v2382_v60 = vcombine.low %v2374_v56, %v2381_v57  ;;  %v6740_v40 = vld [vmem:[#allocation8 + $0x144] ss:$16 sps:$4 sm:$0xff]   ;;  %v6741_v47 = vld [vmem:[#allocation8 + $0x340] ss:$16 sps:$4 sm:$0xff]  }
 0x232   :  { %4186 = vmatpush1.bf16.msra.mxu0 %v6675_v54  ;;  %4146 = vmatprep.subr.bf16.mxu1 %v6680_v55  ;;  %v6743_v0 = vld [vmem:[#allocation8 + $0x344] ss:$16 sps:$4 sm:$0xff]   ;;  %v6744_v51 = vld [vmem:[#allocation8 + $0x120] ss:$16 sps:$4 sm:$0xff]  }
 0x233   :  { %4187 = vmatprep.subr.bf16.mxu0 %v6683_v58  ;;  %2402 = vst [vmem:[#allocation14] sm:$0xff] %v2382_v60  ;;  %v6746_v49 = vld [vmem:[#allocation8 + $0x124] ss:$16 sps:$4 sm:$0xff]   ;;  %v6747_v52 = vld [vmem:[#allocation8 + $0x320] ss:$16 sps:$4 sm:$0xff]   ;;  %v688_v58 = vsub.s32 4, %v7683_v45 }
 0x234   :  { %v6749_v50 = vld [vmem:[#allocation8 + $0x324] ss:$16 sps:$4 sm:$0xff]   ;;  %v6750_v55 = vld [vmem:[#allocation8 + $0x100] ss:$16 sps:$4 sm:$0xff]   ;;  %v692_v60 = vsub.s32 5, %v7683_v45 }
 0x235   :  { %4147 = vmatpush1.bf16.msra.mxu1 %v6678_v59  ;;  %v6752_v53 = vld [vmem:[#allocation8 + $0x104] ss:$16 sps:$4 sm:$0xff]   ;;  %v6753_v56 = vld [vmem:[#allocation8 + $0x300] ss:$16 sps:$4 sm:$0xff]   ;;  %v696_v59 = vsub.s32 6, %v7683_v45 }
 0x236   :  { %4188 = vmatpush1.bf16.msra.mxu0 %v6681_v61  ;;  %4148 = vmatprep.subr.bf16.mxu1 %v6686_v62  ;;  %v6755_v54 = vld [vmem:[#allocation8 + $0x304] ss:$16 sps:$4 sm:$0xff]   ;;  %v700_v61 = vsub.s32 7, %v7683_v45  ;;  %v6801_v45 = vld [vmem:[#allocation8 + $0x600] ss:$16 sps:$4 sm:$0xff]  }
 0x237   :  { %4189 = vmatprep.subr.bf16.mxu0 %v6689_v1  ;;  %v6758_v57 = vld [vmem:[#allocation8 + $0x4e4] ss:$16 sps:$4 sm:$0xff]   ;;  %v689_v1 = vrot.slane %v7723_v24, %v688_v58 }
 0x238   :  { %v6761_v62 = vld [vmem:[#allocation8 + $0x6e4] ss:$16 sps:$4 sm:$0xff]  }
 0x239   :  { %4149 = vmatpush1.bf16.msra.mxu1 %v6684_v2  ;;  %v697_v2 = vrot.slane %v7723_v24, %v696_v59 }
 0x23a   :  { %4190 = vmatpush1.bf16.msra.mxu0 %v6687_v3  ;;  %4150 = vmatprep.subr.bf16.mxu1 %v6692_v4  ;;  %v693_v3 = vrot.slane %v7723_v24, %v692_v60  ;;  %v701_v4 = vrot.slane %v7723_v24, %v700_v61 }
 0x23b   :  { %4191 = vmatprep.subr.bf16.mxu0 %v6695_v5 }
 0x23d   :  { %4151 = vmatpush1.bf16.msra.mxu1 %v6690_v6 }
 0x23e   :  { %4192 = vmatpush1.bf16.msra.mxu0 %v6693_v7  ;;  %4152 = vmatprep.subr.bf16.mxu1 %v6698_v8 }
 0x23f   :  { %4193 = vmatprep.subr.bf16.mxu0 %v6701_v9 }
 0x241   :  { %4153 = vmatpush1.bf16.msra.mxu1 %v6696_v10 }
 0x242   :  { %4194 = vmatpush1.bf16.msra.mxu0 %v6699_v11  ;;  %4154 = vmatprep.subr.bf16.mxu1 %v6704_v12 }
 0x243   :  { %4195 = vmatprep.subr.bf16.mxu0 %v6707_v14 }
 0x245   :  { %4155 = vmatpush1.bf16.msra.mxu1 %v6702_v15 }
 0x246   :  { %4196 = vmatpush1.bf16.msra.mxu0 %v6705_v16  ;;  %4156 = vmatprep.subr.bf16.mxu1 %v6710_v17 }
 0x247   :  { %4197 = vmatprep.subr.bf16.mxu0 %v6713_v18 }
 0x249   :  { %4157 = vmatpush2.bf16.msra.mxu1 %v6708_v19 }
 0x24a   :  { %4198 = vmatpush2.bf16.msra.mxu0 %v6711_v20  ;;  %4158 = vmatprep.subr.bf16.mxu1 %v6716_v23 }
 0x24b   :  { %4199 = vmatprep.subr.bf16.mxu0 %v6719_v25  ;;  %v7785_v25 = vld [vmem:[%s9140_s7 + $0x8] sm:$0xff] }
 0x24d   :  { %4159 = vmatpush2.bf16.msra.mxu1 %v6714_v26  ;;  %v705_v26 = vrot.slane %v7785_v25, %v7686_v46 }
 0x24e   :  { %4200 = vmatpush2.bf16.msra.mxu0 %v6717_v27  ;;  %4160 = vmatprep.subr.bf16.mxu1 %v6722_v28  ;;  %v713_v27 = vrot.slane %v7785_v25, %v7715_v21  ;;  %v709_v28 = vrot.slane %v7785_v25, %v7692_v48 }
 0x24f   :  { %4201 = vmatprep.subr.bf16.mxu0 %v6725_v29 }
 0x251   :  { %4161 = vmatpush2.bf16.msra.mxu1 %v6720_v30  ;;  %v717_v30 = vrot.slane %v7785_v25, %v7718_v22 }
 0x252   :  { %4202 = vmatpush2.bf16.msra.mxu0 %v6723_v31  ;;  %4162 = vmatprep.subr.bf16.mxu1 %v6728_v32 }
 0x253   :  { %4203 = vmatprep.subr.bf16.mxu0 %v6731_v33 }
 0x255   :  { %4163 = vmatpush2.bf16.msra.mxu1 %v6726_v34 }
 0x256   :  { %4204 = vmatpush2.bf16.msra.mxu0 %v6729_v13  ;;  %4164 = vmatprep.subr.bf16.mxu1 %v6734_v35 }
 0x257   :  { %4205 = vmatprep.subr.bf16.mxu0 %v6737_v37 }
 0x259   :  { %4165 = vmatpush2.bf16.msra.mxu1 %v6732_v38 }
 0x25a   :  { %4206 = vmatpush2.bf16.msra.mxu0 %v6735_v39  ;;  %4166 = vmatprep.subr.bf16.mxu1 %v6740_v40 }
 0x25b   :  { %4207 = vmatprep.subr.bf16.mxu0 %v6743_v0 }
 0x25d   :  { %4167 = vmatpush2.bf16.msra.mxu1 %v6738_v44 }
 0x25e   :  { %4208 = vmatpush2.bf16.msra.mxu0 %v6741_v47  ;;  %4168 = vmatprep.subr.bf16.mxu1 %v6746_v49 }
 0x25f   :  { %4209 = vmatprep.subr.bf16.mxu0 %v6749_v50 }
 0x261   :  { %4169 = vmatpush2.bf16.msra.mxu1 %v6744_v51 }
 0x262   :  { %4210 = vmatpush2.bf16.msra.mxu0 %v6747_v52  ;;  %4170 = vmatprep.subr.bf16.mxu1 %v6752_v53 }
 0x263   :  { %4211 = vmatprep.subr.bf16.mxu0 %v6755_v54 }
 0x265   :  { %4171 = vmatpush2.bf16.msra.mxu1 %v6750_v55 }
 0x266   :  { %4212 = vmatpush2.bf16.msra.mxu0 %v6753_v56  ;;  %4222 = vmatprep.subr.bf16.mxu1 %v6758_v57 }
 0x267   :  { %4263 = vmatprep.subr.bf16.mxu0 %v6761_v62 }
 0x268   :  { %v2146_v5 = vpop.f32.mrf.mxu1  ;;  %v2187_v6 = vpop.f32.mrf.mxu0 }
 0x269   :  { %v7768_v9 = vadd.f32 %v2146_v5, %v689_v1  ;;  %v7770_v10 = vadd.f32 %v2187_v6, %v697_v2 }
 0x26a   :  { %v2148_v7 = vpop.f32.mrf.mxu1  ;;  %v2189_v8 = vpop.f32.mrf.mxu0 }
 0x26b   :  { %v7772_v11 = vadd.f32 %v2148_v7, %v693_v3  ;;  %v7774_v12 = vadd.f32 %v2189_v8, %v701_v4 }
 0x26c   :  { %v2150_v14 = vpop.f32.mrf.mxu1  ;;  %v2191_v15 = vpop.f32.mrf.mxu0 }
 0x26d   :  { %v2383_v16 = vcombine.low %v7768_v9, %v7772_v11  ;;  %v2384_v24 = vcombine.low %v7770_v10, %v7774_v12  ;;  %v2450_v15 = vld [vmem:[%s9364_s1] sm:$0xff] }
 0x26e   :  { %v2151_v17 = vpop.f32.mrf.mxu1  ;;  %v2192_v18 = vpop.f32.mrf.mxu0 }
 0x26f   :  { %v2391_v19 = vrot.slane %v2383_v16, %v7736_v36  ;;  %v2398_v20 = vrot.slane %v2384_v24, %v7736_v36 }
 0x271   :  { %v2399_v23 = vcombine.low %v2391_v19, %v2398_v20 }
 0x273   :  { %2403 = vst [vmem:[#allocation14 + $0x8] sm:$0xff] %v2399_v23 }
 0x2a8   :  { %v2228_v29 = vpop.f32.mrf.mxu1 }
 0x2a9   :  { %v2229_v31 = vadd.f32 %v2228_v29, %v705_v26  ;;  %v2269_v32 = vpop.f32.mrf.mxu0 }
 0x2aa   :  { %v2270_v33 = vadd.f32 %v2269_v32, %v713_v27  ;;  %v2230_v34 = vpop.f32.mrf.mxu1 }
 0x2ab   :  { %v2452_v13 = vmul.f32 0.5, %v2229_v31  ;;  %v2231_v35 = vadd.f32 %v2230_v34, %v709_v28  ;;  %v2271_v37 = vpop.f32.mrf.mxu0 }
 0x2ac   :  { %v2454_v38 = vmul.f32 0.5, %v2270_v33  ;;  %v2272_v39 = vadd.f32 %v2271_v37, %v717_v30  ;;  %v2232_v40 = vpop.f32.mrf.mxu1  ;;  %v6756_v30 = vld [vmem:[#allocation8 + $0x4e0] ss:$16 sps:$4 sm:$0xff]   ;;  %v6773_v37 = vld [vmem:[#allocation8 + $0x6a4] ss:$16 sps:$4 sm:$0xff]  }
 0x2ad   :  { %v2460_v0 = vmul.f32 1.442695, %v2452_v13  ;;  %v2412_v44 = vcombine.low %v2229_v31, %v2231_v35  ;;  %v2453_v47 = vmul.f32 0.5, %v2231_v35  ;;  %v2273_v49 = vpop.f32.mrf.mxu0  ;;  %v6759_v13 = vld [vmem:[#allocation8 + $0x6e0] ss:$16 sps:$4 sm:$0xff]  }
 0x2ae   :  { %v2464_v50 = vmul.f32 1.442695, %v2454_v38  ;;  %v2413_v51 = vcombine.low %v2270_v33, %v2272_v39  ;;  %v2455_v52 = vmul.f32 0.5, %v2272_v39  ;;  %v2233_v53 = vpop.f32.mrf.mxu1  ;;  %v6764_v33 = vld [vmem:[#allocation8 + $0x4c4] ss:$16 sps:$4 sm:$0xff]  }
 0x2af   :  { %7159 = vpow2.f32 %v2460_v0  ;;  %v2420_v54 = vrot.slane %v2412_v44, %v7736_v36  ;;  %v2462_v55 = vmul.f32 1.442695, %v2453_v47  ;;  %v2274_v56 = vpop.f32.mrf.mxu0  ;;  %v6765_v35 = vld [vmem:[#allocation8 + $0x6c0] ss:$16 sps:$4 sm:$0xff]   ;;  %v6776_v39 = vld [vmem:[#allocation8 + $0x484] ss:$16 sps:$4 sm:$0xff]  }
 0x2b0   :  { %7161 = vpow2.f32 %v2464_v50  ;;  %v2427_v57 = vrot.slane %v2413_v51, %v7736_v36  ;;  %v2466_v62 = vmul.f32 1.442695, %v2455_v52  ;;  %v6768_v38 = vld [vmem:[#allocation8 + $0x4a0] ss:$16 sps:$4 sm:$0xff]   ;;  %v6779_v0 = vld [vmem:[#allocation8 + $0x684] ss:$16 sps:$4 sm:$0xff]  }
 0x2b1   :  { %7163 = vpow2.f32 %v2462_v55  ;;  %v6771_v40 = vld [vmem:[#allocation8 + $0x6a0] ss:$16 sps:$4 sm:$0xff]   ;;  %v6782_v47 = vld [vmem:[#allocation8 + $0x464] ss:$16 sps:$4 sm:$0xff]  }
 0x2b2   :  { %7165 = vpow2.f32 %v2466_v62  ;;  %v2428_v1 = vcombine.low %v2420_v54, %v2427_v57  ;;  %v6774_v44 = vld [vmem:[#allocation8 + $0x480] ss:$16 sps:$4 sm:$0xff]   ;;  %v6785_v50 = vld [vmem:[#allocation8 + $0x664] ss:$16 sps:$4 sm:$0xff]   ;;  %v721_v62 = vrot.slane %v7785_v25, %v688_v58  ;;  %v733_v58 = vrot.slane %v7785_v25, %v700_v61 }
 0x2b3   :  { %v6777_v49 = vld [vmem:[#allocation8 + $0x680] ss:$16 sps:$4 sm:$0xff]   ;;  %v6788_v52 = vld [vmem:[#allocation8 + $0x444] ss:$16 sps:$4 sm:$0xff]  }
 0x2b4   :  { %2448 = vst [vmem:[#allocation15] sm:$0xff] %v2428_v1  ;;  %v6780_v51 = vld [vmem:[#allocation8 + $0x460] ss:$16 sps:$4 sm:$0xff]   ;;  %v6791_v54 = vld [vmem:[#allocation8 + $0x644] ss:$16 sps:$4 sm:$0xff]  }
 0x2b5   :  { %v6783_v53 = vld [vmem:[#allocation8 + $0x660] ss:$16 sps:$4 sm:$0xff]   ;;  %v6794_v56 = vld [vmem:[#allocation8 + $0x424] ss:$16 sps:$4 sm:$0xff]  }
 0x2b6   :  { %v6786_v55 = vld [vmem:[#allocation8 + $0x440] ss:$16 sps:$4 sm:$0xff]   ;;  %v6797_v1 = vld [vmem:[#allocation8 + $0x624] ss:$16 sps:$4 sm:$0xff]  }
 0x2b7   :  { %v6789_v57 = vld [vmem:[#allocation8 + $0x640] ss:$16 sps:$4 sm:$0xff]  }
 0x2bc   :  { %v7160_v2 = vpop.eup %7159 }
 0x2bd   :  { %v7162_v3 = vpop.eup %7161 }
 0x2be   :  { %v7164_v4 = vpop.eup %7163 }
 0x2bf   :  { %v7166_v5 = vpop.eup %7165  ;;  %v2484_v6 = vcombine.low %v7160_v2, %v7164_v4  ;;  %v6792_v2 = vld [vmem:[#allocation8 + $0x420] ss:$16 sps:$4 sm:$0xff]   ;;  %v725_v4 = vrot.slane %v7785_v25, %v692_v60  ;;  %v6806_v60 = vld [vmem:[#allocation8 + $0x5e4] ss:$16 sps:$4 sm:$0xff]  }
 0x2c0   :  { %v2485_v7 = vcombine.low %v7162_v3, %v7166_v5  ;;  %v729_v3 = vrot.slane %v7785_v25, %v696_v59  ;;  %v6800_v5 = vld [vmem:[#allocation8 + $0x404] ss:$16 sps:$4 sm:$0xff]  }
 0x2c1   :  { %v2492_v8 = vrot.slane %v2484_v6, %v7736_v36 }
 0x2c2   :  { %v2499_v14 = vrot.slane %v2485_v7, %v7736_v36  ;;  %v6795_v7 = vld [vmem:[#allocation8 + $0x620] ss:$16 sps:$4 sm:$0xff]  }
 0x2c4   :  { %v2500_v16 = vcombine.low %v2492_v8, %v2499_v14 }
 0x2c6   :  { %v2520_v24 = vmul.f32 %v2500_v16, %v2450_v15  ;;  %v6803_v15 = vld [vmem:[#allocation8 + $0x604] ss:$16 sps:$4 sm:$0xff]  }
 0x2c8   :  { %v2531_v17 = vrot.slane %v2520_v24, %v7736_v36  ;;  %v2524_v18 = vcombine.high %v2520_v24, %v2520_v24  ;;  %v6798_v24 = vld [vmem:[#allocation8 + $0x400] ss:$16 sps:$4 sm:$0xff]  }
 0x2ca   :  { %v2539_v19 = vcombine.high %v2531_v17, %v2531_v17  ;;  %v2538_v20 = vrot.slane %v2524_v18, %v7736_v36  ;;  %v2566_v23 = vadd.f32 %v2531_v17, %v7738_v41 }
 0x2cc   :  { %v2567_v26 = vadd.f32 %v2539_v19, %v7742_v63  ;;  %v2540_v27 = vcombine.high %v2538_v20, %v2538_v20  ;;  %v2568_v28 = vadd.f32 %v2538_v20, %v7740_v42  ;;  %v7810_v32 = vpack.c.bf16 %v2566_v23, %v2566_v23  ;;  %v6767_v63 = vld [vmem:[#allocation8 + $0x6c4] ss:$16 sps:$4 sm:$0xff]   ;;  %v6762_v42 = vld [vmem:[#allocation8 + $0x4c0] ss:$16 sps:$4 sm:$0xff]  }
 0x2ce   :  { %v7807_v29 = vpack.c.bf16 %v2567_v26, %v2567_v26  ;;  %v2569_v31 = vadd.f32 %v2540_v27, %v7744_v43  ;;  %v7816_v41 = vpack.c.bf16 %v2568_v28, %v2568_v28  ;;  %v6770_v43 = vld [vmem:[#allocation8 + $0x4a4] ss:$16 sps:$4 sm:$0xff]  }
 0x2d0   :  { %4172 = vmatprep.mubr.bf16.mxu1 %v7807_v29  ;;  %v7813_v34 = vpack.c.bf16 %v2569_v31, %v2569_v31 }
 0x2d1   :  { %4173 = vmatmul.mubr.bf16.vlgmr.msra.gmra.mxu1 %v7810_v32 }
 0x2d2   :  { %4223 = vmatpush1.bf16.msra.mxu1 %v6756_v30  ;;  %4213 = vmatprep.mubr.bf16.mxu0 %v7813_v34  ;;  %v6809_v30 = vld [vmem:[#allocation8 + $0x7e4] ss:$16 sps:$4 sm:$0xff]  }
 0x2d3   :  { %4214 = vmatmul.mubr.bf16.vlgmr.msra.gmra.mxu0 %v7816_v41  ;;  %4224 = vmatprep.subr.bf16.mxu1 %v6764_v33 }
 0x2d4   :  { %4264 = vmatpush1.bf16.msra.mxu0 %v6759_v13 }
 0x2d5   :  { %4265 = vmatprep.subr.bf16.mxu0 %v6767_v63 }
 0x2d6   :  { %4225 = vmatpush1.bf16.msra.mxu1 %v6762_v42  ;;  %v6804_v42 = vld [vmem:[#allocation8 + $0x5e0] ss:$16 sps:$4 sm:$0xff]  }
 0x2d7   :  { %4226 = vmatprep.subr.bf16.mxu1 %v6770_v43 }
 0x2d8   :  { %4266 = vmatpush1.bf16.msra.mxu0 %v6765_v35 }
 0x2d9   :  { %4267 = vmatprep.subr.bf16.mxu0 %v6773_v37 }
 0x2da   :  { %4227 = vmatpush1.bf16.msra.mxu1 %v6768_v38  ;;  %v7833_v38 = vld [vmem:[#allocation8 + $0x5c4] ss:$16 sps:$4 sm:$0xff]  }
 0x2db   :  { %4228 = vmatprep.subr.bf16.mxu1 %v6776_v39 }
 0x2dc   :  { %4268 = vmatpush1.bf16.msra.mxu0 %v6771_v40 }
 0x2dd   :  { %4269 = vmatprep.subr.bf16.mxu0 %v6779_v0  ;;  %v7836_v0 = vld [vmem:[#allocation8 + $0x7e0] ss:$16 sps:$4 sm:$0xff]  }
 0x2de   :  { %4229 = vmatpush1.bf16.msra.mxu1 %v6774_v44  ;;  %v7838_v44 = vld [vmem:[#allocation8 + $0x7c4] ss:$16 sps:$4 sm:$0xff]  }
 0x2df   :  { %4230 = vmatprep.subr.bf16.mxu1 %v6782_v47  ;;  %v7840_v47 = vld [vmem:[#allocation8 + $0x5c0] ss:$16 sps:$4 sm:$0xff]  }
 0x2e0   :  { %4270 = vmatpush1.bf16.msra.mxu0 %v6777_v49 }
 0x2e1   :  { %4271 = vmatprep.subr.bf16.mxu0 %v6785_v50  ;;  %v7843_v50 = vld [vmem:[#allocation8 + $0x5a4] ss:$16 sps:$4 sm:$0xff]  }
 0x2e2   :  { %4231 = vmatpush1.bf16.msra.mxu1 %v6780_v51  ;;  %v7846_v51 = vld [vmem:[#allocation8 + $0x7c0] ss:$16 sps:$4 sm:$0xff]  }
 0x2e3   :  { %4232 = vmatprep.subr.bf16.mxu1 %v6788_v52  ;;  %v7849_v52 = vld [vmem:[#allocation8 + $0x7a4] ss:$16 sps:$4 sm:$0xff]  }
 0x2e4   :  { %4272 = vmatpush1.bf16.msra.mxu0 %v6783_v53  ;;  %v7852_v53 = vld [vmem:[#allocation8 + $0x5a0] ss:$16 sps:$4 sm:$0xff]  }
 0x2e5   :  { %4273 = vmatprep.subr.bf16.mxu0 %v6791_v54  ;;  %v7855_v54 = vld [vmem:[#allocation8 + $0x584] ss:$16 sps:$4 sm:$0xff]  }
 0x2e6   :  { %4233 = vmatpush1.bf16.msra.mxu1 %v6786_v55  ;;  %v7858_v55 = vld [vmem:[#allocation8 + $0x7a0] ss:$16 sps:$4 sm:$0xff]  }
 0x2e7   :  { %4234 = vmatprep.subr.bf16.mxu1 %v6794_v56  ;;  %v7861_v56 = vld [vmem:[#allocation8 + $0x784] ss:$16 sps:$4 sm:$0xff]  }
 0x2e8   :  { %4274 = vmatpush1.bf16.msra.mxu0 %v6789_v57  ;;  %v2310_v6 = vpop.f32.mrf.mxu1  ;;  %v7864_v57 = vld [vmem:[#allocation8 + $0x580] ss:$16 sps:$4 sm:$0xff]  }
 0x2e9   :  { %v2311_v8 = vadd.f32 %v2310_v6, %v721_v62  ;;  %v2351_v14 = vpop.f32.mrf.mxu0  ;;  %4275 = vmatprep.subr.bf16.mxu0 %v6797_v1  ;;  %v7867_v62 = vld [vmem:[#allocation8 + $0x564] ss:$16 sps:$4 sm:$0xff]   ;;  %v7876_v6 = vld [vmem:[#allocation8 + $0x560] ss:$16 sps:$4 sm:$0xff]  }
 0x2ea   :  { %v2352_v16 = vadd.f32 %v2351_v14, %v729_v3  ;;  %4235 = vmatpush1.bf16.msra.mxu1 %v6792_v2  ;;  %v2312_v59 = vpop.f32.mrf.mxu1  ;;  %v7870_v2 = vld [vmem:[#allocation8 + $0x780] ss:$16 sps:$4 sm:$0xff]  }
 0x2eb   :  { %v2456_v17 = vmul.f32 0.5, %v2311_v8  ;;  %v2313_v18 = vadd.f32 %v2312_v59, %v725_v4  ;;  %v2353_v19 = vpop.f32.mrf.mxu0  ;;  %4236 = vmatprep.subr.bf16.mxu1 %v6800_v5  ;;  %v7873_v4 = vld [vmem:[#allocation8 + $0x764] ss:$16 sps:$4 sm:$0xff]   ;;  %v7882_v14 = vld [vmem:[#allocation8 + $0x760] ss:$16 sps:$4 sm:$0xff]  }
 0x2ec   :  { %v2458_v20 = vmul.f32 0.5, %v2352_v16  ;;  %v2354_v23 = vadd.f32 %v2353_v19, %v733_v58  ;;  %4276 = vmatpush1.bf16.msra.mxu0 %v6795_v7  ;;  %v2314_v26 = vpop.f32.mrf.mxu1  ;;  %v7879_v58 = vld [vmem:[#allocation8 + $0x544] ss:$16 sps:$4 sm:$0xff]  }
 0x2ed   :  { %v2468_v27 = vmul.f32 1.442695, %v2456_v17  ;;  %v2429_v61 = vcombine.low %v2311_v8, %v2313_v18  ;;  %v2457_v25 = vmul.f32 0.5, %v2313_v18  ;;  %v2355_v28 = vpop.f32.mrf.mxu0  ;;  %4277 = vmatprep.subr.bf16.mxu0 %v6803_v15  ;;  %v7893_v18 = vld [vmem:[#allocation8 + $0x524] ss:$16 sps:$4 sm:$0xff]  }
 0x2ee   :  { %v2472_v31 = vmul.f32 1.442695, %v2458_v20  ;;  %v2430_v33 = vcombine.low %v2352_v16, %v2354_v23  ;;  %v2459_v13 = vmul.f32 0.5, %v2354_v23  ;;  %4237 = vmatpush1.bf16.msra.mxu1 %v6798_v24  ;;  %v2315_v63 = vpop.f32.mrf.mxu1  ;;  %v7885_v16 = vld [vmem:[#allocation8 + $0x744] ss:$16 sps:$4 sm:$0xff]  }
 0x2ef   :  { %7167 = vpow2.f32 %v2468_v27  ;;  %v2437_v43 = vrot.slane %v2429_v61, %v7736_v36  ;;  %v2470_v35 = vmul.f32 1.442695, %v2457_v25  ;;  %v2356_v37 = vpop.f32.mrf.mxu0  ;;  %4238 = vmatprep.subr.bf16.mxu1 %v6806_v60  ;;  %v7889_v24 = vld [vmem:[#allocation8 + $0x540] ss:$16 sps:$4 sm:$0xff]   ;;  %v7902_v23 = vld [vmem:[#allocation8 + $0x724] ss:$16 sps:$4 sm:$0xff]  }
 0x2f0   :  { %7169 = vpow2.f32 %v2472_v31  ;;  %v2444_v39 = vrot.slane %v2430_v33, %v7736_v36  ;;  %v2474_v40 = vmul.f32 1.442695, %v2459_v13  ;;  %4278 = vmatpush1.bf16.msra.mxu0 %v6801_v45  ;;  %v2451_v19 = vld [vmem:[%s9364_s1 + $0x8] sm:$0xff]  ;;  %v7922_v63 = vld [vmem:[#allocation8 + $0xec] ss:$16 sps:$4 sm:$0xff]   ;;  %s7539_s1 = smov [#allocation14]  }
 0x2f1   :  { %7171 = vpow2.f32 %v2470_v35  ;;  %4279 = vmatprep.subr.bf16.mxu0 %v6809_v30  ;;  %v7899_v60 = vld [vmem:[#allocation8 + $0x740] ss:$16 sps:$4 sm:$0xff]   ;;  %v7908_v27 = vld [vmem:[#allocation8 + $0x504] ss:$16 sps:$4 sm:$0xff]   ;;  %s5835_s23 = sshll.u32 %s7539_s1, 4  ;;  %s5836_s23 = int_to_ptr.vmem [resolvable:$true] %s5835_s23 }
 0x2f2   :  { %7173 = vpow2.f32 %v2474_v40  ;;  %4239 = vmatpush2.bf16.msra.mxu1 %v6804_v42  ;;  %v2445_v49 = vcombine.low %v2437_v43, %v2444_v39  ;;  %v7905_v26 = vld [vmem:[#allocation8 + $0x520] ss:$16 sps:$4 sm:$0xff]   ;;  %v7915_v30 = vld [vmem:[#allocation8 + $0x704] ss:$16 sps:$4 sm:$0xff]   ;;  %v7930_v39 = vld [vmem:[#allocation8 + $0x2ec] ss:$16 sps:$4 sm:$0xff]  }
 0x2f3   :  { %4240 = vmatprep.subr.bf16.mxu1 %v7833_v38  ;;  %v7911_v61 = vld [vmem:[#allocation8 + $0x720] ss:$16 sps:$4 sm:$0xff]  }
 0x2f4   :  { %4280 = vmatpush2.bf16.msra.mxu0 %v7836_v0  ;;  %2449 = vst [vmem:[#allocation15 + $0x8] sm:$0xff] %v2445_v49  ;;  %v7918_v31 = vld [vmem:[#allocation8 + $0x500] ss:$16 sps:$4 sm:$0xff]  }
 0x2f5   :  { %4281 = vmatprep.subr.bf16.mxu0 %v7838_v44  ;;  %v7926_v43 = vld [vmem:[#allocation8 + $0x700] ss:$16 sps:$4 sm:$0xff]  }
 0x2f6   :  { %4241 = vmatpush2.bf16.msra.mxu1 %v7840_v47 }
 0x2f7   :  { %4242 = vmatprep.subr.bf16.mxu1 %v7843_v50 }
 0x2f8   :  { %4282 = vmatpush2.bf16.msra.mxu0 %v7846_v51 }
 0x2f9   :  { %4283 = vmatprep.subr.bf16.mxu0 %v7849_v52 }
 0x2fa   :  { %4243 = vmatpush2.bf16.msra.mxu1 %v7852_v53 }
 0x2fb   :  { %4244 = vmatprep.subr.bf16.mxu1 %v7855_v54 }
 0x2fc   :  { %v7168_v1 = vpop.eup %7167  ;;  %4284 = vmatpush2.bf16.msra.mxu0 %v7858_v55 }
 0x2fd   :  { %v7170_v3 = vpop.eup %7169  ;;  %4285 = vmatprep.subr.bf16.mxu0 %v7861_v56 }
 0x2fe   :  { %v7172_v5 = vpop.eup %7171  ;;  %4245 = vmatpush2.bf16.msra.mxu1 %v7864_v57 }
 0x2ff   :  { %v7174_v7 = vpop.eup %7173  ;;  %4246 = vmatprep.subr.bf16.mxu1 %v7867_v62  ;;  %v2501_v8 = vcombine.low %v7168_v1, %v7172_v5  ;;  %v7936_v1 = vld [vmem:[#allocation8 + $0xe8] ss:$16 sps:$4 sm:$0xff]  }
 0x300   :  { %4286 = vmatpush2.bf16.msra.mxu0 %v7870_v2  ;;  %v2502_v15 = vcombine.low %v7170_v3, %v7174_v7  ;;  %v7946_v5 = vld [vmem:[#allocation8 + $0x2e8] ss:$16 sps:$4 sm:$0xff]  }
 0x301   :  { %4287 = vmatprep.subr.bf16.mxu0 %v7873_v4  ;;  %v2509_v59 = vrot.slane %v2501_v8, %v7736_v36  ;;  %v7958_v8 = vld [vmem:[#allocation8 + $0xc8] ss:$16 sps:$4 sm:$0xff]  }
 0x302   :  { %4247 = vmatpush2.bf16.msra.mxu1 %v7876_v6  ;;  %v2516_v17 = vrot.slane %v2502_v15, %v7736_v36  ;;  %v7962_v15 = vld [vmem:[#allocation8 + $0xac] ss:$16 sps:$4 sm:$0xff]  }
 0x303   :  { %4248 = vmatprep.subr.bf16.mxu1 %v7879_v58 }
 0x304   :  { %4288 = vmatpush2.bf16.msra.mxu0 %v7882_v14  ;;  %v2517_v20 = vcombine.low %v2509_v59, %v2516_v17  ;;  %v7966_v59 = vld [vmem:[#allocation8 + $0x2c8] ss:$16 sps:$4 sm:$0xff]   ;;  %v7970_v17 = vld [vmem:[#allocation8 + $0x2ac] ss:$16 sps:$4 sm:$0xff]  }
 0x305   :  { %4289 = vmatprep.subr.bf16.mxu0 %v7885_v16 }
 0x306   :  { %4249 = vmatpush2.bf16.msra.mxu1 %v7889_v24  ;;  %v2521_v45 = vmul.f32 %v2517_v20, %v2451_v19  ;;  %v7973_v19 = vld [vmem:[#allocation8 + $0xa8] ss:$16 sps:$4 sm:$0xff]  }
 0x307   :  { %4250 = vmatprep.subr.bf16.mxu1 %v7893_v18  ;;  %v7979_v20 = vld [vmem:[#allocation8 + $0x2a8] ss:$16 sps:$4 sm:$0xff]  }
 0x308   :  { %4290 = vmatpush2.bf16.msra.mxu0 %v7899_v60  ;;  %v2548_v25 = vrot.slane %v2521_v45, %v7736_v36  ;;  %v2541_v28 = vcombine.high %v2521_v45, %v2521_v45  ;;  %9366 = vst [vmem:[#allocation31_spill] sm:$0xff] %v7979_v20  ;;  %v7982_v45 = vld [vmem:[#allocation8 + $0x28c] ss:$16 sps:$4 sm:$0xff]  }
 0x309   :  { %4291 = vmatprep.subr.bf16.mxu0 %v7902_v23  ;;  %9367 = vst [vmem:[#allocation32_spill] sm:$0xff] %v7982_v45 }
 0x30a   :  { %4251 = vmatpush2.bf16.msra.mxu1 %v7905_v26  ;;  %v2556_v33 = vcombine.high %v2548_v25, %v2548_v25  ;;  %v2555_v13 = vrot.slane %v2541_v28, %v7736_v36  ;;  %v2570_v42 = vadd.f32 %v2548_v25, %v7768_v9  ;;  %v7988_v25 = vld [vmem:[#allocation8 + $0x6c] ss:$16 sps:$4 sm:$0xff]   ;;  %v7991_v28 = vld [vmem:[#allocation8 + $0x288] ss:$16 sps:$4 sm:$0xff]  }
 0x30b   :  { %4252 = vmatprep.subr.bf16.mxu1 %v7908_v27  ;;  %9369 = vst [vmem:[#allocation34_spill] sm:$0xff] %v7988_v25  ;;  %9370 = vst [vmem:[#allocation35_spill] sm:$0xff] %v7991_v28 }
 0x30c   :  { %4292 = vmatpush2.bf16.msra.mxu0 %v7911_v61  ;;  %v2571_v35 = vadd.f32 %v2556_v33, %v7772_v11  ;;  %v2557_v37 = vcombine.high %v2555_v13, %v2555_v13  ;;  %v2572_v40 = vadd.f32 %v2555_v13, %v7770_v10  ;;  %v7940_v3 = vpack.c.bf16 %v2570_v42, %v2570_v42  ;;  %v7948_v10 = vld [vmem:[#allocation8 + $0xcc] ss:$16 sps:$4 sm:$0xff]   ;;  %v7997_v13 = vld [vmem:[#allocation8 + $0x68] ss:$16 sps:$4 sm:$0xff]  }
 0x30d   :  { %4293 = vmatprep.subr.bf16.mxu0 %v7915_v30  ;;  %v7994_v33 = vld [vmem:[#allocation8 + $0x26c] ss:$16 sps:$4 sm:$0xff]   ;;  %9372 = vst [vmem:[#allocation37_spill] sm:$0xff] %v7997_v13 }
 0x30e   :  { %4253 = vmatpush2.bf16.msra.mxu1 %v7918_v31  ;;  %v7934_v49 = vpack.c.bf16 %v2571_v35, %v2571_v35  ;;  %v2573_v9 = vadd.f32 %v2557_v37, %v7774_v12  ;;  %v7952_v7 = vpack.c.bf16 %v2572_v40, %v2572_v40  ;;  %v7954_v12 = vld [vmem:[#allocation8 + $0x2cc] ss:$16 sps:$4 sm:$0xff]   ;;  %9371 = vst [vmem:[#allocation36_spill] sm:$0xff] %v7994_v33  ;;  %v8003_v35 = vld [vmem:[#allocation8 + $0x268] ss:$16 sps:$4 sm:$0xff]  }
 0x30f   :  { %4304 = vmatprep.subr.bf16.mxu1 %v7922_v63  ;;  %v8000_v42 = vld [vmem:[#allocation8 + $0x4c] ss:$16 sps:$4 sm:$0xff]   ;;  %9374 = vst [vmem:[#allocation39_spill] sm:$0xff] %v8003_v35  ;;  %v8009_v40 = vld [vmem:[#allocation8 + $0x48] ss:$16 sps:$4 sm:$0xff]  }
 0x310   :  { %4294 = vmatpush2.bf16.msra.mxu0 %v7926_v43  ;;  %4254 = vmatprep.mubr.bf16.mxu1 %v7934_v49  ;;  %v7944_v11 = vpack.c.bf16 %v2573_v9, %v2573_v9  ;;  %9373 = vst [vmem:[#allocation38_spill] sm:$0xff] %v8000_v42  ;;  %v8006_v37 = vld [vmem:[#allocation8 + $0x24c] ss:$16 sps:$4 sm:$0xff]   ;;  %9376 = vst [vmem:[#allocation41_spill] sm:$0xff] %v8009_v40 }
 0x311   :  { %4255 = vmatmul.mubr.bf16.vlgmr.msra.gmra.mxu1 %v7940_v3  ;;  %4345 = vmatprep.subr.bf16.mxu0 %v7930_v39  ;;  %9375 = vst [vmem:[#allocation40_spill] sm:$0xff] %v8006_v37  ;;  %v8012_v9 = vld [vmem:[#allocation8 + $0x2c] ss:$16 sps:$4 sm:$0xff]  }
 0x312   :  { %4305 = vmatpush1.bf16.msra.mxu1 %v7936_v1  ;;  %4295 = vmatprep.mubr.bf16.mxu0 %v7944_v11  ;;  %9377 = vst [vmem:[#allocation42_spill] sm:$0xff] %v8012_v9 }
 0x313   :  { %4336 = vmatprep.mubr.bf16.mxu1 %v7807_v29  ;;  %4296 = vmatmul.mubr.bf16.vlgmr.msra.gmra.mxu0 %v7952_v7  ;;  %v7976_v29 = vld [vmem:[#allocation8 + $0x8c] ss:$16 sps:$4 sm:$0xff]  }
 0x314   :  { %4346 = vmatpush1.bf16.msra.mxu0 %v7946_v5  ;;  %4306 = vmatprep.subr.bf16.mxu1 %v7948_v10  ;;  %9365 = vst [vmem:[#allocation30_spill] sm:$0xff] %v7976_v29 }
 0x315   :  { %4377 = vmatprep.mubr.bf16.mxu0 %v7813_v34  ;;  %4347 = vmatprep.subr.bf16.mxu0 %v7954_v12  ;;  %v7985_v34 = vld [vmem:[#allocation8 + $0x88] ss:$16 sps:$4 sm:$0xff]  }
 0x316   :  { %4307 = vmatpush1.bf16.msra.mxu1 %v7958_v8  ;;  %9368 = vst [vmem:[#allocation33_spill] sm:$0xff] %v7985_v34 }
 0x317   :  { %4308 = vmatprep.subr.bf16.mxu1 %v7962_v15 }
 0x318   :  { %4348 = vmatpush1.bf16.msra.mxu0 %v7966_v59 }
 0x319   :  { %4349 = vmatprep.subr.bf16.mxu0 %v7970_v17 }
 0x31a   :  { %4309 = vmatpush1.bf16.msra.mxu1 %v7973_v19 }
 0x31b   :  { %4310 = vmatprep.subr.bf16.mxu1 %v7976_v29  ;;  %v7198_v29 = vld [vmem:[#allocation8 + $0xa4] ss:$16 sps:$4 sm:$0xff]  }
 0x31c   :  { %4350 = vmatpush1.bf16.msra.mxu0 %v7979_v20 }
 0x31d   :  { %4351 = vmatprep.subr.bf16.mxu0 %v7982_v45  ;;  %v7197_v45 = vld [vmem:[#allocation8 + $0xc0] ss:$16 sps:$4 sm:$0xff]  }
 0x31e   :  { %4311 = vmatpush1.bf16.msra.mxu1 %v7985_v34  ;;  %v7193_v34 = vld [vmem:[#allocation8 + $0xe0] ss:$16 sps:$4 sm:$0xff]  }
 0x31f   :  { %4312 = vmatprep.subr.bf16.mxu1 %v7988_v25  ;;  %v8015_v25 = vld [vmem:[#allocation8 + $0x248] ss:$16 sps:$4 sm:$0xff]  }
 0x320   :  { %4352 = vmatpush1.bf16.msra.mxu0 %v7991_v28  ;;  %9378 = vst [vmem:[#allocation43_spill] sm:$0xff] %v8015_v25  ;;  %v8018_v28 = vld [vmem:[#allocation8 + $0x22c] ss:$16 sps:$4 sm:$0xff]  }
 0x321   :  { %4353 = vmatprep.subr.bf16.mxu0 %v7994_v33  ;;  %9379 = vst [vmem:[#allocation44_spill] sm:$0xff] %v8018_v28  ;;  %v8021_v33 = vld [vmem:[#allocation8 + $0x28] ss:$16 sps:$4 sm:$0xff]  }
 0x322   :  { %4313 = vmatpush1.bf16.msra.mxu1 %v7997_v13  ;;  %9380 = vst [vmem:[#allocation45_spill] sm:$0xff] %v8021_v33  ;;  %v8024_v13 = vld [vmem:[#allocation8 + $0xc] ss:$16 sps:$4 sm:$0xff]  }
 0x323   :  { %4314 = vmatprep.subr.bf16.mxu1 %v8000_v42  ;;  %9381 = vst [vmem:[#allocation46_spill] sm:$0xff] %v8024_v13  ;;  %v8027_v42 = vld [vmem:[#allocation8 + $0x228] ss:$16 sps:$4 sm:$0xff]  }
 0x324   :  { %4354 = vmatpush1.bf16.msra.mxu0 %v8003_v35  ;;  %9382 = vst [vmem:[#allocation47_spill] sm:$0xff] %v8027_v42  ;;  %v8030_v35 = vld [vmem:[#allocation8 + $0x20c] ss:$16 sps:$4 sm:$0xff]  }
 0x325   :  { %4355 = vmatprep.subr.bf16.mxu0 %v8006_v37  ;;  %9383 = vst [vmem:[#allocation48_spill] sm:$0xff] %v8030_v35  ;;  %v8033_v37 = vld [vmem:[#allocation8 + $0x8] ss:$16 sps:$4 sm:$0xff]  }
 0x326   :  { %4315 = vmatpush1.bf16.msra.mxu1 %v8009_v40  ;;  %9384 = vst [vmem:[#allocation49_spill] sm:$0xff] %v8033_v37  ;;  %v8036_v40 = vld [vmem:[#allocation8 + $0x1ec] ss:$16 sps:$4 sm:$0xff]  }
 0x327   :  { %4316 = vmatprep.subr.bf16.mxu1 %v8012_v9  ;;  %9385 = vst [vmem:[#allocation50_spill] sm:$0xff] %v8036_v40  ;;  %v8039_v9 = vld [vmem:[#allocation8 + $0x208] ss:$16 sps:$4 sm:$0xff]  }
 0x328   :  { %4356 = vmatpush1.bf16.msra.mxu0 %v8015_v25  ;;  %9386 = vst [vmem:[#allocation51_spill] sm:$0xff] %v8039_v9  ;;  %v8042_v25 = vld [vmem:[#allocation8 + $0x3ec] ss:$16 sps:$4 sm:$0xff]  }
 0x329   :  { %4357 = vmatprep.subr.bf16.mxu0 %v8018_v28  ;;  %9387 = vst [vmem:[#allocation52_spill] sm:$0xff] %v8042_v25  ;;  %v8045_v28 = vld [vmem:[#allocation8 + $0x1e8] ss:$16 sps:$4 sm:$0xff]  }
 0x32a   :  { %4317 = vmatpush1.bf16.msra.mxu1 %v8021_v33  ;;  %9388 = vst [vmem:[#allocation53_spill] sm:$0xff] %v8045_v28  ;;  %v8048_v33 = vld [vmem:[#allocation8 + $0x1cc] ss:$16 sps:$4 sm:$0xff]  }
 0x32b   :  { %4318 = vmatprep.subr.bf16.mxu1 %v8024_v13  ;;  %9389 = vst [vmem:[#allocation54_spill] sm:$0xff] %v8048_v33  ;;  %v8051_v13 = vld [vmem:[#allocation8 + $0x3e8] ss:$16 sps:$4 sm:$0xff]  }
 0x32c   :  { %4358 = vmatpush1.bf16.msra.mxu0 %v8027_v42  ;;  %9390 = vst [vmem:[#allocation55_spill] sm:$0xff] %v8051_v13  ;;  %v8054_v42 = vld [vmem:[#allocation8 + $0x3cc] ss:$16 sps:$4 sm:$0xff]  }
 0x32d   :  { %4359 = vmatprep.subr.bf16.mxu0 %v8030_v35  ;;  %9391 = vst [vmem:[#allocation56_spill] sm:$0xff] %v8054_v42  ;;  %v8057_v35 = vld [vmem:[#allocation8 + $0x1c8] ss:$16 sps:$4 sm:$0xff]  }
 0x32e   :  { %4319 = vmatpush1.bf16.msra.mxu1 %v8033_v37  ;;  %9392 = vst [vmem:[#allocation57_spill] sm:$0xff] %v8057_v35  ;;  %v8060_v37 = vld [vmem:[#allocation8 + $0x1ac] ss:$16 sps:$4 sm:$0xff]  }
 0x32f   :  { %4320 = vmatprep.subr.bf16.mxu1 %v8036_v40  ;;  %9393 = vst [vmem:[#allocation58_spill] sm:$0xff] %v8060_v37  ;;  %v8063_v40 = vld [vmem:[#allocation8 + $0x3c8] ss:$16 sps:$4 sm:$0xff]  }
 0x330   :  { %4360 = vmatpush1.bf16.msra.mxu0 %v8039_v9  ;;  %9394 = vst [vmem:[#allocation59_spill] sm:$0xff] %v8063_v40  ;;  %v8066_v9 = vld [vmem:[#allocation8 + $0x3ac] ss:$16 sps:$4 sm:$0xff]  }
 0x331   :  { %4361 = vmatprep.subr.bf16.mxu0 %v8042_v25  ;;  %9395 = vst [vmem:[#allocation60_spill] sm:$0xff] %v8066_v9  ;;  %v8069_v25 = vld [vmem:[#allocation8 + $0x1a8] ss:$16 sps:$4 sm:$0xff]  }
 0x332   :  { %4321 = vmatpush2.bf16.msra.mxu1 %v8045_v28  ;;  %9396 = vst [vmem:[#allocation61_spill] sm:$0xff] %v8069_v25  ;;  %v8072_v28 = vld [vmem:[#allocation8 + $0x18c] ss:$16 sps:$4 sm:$0xff]  }
 0x333   :  { %4322 = vmatprep.subr.bf16.mxu1 %v8048_v33  ;;  %9397 = vst [vmem:[#allocation62_spill] sm:$0xff] %v8072_v28  ;;  %v8075_v33 = vld [vmem:[#allocation8 + $0x3a8] ss:$16 sps:$4 sm:$0xff]  }
 0x334   :  { %4362 = vmatpush2.bf16.msra.mxu0 %v8051_v13  ;;  %9398 = vst [vmem:[#allocation63_spill] sm:$0xff] %v8075_v33  ;;  %v8078_v13 = vld [vmem:[#allocation8 + $0x38c] ss:$16 sps:$4 sm:$0xff]  }
 0x335   :  { %4363 = vmatprep.subr.bf16.mxu0 %v8054_v42  ;;  %9399 = vst [vmem:[#allocation64_spill] sm:$0xff] %v8078_v13  ;;  %v8081_v42 = vld [vmem:[#allocation8 + $0x188] ss:$16 sps:$4 sm:$0xff]  }
 0x336   :  { %4323 = vmatpush2.bf16.msra.mxu1 %v8057_v35  ;;  %9400 = vst [vmem:[#allocation65_spill] sm:$0xff] %v8081_v42  ;;  %v8084_v35 = vld [vmem:[#allocation8 + $0x16c] ss:$16 sps:$4 sm:$0xff]  }
 0x337   :  { %4324 = vmatprep.subr.bf16.mxu1 %v8060_v37  ;;  %9401 = vst [vmem:[#allocation66_spill] sm:$0xff] %v8084_v35  ;;  %v8087_v37 = vld [vmem:[#allocation8 + $0x388] ss:$16 sps:$4 sm:$0xff]  }
 0x338   :  { %4364 = vmatpush2.bf16.msra.mxu0 %v8063_v40  ;;  %9402 = vst [vmem:[#allocation67_spill] sm:$0xff] %v8087_v37  ;;  %v8090_v40 = vld [vmem:[#allocation8 + $0x36c] ss:$16 sps:$4 sm:$0xff]  }
 0x339   :  { %4365 = vmatprep.subr.bf16.mxu0 %v8066_v9  ;;  %9403 = vst [vmem:[#allocation68_spill] sm:$0xff] %v8090_v40  ;;  %v8093_v9 = vld [vmem:[#allocation8 + $0x168] ss:$16 sps:$4 sm:$0xff]  }
 0x33a   :  { %4325 = vmatpush2.bf16.msra.mxu1 %v8069_v25  ;;  %9404 = vst [vmem:[#allocation69_spill] sm:$0xff] %v8093_v9  ;;  %v8096_v25 = vld [vmem:[#allocation8 + $0x14c] ss:$16 sps:$4 sm:$0xff]  }
 0x33b   :  { %4326 = vmatprep.subr.bf16.mxu1 %v8072_v28  ;;  %9405 = vst [vmem:[#allocation70_spill] sm:$0xff] %v8096_v25  ;;  %v8099_v28 = vld [vmem:[#allocation8 + $0x368] ss:$16 sps:$4 sm:$0xff]  }
 0x33c   :  { %4366 = vmatpush2.bf16.msra.mxu0 %v8075_v33  ;;  %9406 = vst [vmem:[#allocation71_spill] sm:$0xff] %v8099_v28  ;;  %v8102_v33 = vld [vmem:[#allocation8 + $0x34c] ss:$16 sps:$4 sm:$0xff]  }
 0x33d   :  { %4367 = vmatprep.subr.bf16.mxu0 %v8078_v13  ;;  %9407 = vst [vmem:[#allocation72_spill] sm:$0xff] %v8102_v33  ;;  %v8105_v13 = vld [vmem:[#allocation8 + $0x148] ss:$16 sps:$4 sm:$0xff]  }
 0x33e   :  { %4327 = vmatpush2.bf16.msra.mxu1 %v8081_v42  ;;  %9408 = vst [vmem:[#allocation73_spill] sm:$0xff] %v8105_v13  ;;  %v8108_v42 = vld [vmem:[#allocation8 + $0x12c] ss:$16 sps:$4 sm:$0xff]  }
 0x33f   :  { %4328 = vmatprep.subr.bf16.mxu1 %v8084_v35  ;;  %9409 = vst [vmem:[#allocation74_spill] sm:$0xff] %v8108_v42  ;;  %v8111_v35 = vld [vmem:[#allocation8 + $0x348] ss:$16 sps:$4 sm:$0xff]  }
 0x340   :  { %4368 = vmatpush2.bf16.msra.mxu0 %v8087_v37  ;;  %9410 = vst [vmem:[#allocation75_spill] sm:$0xff] %v8111_v35  ;;  %v8114_v37 = vld [vmem:[#allocation8 + $0x32c] ss:$16 sps:$4 sm:$0xff]  }
 0x341   :  { %4369 = vmatprep.subr.bf16.mxu0 %v8090_v40  ;;  %9411 = vst [vmem:[#allocation76_spill] sm:$0xff] %v8114_v37  ;;  %v8117_v40 = vld [vmem:[#allocation8 + $0x128] ss:$16 sps:$4 sm:$0xff]  }
 0x342   :  { %4329 = vmatpush2.bf16.msra.mxu1 %v8093_v9  ;;  %9412 = vst [vmem:[#allocation77_spill] sm:$0xff] %v8117_v40  ;;  %v8120_v9 = vld [vmem:[#allocation8 + $0x10c] ss:$16 sps:$4 sm:$0xff]  }
 0x343   :  { %4330 = vmatprep.subr.bf16.mxu1 %v8096_v25  ;;  %9413 = vst [vmem:[#allocation78_spill] sm:$0xff] %v8120_v9  ;;  %v8123_v25 = vld [vmem:[#allocation8 + $0x328] ss:$16 sps:$4 sm:$0xff]  }
 0x344   :  { %4370 = vmatpush2.bf16.msra.mxu0 %v8099_v28  ;;  %9414 = vst [vmem:[#allocation79_spill] sm:$0xff] %v8123_v25  ;;  %v8126_v28 = vld [vmem:[#allocation8 + $0x30c] ss:$16 sps:$4 sm:$0xff]  }
 0x345   :  { %4371 = vmatprep.subr.bf16.mxu0 %v8102_v33  ;;  %9415 = vst [vmem:[#allocation80_spill] sm:$0xff] %v8126_v28  ;;  %v8129_v33 = vld [vmem:[#allocation8 + $0x108] ss:$16 sps:$4 sm:$0xff]  }
 0x346   :  { %4331 = vmatpush2.bf16.msra.mxu1 %v8105_v13  ;;  %9416 = vst [vmem:[#allocation81_spill] sm:$0xff] %v8129_v33  ;;  %v8132_v13 = vld [vmem:[#allocation8 + $0x4ec] ss:$16 sps:$4 sm:$0xff]  }
 0x347   :  { %4332 = vmatprep.subr.bf16.mxu1 %v8108_v42  ;;  %9417 = vst [vmem:[#allocation82_spill] sm:$0xff] %v8132_v13  ;;  %v8135_v42 = vld [vmem:[#allocation8 + $0x308] ss:$16 sps:$4 sm:$0xff]  }
 0x348   :  { %4372 = vmatpush2.bf16.msra.mxu0 %v8111_v35  ;;  %9418 = vst [vmem:[#allocation83_spill] sm:$0xff] %v8135_v42  ;;  %v8138_v35 = vld [vmem:[#allocation8 + $0x6ec] ss:$16 sps:$4 sm:$0xff]  }
 0x349   :  { %4373 = vmatprep.subr.bf16.mxu0 %v8114_v37  ;;  %9419 = vst [vmem:[#allocation84_spill] sm:$0xff] %v8138_v35  ;;  %v8141_v37 = vld [vmem:[#allocation8 + $0x4e8] ss:$16 sps:$4 sm:$0xff]  }
 0x34a   :  { %4333 = vmatpush2.bf16.msra.mxu1 %v8117_v40  ;;  %9420 = vst [vmem:[#allocation85_spill] sm:$0xff] %v8141_v37  ;;  %v8144_v40 = vld [vmem:[#allocation8 + $0x4cc] ss:$16 sps:$4 sm:$0xff]  }
 0x34b   :  { %4334 = vmatprep.subr.bf16.mxu1 %v8120_v9  ;;  %9421 = vst [vmem:[#allocation86_spill] sm:$0xff] %v8144_v40  ;;  %v8147_v9 = vld [vmem:[#allocation8 + $0x6e8] ss:$16 sps:$4 sm:$0xff]  }
 0x34c   :  { %4374 = vmatpush2.bf16.msra.mxu0 %v8123_v25  ;;  %9422 = vst [vmem:[#allocation87_spill] sm:$0xff] %v8147_v9  ;;  %v8151_v25 = vld [vmem:[#allocation8 + $0x6cc] ss:$16 sps:$4 sm:$0xff]  }
 0x34d   :  { %4375 = vmatprep.subr.bf16.mxu0 %v8126_v28  ;;  %9423 = vst [vmem:[#allocation88_spill] sm:$0xff] %v8151_v25 }
 0x34e   :  { %4335 = vmatpush2.bf16.msra.mxu1 %v8129_v33  ;;  %v8155_v33 = vld [vmem:[#allocation8 + $0x4c8] ss:$16 sps:$4 sm:$0xff]  }
 0x34f   :  { %4386 = vmatprep.subr.bf16.mxu1 %v8132_v13  ;;  %9424 = vst [vmem:[#allocation89_spill] sm:$0xff] %v8155_v33  ;;  %v8159_v13 = vld [vmem:[#allocation8 + $0x4ac] ss:$16 sps:$4 sm:$0xff]  }
 0x350   :  { %4376 = vmatpush2.bf16.msra.mxu0 %v8135_v42  ;;  %9425 = vst [vmem:[#allocation90_spill] sm:$0xff] %v8159_v13 }
 0x351   :  { %4337 = vmatmul.mubr.bf16.vlgmr.msra.gmra.mxu1 %v7810_v32  ;;  %4427 = vmatprep.subr.bf16.mxu0 %v8138_v35  ;;  %v8163_v32 = vld [vmem:[#allocation8 + $0x6c8] ss:$16 sps:$4 sm:$0xff]   ;;  %v8166_v35 = vld [vmem:[#allocation8 + $0x6ac] ss:$16 sps:$4 sm:$0xff]  }
 0x352   :  { %4387 = vmatpush1.bf16.msra.mxu1 %v8141_v37  ;;  %4418 = vmatprep.mubr.bf16.mxu1 %v7934_v49  ;;  %9426 = vst [vmem:[#allocation91_spill] sm:$0xff] %v8163_v32  ;;  %9427 = vst [vmem:[#allocation92_spill] sm:$0xff] %v8166_v35  ;;  %v8169_v49 = vld [vmem:[#allocation8 + $0x4a8] ss:$16 sps:$4 sm:$0xff]  }
 0x353   :  { %4378 = vmatmul.mubr.bf16.vlgmr.msra.gmra.mxu0 %v7816_v41  ;;  %4388 = vmatprep.subr.bf16.mxu1 %v8144_v40  ;;  %9428 = vst [vmem:[#allocation93_spill] sm:$0xff] %v8169_v49  ;;  %v8172_v41 = vld [vmem:[#allocation8 + $0x48c] ss:$16 sps:$4 sm:$0xff]   ;;  %v8175_v40 = vld [vmem:[#allocation8 + $0x6a8] ss:$16 sps:$4 sm:$0xff]  }
 0x354   :  { %4428 = vmatpush1.bf16.msra.mxu0 %v8147_v9  ;;  %4459 = vmatprep.mubr.bf16.mxu0 %v7944_v11  ;;  %9429 = vst [vmem:[#allocation94_spill] sm:$0xff] %v8172_v41  ;;  %9430 = vst [vmem:[#allocation95_spill] sm:$0xff] %v8175_v40  ;;  %v8178_v11 = vld [vmem:[#allocation8 + $0x68c] ss:$16 sps:$4 sm:$0xff]   ;;  %v8316_v37 = vld [vmem:[#allocation8 + $0x528] ss:$16 sps:$4 sm:$0xff]  }
 0x355   :  { %4429 = vmatprep.subr.bf16.mxu0 %v8151_v25  ;;  %9431 = vst [vmem:[#allocation96_spill] sm:$0xff] %v8178_v11  ;;  %v8181_v25 = vld [vmem:[#allocation8 + $0x488] ss:$16 sps:$4 sm:$0xff]   ;;  %9477 = vst [vmem:[#allocation141_spill] sm:$0xff] %v8316_v37 }
 0x356   :  { %4389 = vmatpush1.bf16.msra.mxu1 %v8155_v33  ;;  %9432 = vst [vmem:[#allocation97_spill] sm:$0xff] %v8181_v25  ;;  %v8184_v33 = vld [vmem:[#allocation8 + $0x46c] ss:$16 sps:$4 sm:$0xff]  }
 0x357   :  { %4390 = vmatprep.subr.bf16.mxu1 %v8159_v13  ;;  %9433 = vst [vmem:[#allocation98_spill] sm:$0xff] %v8184_v33  ;;  %v8187_v13 = vld [vmem:[#allocation8 + $0x688] ss:$16 sps:$4 sm:$0xff]  }
 0x358   :  { %4430 = vmatpush1.bf16.msra.mxu0 %v8163_v32  ;;  %9434 = vst [vmem:[#allocation99_spill] sm:$0xff] %v8187_v13  ;;  %v8190_v32 = vld [vmem:[#allocation8 + $0x66c] ss:$16 sps:$4 sm:$0xff]  }
 0x359   :  { %4431 = vmatprep.subr.bf16.mxu0 %v8166_v35  ;;  %9435 = vst [vmem:[#allocation100_spill] sm:$0xff] %v8190_v32  ;;  %v8193_v35 = vld [vmem:[#allocation8 + $0x468] ss:$16 sps:$4 sm:$0xff]  }
 0x35a   :  { %4391 = vmatpush1.bf16.msra.mxu1 %v8169_v49  ;;  %9436 = vst [vmem:[#allocation101_spill] sm:$0xff] %v8193_v35  ;;  %v8196_v49 = vld [vmem:[#allocation8 + $0x44c] ss:$16 sps:$4 sm:$0xff]  }
 0x35b   :  { %4392 = vmatprep.subr.bf16.mxu1 %v8172_v41  ;;  %9437 = vst [vmem:[#allocation102_spill] sm:$0xff] %v8196_v49  ;;  %v8199_v41 = vld [vmem:[#allocation8 + $0x668] ss:$16 sps:$4 sm:$0xff]  }
 0x35c   :  { %4432 = vmatpush1.bf16.msra.mxu0 %v8175_v40  ;;  %9438 = vst [vmem:[#allocation103_spill] sm:$0xff] %v8199_v41  ;;  %v8202_v40 = vld [vmem:[#allocation8 + $0x64c] ss:$16 sps:$4 sm:$0xff]  }
 0x35d   :  { %4433 = vmatprep.subr.bf16.mxu0 %v8178_v11  ;;  %9439 = vst [vmem:[#allocation104_spill] sm:$0xff] %v8202_v40  ;;  %v8205_v11 = vld [vmem:[#allocation8 + $0x448] ss:$16 sps:$4 sm:$0xff]  }
 0x35e   :  { %4393 = vmatpush1.bf16.msra.mxu1 %v8181_v25  ;;  %9440 = vst [vmem:[#allocation105_spill] sm:$0xff] %v8205_v11  ;;  %v8208_v25 = vld [vmem:[#allocation8 + $0x42c] ss:$16 sps:$4 sm:$0xff]  }
 0x35f   :  { %4394 = vmatprep.subr.bf16.mxu1 %v8184_v33  ;;  %9441 = vst [vmem:[#allocation106_spill] sm:$0xff] %v8208_v25  ;;  %v8211_v33 = vld [vmem:[#allocation8 + $0x648] ss:$16 sps:$4 sm:$0xff]  }
 0x360   :  { %4434 = vmatpush1.bf16.msra.mxu0 %v8187_v13  ;;  %9442 = vst [vmem:[#allocation107_spill] sm:$0xff] %v8211_v33  ;;  %v8214_v13 = vld [vmem:[#allocation8 + $0x62c] ss:$16 sps:$4 sm:$0xff]  }
 0x361   :  { %4435 = vmatprep.subr.bf16.mxu0 %v8190_v32  ;;  %9443 = vst [vmem:[#allocation108_spill] sm:$0xff] %v8214_v13  ;;  %v8217_v32 = vld [vmem:[#allocation8 + $0x428] ss:$16 sps:$4 sm:$0xff]  }
 0x362   :  { %4395 = vmatpush1.bf16.msra.mxu1 %v8193_v35  ;;  %9444 = vst [vmem:[#allocation109_spill] sm:$0xff] %v8217_v32  ;;  %v8220_v35 = vld [vmem:[#allocation8 + $0x40c] ss:$16 sps:$4 sm:$0xff]  }
 0x363   :  { %4396 = vmatprep.subr.bf16.mxu1 %v8196_v49  ;;  %9445 = vst [vmem:[#allocation110_spill] sm:$0xff] %v8220_v35  ;;  %v8223_v49 = vld [vmem:[#allocation8 + $0x628] ss:$16 sps:$4 sm:$0xff]  }
 0x364   :  { %4436 = vmatpush1.bf16.msra.mxu0 %v8199_v41  ;;  %9446 = vst [vmem:[#allocation111_spill] sm:$0xff] %v8223_v49  ;;  %v8226_v41 = vld [vmem:[#allocation8 + $0x60c] ss:$16 sps:$4 sm:$0xff]  }
 0x365   :  { %4437 = vmatprep.subr.bf16.mxu0 %v8202_v40  ;;  %9447 = vst [vmem:[#allocation112_spill] sm:$0xff] %v8226_v41  ;;  %v8229_v40 = vld [vmem:[#allocation8 + $0x408] ss:$16 sps:$4 sm:$0xff]  }
 0x366   :  { %4397 = vmatpush1.bf16.msra.mxu1 %v8205_v11  ;;  %9448 = vst [vmem:[#allocation113_spill] sm:$0xff] %v8229_v40  ;;  %v8232_v11 = vld [vmem:[#allocation8 + $0x5ec] ss:$16 sps:$4 sm:$0xff]  }
 0x367   :  { %4398 = vmatprep.subr.bf16.mxu1 %v8208_v25  ;;  %9449 = vst [vmem:[#allocation114_spill] sm:$0xff] %v8232_v11  ;;  %v8235_v25 = vld [vmem:[#allocation8 + $0x608] ss:$16 sps:$4 sm:$0xff]  }
 0x368   :  { %4438 = vmatpush1.bf16.msra.mxu0 %v8211_v33  ;;  %9450 = vst [vmem:[#allocation115_spill] sm:$0xff] %v8235_v25  ;;  %v8238_v33 = vld [vmem:[#allocation8 + $0x7ec] ss:$16 sps:$4 sm:$0xff]  }
 0x369   :  { %4439 = vmatprep.subr.bf16.mxu0 %v8214_v13  ;;  %9451 = vst [vmem:[#allocation116_spill] sm:$0xff] %v8238_v33  ;;  %v8241_v13 = vld [vmem:[#allocation8 + $0x5e8] ss:$16 sps:$4 sm:$0xff]  }
 0x36a   :  { %4399 = vmatpush1.bf16.msra.mxu1 %v8217_v32  ;;  %9452 = vst [vmem:[#allocation117_spill] sm:$0xff] %v8241_v13  ;;  %v8244_v32 = vld [vmem:[#allocation8 + $0x5cc] ss:$16 sps:$4 sm:$0xff]  }
 0x36b   :  { %4400 = vmatprep.subr.bf16.mxu1 %v8220_v35  ;;  %9453 = vst [vmem:[#allocation118_spill] sm:$0xff] %v8244_v32  ;;  %v8247_v35 = vld [vmem:[#allocation8 + $0x7e8] ss:$16 sps:$4 sm:$0xff]  }
 0x36c   :  { %4440 = vmatpush1.bf16.msra.mxu0 %v8223_v49  ;;  %9454 = vst [vmem:[#allocation119_spill] sm:$0xff] %v8247_v35  ;;  %v8250_v49 = vld [vmem:[#allocation8 + $0x7cc] ss:$16 sps:$4 sm:$0xff]  }
 0x36d   :  { %4441 = vmatprep.subr.bf16.mxu0 %v8226_v41  ;;  %9455 = vst [vmem:[#allocation120_spill] sm:$0xff] %v8250_v49  ;;  %v8253_v41 = vld [vmem:[#allocation8 + $0x5c8] ss:$16 sps:$4 sm:$0xff]  }
 0x36e   :  { %4401 = vmatpush1.bf16.msra.mxu1 %v8229_v40  ;;  %9456 = vst [vmem:[#allocation121_spill] sm:$0xff] %v8253_v41  ;;  %v8256_v40 = vld [vmem:[#allocation8 + $0x5ac] ss:$16 sps:$4 sm:$0xff]  }
 0x36f   :  { %4402 = vmatprep.subr.bf16.mxu1 %v8232_v11  ;;  %9457 = vst [vmem:[#allocation122_spill] sm:$0xff] %v8256_v40  ;;  %v8259_v11 = vld [vmem:[#allocation8 + $0x7c8] ss:$16 sps:$4 sm:$0xff]  }
 0x370   :  { %4442 = vmatpush1.bf16.msra.mxu0 %v8235_v25  ;;  %9458 = vst [vmem:[#allocation123_spill] sm:$0xff] %v8259_v11  ;;  %v8262_v25 = vld [vmem:[#allocation8 + $0x7ac] ss:$16 sps:$4 sm:$0xff]  }
 0x371   :  { %4443 = vmatprep.subr.bf16.mxu0 %v8238_v33  ;;  %9459 = vst [vmem:[#allocation124_spill] sm:$0xff] %v8262_v25  ;;  %v8265_v33 = vld [vmem:[#allocation8 + $0x5a8] ss:$16 sps:$4 sm:$0xff]  }
 0x372   :  { %4403 = vmatpush2.bf16.msra.mxu1 %v8241_v13  ;;  %9460 = vst [vmem:[#allocation125_spill] sm:$0xff] %v8265_v33  ;;  %v8268_v13 = vld [vmem:[#allocation8 + $0x58c] ss:$16 sps:$4 sm:$0xff]  }
 0x373   :  { %4404 = vmatprep.subr.bf16.mxu1 %v8244_v32  ;;  %9461 = vst [vmem:[#allocation126_spill] sm:$0xff] %v8268_v13  ;;  %v8271_v32 = vld [vmem:[#allocation8 + $0x7a8] ss:$16 sps:$4 sm:$0xff]  }
 0x374   :  { %4444 = vmatpush2.bf16.msra.mxu0 %v8247_v35  ;;  %9462 = vst [vmem:[#allocation127_spill] sm:$0xff] %v8271_v32  ;;  %v8274_v35 = vld [vmem:[#allocation8 + $0x78c] ss:$16 sps:$4 sm:$0xff]  }
 0x375   :  { %4445 = vmatprep.subr.bf16.mxu0 %v8250_v49  ;;  %9463 = vst [vmem:[#allocation128_spill] sm:$0xff] %v8274_v35  ;;  %v8277_v49 = vld [vmem:[#allocation8 + $0x588] ss:$16 sps:$4 sm:$0xff]  }
 0x376   :  { %4405 = vmatpush2.bf16.msra.mxu1 %v8253_v41  ;;  %9464 = vst [vmem:[#allocation129_spill] sm:$0xff] %v8277_v49  ;;  %v8280_v41 = vld [vmem:[#allocation8 + $0x56c] ss:$16 sps:$4 sm:$0xff]  }
 0x377   :  { %4406 = vmatprep.subr.bf16.mxu1 %v8256_v40  ;;  %9465 = vst [vmem:[#allocation130_spill] sm:$0xff] %v8280_v41  ;;  %v8283_v40 = vld [vmem:[#allocation8 + $0x788] ss:$16 sps:$4 sm:$0xff]  }
 0x378   :  { %4446 = vmatpush2.bf16.msra.mxu0 %v8259_v11  ;;  %9466 = vst [vmem:[#allocation131_spill] sm:$0xff] %v8283_v40  ;;  %v8286_v11 = vld [vmem:[#allocation8 + $0x76c] ss:$16 sps:$4 sm:$0xff]  }
 0x379   :  { %4447 = vmatprep.subr.bf16.mxu0 %v8262_v25  ;;  %9467 = vst [vmem:[#allocation132_spill] sm:$0xff] %v8286_v11  ;;  %v8289_v25 = vld [vmem:[#allocation8 + $0x568] ss:$16 sps:$4 sm:$0xff]  }
 0x37a   :  { %4407 = vmatpush2.bf16.msra.mxu1 %v8265_v33  ;;  %9468 = vst [vmem:[#allocation133_spill] sm:$0xff] %v8289_v25  ;;  %v8292_v33 = vld [vmem:[#allocation8 + $0x54c] ss:$16 sps:$4 sm:$0xff]  }
 0x37b   :  { %4408 = vmatprep.subr.bf16.mxu1 %v8268_v13  ;;  %9469 = vst [vmem:[#allocation134_spill] sm:$0xff] %v8292_v33  ;;  %v8295_v13 = vld [vmem:[#allocation8 + $0x768] ss:$16 sps:$4 sm:$0xff]  }
 0x37c   :  { %4448 = vmatpush2.bf16.msra.mxu0 %v8271_v32  ;;  %9470 = vst [vmem:[#allocation135_spill] sm:$0xff] %v8295_v13  ;;  %v8298_v32 = vld [vmem:[#allocation8 + $0x74c] ss:$16 sps:$4 sm:$0xff]  }
 0x37d   :  { %4449 = vmatprep.subr.bf16.mxu0 %v8274_v35  ;;  %9471 = vst [vmem:[#allocation136_spill] sm:$0xff] %v8298_v32  ;;  %v4472_v35 = vld [vmem:[%s9472_s26] sm:$0xff] }
 0x37e   :  { %4409 = vmatpush2.bf16.msra.mxu1 %v8277_v49  ;;  %v8304_v49 = vld [vmem:[#allocation8 + $0x548] ss:$16 sps:$4 sm:$0xff]   ;;  %v4476_v9 = vcombine.high %v4472_v35, %v4472_v35 }
 0x37f   :  { %4410 = vmatprep.subr.bf16.mxu1 %v8280_v41  ;;  %9473 = vst [vmem:[#allocation137_spill] sm:$0xff] %v8304_v49  ;;  %v8307_v41 = vld [vmem:[#allocation8 + $0x52c] ss:$16 sps:$4 sm:$0xff]  }
 0x380   :  { %4450 = vmatpush2.bf16.msra.mxu0 %v8283_v40  ;;  %9474 = vst [vmem:[#allocation138_spill] sm:$0xff] %v8307_v41  ;;  %v8310_v40 = vld [vmem:[#allocation8 + $0x748] ss:$16 sps:$4 sm:$0xff]   ;;  %v8328_v42 = vrot.slane %v4476_v9, %v7736_v36 }
 0x381   :  { %4451 = vmatprep.subr.bf16.mxu0 %v8286_v11  ;;  %9475 = vst [vmem:[#allocation139_spill] sm:$0xff] %v8310_v40  ;;  %v8313_v11 = vld [vmem:[#allocation8 + $0x72c] ss:$16 sps:$4 sm:$0xff]  }
 0x382   :  { %4411 = vmatpush2.bf16.msra.mxu1 %v8289_v25  ;;  %9476 = vst [vmem:[#allocation140_spill] sm:$0xff] %v8313_v11  ;;  %v8319_v25 = vrot.slane %v4472_v35, %v7736_v36  ;;  %v4492_v9 = vcombine.high %v8328_v42, %v8328_v42 }
 0x383   :  { %4412 = vmatprep.subr.bf16.mxu1 %v8292_v33  ;;  %v8322_v33 = vld [vmem:[#allocation8 + $0x50c] ss:$16 sps:$4 sm:$0xff]  }
 0x384   :  { %4452 = vmatpush2.bf16.msra.mxu0 %v8295_v13  ;;  %9478 = vst [vmem:[#allocation142_spill] sm:$0xff] %v8322_v33  ;;  %v8325_v13 = vld [vmem:[#allocation8 + $0x728] ss:$16 sps:$4 sm:$0xff]   ;;  %v4491_v35 = vcombine.high %v8319_v25, %v8319_v25  ;;  %v8359_v28 = vpack.c.bf16 %v4492_v9, %v4492_v9 }
 0x385   :  { %4453 = vmatprep.subr.bf16.mxu0 %v8298_v32  ;;  %9479 = vst [vmem:[#allocation143_spill] sm:$0xff] %v8325_v13  ;;  %v8331_v32 = vld [vmem:[#allocation8 + $0x70c] ss:$16 sps:$4 sm:$0xff]  }
 0x386   :  { %4413 = vmatpush2.bf16.msra.mxu1 %v8304_v49  ;;  %9480 = vst [vmem:[#allocation144_spill] sm:$0xff] %v8331_v32  ;;  %v8334_v49 = vld [vmem:[#allocation8 + $0x508] ss:$16 sps:$4 sm:$0xff]  }
 0x387   :  { %4414 = vmatprep.subr.bf16.mxu1 %v8307_v41  ;;  %9481 = vst [vmem:[#allocation145_spill] sm:$0xff] %v8334_v49  ;;  %v8339_v41 = vld [vmem:[#allocation10] sm:$0xf] }
 0x388   :  { %4454 = vmatpush2.bf16.msra.mxu0 %v8310_v40  ;;  %v8342_v40 = vld [vmem:[#allocation8 + $0x708] ss:$16 sps:$4 sm:$0xff]  }
 0x389   :  { %4455 = vmatprep.subr.bf16.mxu0 %v8313_v11  ;;  %9482 = vst [vmem:[#allocation146_spill] sm:$0xff] %v8342_v40  ;;  %v8352_v11 = vpack.c.bf16 %v4491_v35, %v4491_v35 }
 0x38a   :  { %4415 = vmatpush2.bf16.msra.mxu1 %v8316_v37  ;;  %v8350_v37 = vrot.slane %v8339_v41, %v7686_v46 }
 0x38b   :  { %4416 = vmatprep.subr.bf16.mxu1 %v8322_v33  ;;  %v7191_v33 = vld [vmem:[#allocation8 + $0xe4] ss:$16 sps:$4 sm:$0xff]  }
 0x38c   :  { %4456 = vmatpush2.bf16.msra.mxu0 %v8325_v13  ;;  %9483 = vst [vmem:[#allocation147_spill] sm:$0xff] %v8350_v37  ;;  %v8357_v13 = vrot.slane %v8339_v41, %v7692_v48 }
 0x38d   :  { %4457 = vmatprep.subr.bf16.mxu0 %v8331_v32 }
 0x38e   :  { %4417 = vmatpush2.bf16.msra.mxu1 %v8334_v49  ;;  %9484 = vst [vmem:[#allocation148_spill] sm:$0xff] %v8357_v13  ;;  %v7192_v49 = vld [vmem:[#allocation8 + $0x2e4] ss:$16 sps:$4 sm:$0xff]  }
 0x38f   :  { %4526 = vmatprep.subr.bf16.mxu1 %v7191_v33 }
 0x390   :  { %4458 = vmatpush2.bf16.msra.mxu0 %v8342_v40  ;;  %v7194_v40 = vld [vmem:[#allocation8 + $0xc4] ss:$16 sps:$4 sm:$0xff]  }
 0x391   :  { %4419 = vmatmul.mubr.bf16.vlgmr.msra.gmra.mxu1 %v7940_v3  ;;  %v4174_v32 = vpop.f32.mrf.mxu1  ;;  %4567 = vmatprep.subr.bf16.mxu0 %v7192_v49  ;;  %v7195_v3 = vld [vmem:[#allocation8 + $0x2e0] ss:$16 sps:$4 sm:$0xff]  }
 0x392   :  { %v4175_v46 = vadd.f32 %v4174_v32, %v8350_v37  ;;  %4527 = vmatpush1.bf16.msra.mxu1 %v7193_v34  ;;  %4558 = vmatprep.mubr.bf16.mxu1 %v8352_v11  ;;  %v7196_v37 = vld [vmem:[#allocation8 + $0x2c4] ss:$16 sps:$4 sm:$0xff]  }
 0x393   :  { %4460 = vmatmul.mubr.bf16.vlgmr.msra.gmra.mxu0 %v7952_v7  ;;  %v4176_v33 = vpop.f32.mrf.mxu1  ;;  %v4215_v35 = vpop.f32.mrf.mxu0  ;;  %4528 = vmatprep.subr.bf16.mxu1 %v7194_v40  ;;  %v7199_v40 = vld [vmem:[#allocation8 + $0x2c0] ss:$16 sps:$4 sm:$0xff]  }
 0x394   :  { %v4177_v9 = vadd.f32 %v4176_v33, %v8357_v13  ;;  %v8366_v48 = vadd.f32 %v4215_v35, %v4175_v46  ;;  %4568 = vmatpush1.bf16.msra.mxu0 %v7195_v3  ;;  %4599 = vmatprep.mubr.bf16.mxu0 %v8359_v28  ;;  %v7200_v33 = vld [vmem:[#allocation8 + $0x2a4] ss:$16 sps:$4 sm:$0xff]   ;;  %v7201_v35 = vld [vmem:[#allocation8 + $0xa0] ss:$16 sps:$4 sm:$0xff]  }
 0x395   :  { %v4178_v49 = vpop.f32.mrf.mxu1  ;;  %v4217_v32 = vpop.f32.mrf.mxu0  ;;  %4569 = vmatprep.subr.bf16.mxu0 %v7196_v37  ;;  %v7202_v3 = vld [vmem:[#allocation8 + $0x84] ss:$16 sps:$4 sm:$0xff]   ;;  %v7259_v13 = vld [vmem:[#allocation8 + $0x6e0] ss:$16 sps:$4 sm:$0xff]  }
 0x396   :  { %v8369_v34 = vadd.f32 %v4217_v32, %v4177_v9  ;;  %4529 = vmatpush1.bf16.msra.mxu1 %v7197_v45  ;;  %v7203_v49 = vld [vmem:[#allocation8 + $0x2a0] ss:$16 sps:$4 sm:$0xff]   ;;  %v7204_v37 = vld [vmem:[#allocation8 + $0x284] ss:$16 sps:$4 sm:$0xff]  }
 0x397   :  { %v4179_v7 = vpop.f32.mrf.mxu1  ;;  %v4219_v20 = vpop.f32.mrf.mxu0  ;;  %4530 = vmatprep.subr.bf16.mxu1 %v7198_v29  ;;  %v7205_v9 = vld [vmem:[#allocation8 + $0x80] ss:$16 sps:$4 sm:$0xff]   ;;  %v7206_v45 = vld [vmem:[#allocation8 + $0x64] ss:$16 sps:$4 sm:$0xff]  }
 0x398   :  { %4570 = vmatpush1.bf16.msra.mxu0 %v7199_v40  ;;  %v7207_v20 = vld [vmem:[#allocation8 + $0x280] ss:$16 sps:$4 sm:$0xff]   ;;  %v7208_v29 = vld [vmem:[#allocation8 + $0x264] ss:$16 sps:$4 sm:$0xff]  }
 0x399   :  { %v4220_v46 = vpop.f32.mrf.mxu0  ;;  %4571 = vmatprep.subr.bf16.mxu0 %v7200_v33  ;;  %v7209_v32 = vld [vmem:[#allocation8 + $0x60] ss:$16 sps:$4 sm:$0xff]   ;;  %v7210_v7 = vld [vmem:[#allocation8 + $0x44] ss:$16 sps:$4 sm:$0xff]  }
 0x39a   :  { %4531 = vmatpush1.bf16.msra.mxu1 %v7201_v35  ;;  %v7211_v40 = vld [vmem:[#allocation8 + $0x260] ss:$16 sps:$4 sm:$0xff]   ;;  %v7212_v46 = vld [vmem:[#allocation8 + $0x244] ss:$16 sps:$4 sm:$0xff]  }
 0x39b   :  { %4532 = vmatprep.subr.bf16.mxu1 %v7202_v3  ;;  %v7213_v33 = vld [vmem:[#allocation8 + $0x40] ss:$16 sps:$4 sm:$0xff]   ;;  %v7214_v35 = vld [vmem:[#allocation8 + $0x24] ss:$16 sps:$4 sm:$0xff]  }
 0x39c   :  { %4572 = vmatpush1.bf16.msra.mxu0 %v7203_v49  ;;  %v7215_v3 = vld [vmem:[#allocation8 + $0x240] ss:$16 sps:$4 sm:$0xff]   ;;  %v7216_v49 = vld [vmem:[#allocation8 + $0x224] ss:$16 sps:$4 sm:$0xff]  }
 0x39d   :  { %4573 = vmatprep.subr.bf16.mxu0 %v7204_v37  ;;  %v7217_v37 = vld [vmem:[#allocation8 + $0x20] ss:$16 sps:$4 sm:$0xff]  }
 0x39e   :  { %4533 = vmatpush1.bf16.msra.mxu1 %v7205_v9  ;;  %v7218_v9 = vld [vmem:[#allocation8 + $0x4] ss:$16 sps:$4 sm:$0xff]  }
 0x39f   :  { %4534 = vmatprep.subr.bf16.mxu1 %v7206_v45  ;;  %v7219_v45 = vld [vmem:[#allocation8 + $0x220] ss:$16 sps:$4 sm:$0xff]  }
 0x3a0   :  { %4574 = vmatpush1.bf16.msra.mxu0 %v7207_v20  ;;  %v7220_v20 = vld [vmem:[#allocation8 + $0x204] ss:$16 sps:$4 sm:$0xff]  }
 0x3a1   :  { %4575 = vmatprep.subr.bf16.mxu0 %v7208_v29  ;;  %v7221_v29 = vld [vmem:[#allocation8] ss:$16 sps:$4 sm:$0xff]  }
 0x3a2   :  { %4535 = vmatpush1.bf16.msra.mxu1 %v7209_v32  ;;  %v7222_v32 = vld [vmem:[#allocation8 + $0x1e4] ss:$16 sps:$4 sm:$0xff]  }
 0x3a3   :  { %4536 = vmatprep.subr.bf16.mxu1 %v7210_v7  ;;  %v7223_v7 = vld [vmem:[#allocation8 + $0x200] ss:$16 sps:$4 sm:$0xff]  }
 0x3a4   :  { %4576 = vmatpush1.bf16.msra.mxu0 %v7211_v40  ;;  %v7224_v40 = vld [vmem:[#allocation8 + $0x3e4] ss:$16 sps:$4 sm:$0xff]  }
 0x3a5   :  { %4577 = vmatprep.subr.bf16.mxu0 %v7212_v46  ;;  %v7225_v46 = vld [vmem:[#allocation8 + $0x1e0] ss:$16 sps:$4 sm:$0xff]  }
 0x3a6   :  { %4537 = vmatpush1.bf16.msra.mxu1 %v7213_v33  ;;  %v7226_v33 = vld [vmem:[#allocation8 + $0x1c4] ss:$16 sps:$4 sm:$0xff]  }
 0x3a7   :  { %4538 = vmatprep.subr.bf16.mxu1 %v7214_v35  ;;  %v7227_v35 = vld [vmem:[#allocation8 + $0x3e0] ss:$16 sps:$4 sm:$0xff]  }
 0x3a8   :  { %4578 = vmatpush1.bf16.msra.mxu0 %v7215_v3  ;;  %v7228_v3 = vld [vmem:[#allocation8 + $0x3c4] ss:$16 sps:$4 sm:$0xff]  }
 0x3a9   :  { %4579 = vmatprep.subr.bf16.mxu0 %v7216_v49  ;;  %v7229_v49 = vld [vmem:[#allocation8 + $0x1c0] ss:$16 sps:$4 sm:$0xff]  }
 0x3aa   :  { %4539 = vmatpush1.bf16.msra.mxu1 %v7217_v37  ;;  %v7230_v37 = vld [vmem:[#allocation8 + $0x1a4] ss:$16 sps:$4 sm:$0xff]  }
 0x3ab   :  { %4540 = vmatprep.subr.bf16.mxu1 %v7218_v9  ;;  %v7231_v9 = vld [vmem:[#allocation8 + $0x3c0] ss:$16 sps:$4 sm:$0xff]  }
 0x3ac   :  { %4580 = vmatpush1.bf16.msra.mxu0 %v7219_v45  ;;  %v7232_v45 = vld [vmem:[#allocation8 + $0x3a4] ss:$16 sps:$4 sm:$0xff]  }
 0x3ad   :  { %4581 = vmatprep.subr.bf16.mxu0 %v7220_v20  ;;  %v7233_v20 = vld [vmem:[#allocation8 + $0x1a0] ss:$16 sps:$4 sm:$0xff]  }
 0x3ae   :  { %4541 = vmatpush1.bf16.msra.mxu1 %v7221_v29  ;;  %v7234_v29 = vld [vmem:[#allocation8 + $0x184] ss:$16 sps:$4 sm:$0xff]  }
 0x3af   :  { %4542 = vmatprep.subr.bf16.mxu1 %v7222_v32  ;;  %v7235_v32 = vld [vmem:[#allocation8 + $0x3a0] ss:$16 sps:$4 sm:$0xff]  }
 0x3b0   :  { %4582 = vmatpush1.bf16.msra.mxu0 %v7223_v7  ;;  %v7236_v7 = vld [vmem:[#allocation8 + $0x384] ss:$16 sps:$4 sm:$0xff]  }
 0x3b1   :  { %4583 = vmatprep.subr.bf16.mxu0 %v7224_v40  ;;  %v7237_v40 = vld [vmem:[#allocation8 + $0x180] ss:$16 sps:$4 sm:$0xff]  }
 0x3b2   :  { %4543 = vmatpush2.bf16.msra.mxu1 %v7225_v46  ;;  %v7238_v46 = vld [vmem:[#allocation8 + $0x164] ss:$16 sps:$4 sm:$0xff]  }
 0x3b3   :  { %4544 = vmatprep.subr.bf16.mxu1 %v7226_v33  ;;  %v7239_v33 = vld [vmem:[#allocation8 + $0x380] ss:$16 sps:$4 sm:$0xff]  }
 0x3b4   :  { %4584 = vmatpush2.bf16.msra.mxu0 %v7227_v35  ;;  %v7240_v35 = vld [vmem:[#allocation8 + $0x364] ss:$16 sps:$4 sm:$0xff]  }
 0x3b5   :  { %4585 = vmatprep.subr.bf16.mxu0 %v7228_v3  ;;  %v4473_v3 = vld [vmem:[%s9472_s26 + $0x8] sm:$0xff] }
 0x3b6   :  { %4545 = vmatpush2.bf16.msra.mxu1 %v7229_v49  ;;  %v7241_v49 = vld [vmem:[#allocation8 + $0x160] ss:$16 sps:$4 sm:$0xff]  }
 0x3b7   :  { %4546 = vmatprep.subr.bf16.mxu1 %v7230_v37  ;;  %v7242_v37 = vld [vmem:[#allocation8 + $0x144] ss:$16 sps:$4 sm:$0xff]  }
 0x3b8   :  { %4586 = vmatpush2.bf16.msra.mxu0 %v7231_v9  ;;  %v7243_v9 = vld [vmem:[#allocation8 + $0x360] ss:$16 sps:$4 sm:$0xff]  }
 0x3b9   :  { %4587 = vmatprep.subr.bf16.mxu0 %v7232_v45  ;;  %v4493_v45 = vcombine.high %v4473_v3, %v4473_v3 }
 0x3ba   :  { %4547 = vmatpush2.bf16.msra.mxu1 %v7233_v20  ;;  %v7244_v20 = vld [vmem:[#allocation8 + $0x344] ss:$16 sps:$4 sm:$0xff]  }
 0x3bb   :  { %4548 = vmatprep.subr.bf16.mxu1 %v7234_v29  ;;  %v7245_v29 = vld [vmem:[#allocation8 + $0x140] ss:$16 sps:$4 sm:$0xff]  }
 0x3bc   :  { %4588 = vmatpush2.bf16.msra.mxu0 %v7235_v32  ;;  %v8375_v32 = vrot.slane %v4473_v3, %v7736_v36 }
 0x3bd   :  { %4589 = vmatprep.subr.bf16.mxu0 %v7236_v7  ;;  %v7246_v7 = vld [vmem:[#allocation8 + $0x124] ss:$16 sps:$4 sm:$0xff]  }
 0x3be   :  { %4549 = vmatpush2.bf16.msra.mxu1 %v7237_v40  ;;  %v7247_v40 = vld [vmem:[#allocation8 + $0x340] ss:$16 sps:$4 sm:$0xff]  }
 0x3bf   :  { %4550 = vmatprep.subr.bf16.mxu1 %v7238_v46  ;;  %v8378_v46 = vrot.slane %v4493_v45, %v7736_v36  ;;  %v8386_v45 = vpack.c.bf16 %v8319_v25, %v8319_v25  ;;  %v7261_v36 = vld [vmem:[#allocation8 + $0x4c0] ss:$16 sps:$4 sm:$0xff]  }
 0x3c0   :  { %4590 = vmatpush2.bf16.msra.mxu0 %v7239_v33  ;;  %v7248_v33 = vld [vmem:[#allocation8 + $0x324] ss:$16 sps:$4 sm:$0xff]  }
 0x3c1   :  { %4591 = vmatprep.subr.bf16.mxu0 %v7240_v35  ;;  %v7249_v35 = vld [vmem:[#allocation8 + $0x120] ss:$16 sps:$4 sm:$0xff]   ;;  %v4509_v3 = vcombine.high %v8378_v46, %v8378_v46  ;;  %9485 = vst [vmem:[#allocation149_spill] sm:$0xff] %v8386_v45 }
 0x3c2   :  { %4551 = vmatpush2.bf16.msra.mxu1 %v7241_v49  ;;  %v4508_v49 = vcombine.high %v8375_v32, %v8375_v32 }
 0x3c3   :  { %4552 = vmatprep.subr.bf16.mxu1 %v7242_v37  ;;  %v7250_v37 = vld [vmem:[#allocation8 + $0x104] ss:$16 sps:$4 sm:$0xff]  }
 0x3c4   :  { %4592 = vmatpush2.bf16.msra.mxu0 %v7243_v9  ;;  %v7251_v9 = vld [vmem:[#allocation8 + $0x320] ss:$16 sps:$4 sm:$0xff]  }
 0x3c5   :  { %4593 = vmatprep.subr.bf16.mxu0 %v7244_v20  ;;  %v7252_v20 = vld [vmem:[#allocation8 + $0x304] ss:$16 sps:$4 sm:$0xff]  }
 0x3c6   :  { %4553 = vmatpush2.bf16.msra.mxu1 %v7245_v29  ;;  %v7253_v29 = vld [vmem:[#allocation8 + $0x100] ss:$16 sps:$4 sm:$0xff]  }
 0x3c7   :  { %4554 = vmatprep.subr.bf16.mxu1 %v7246_v7  ;;  %v8388_v7 = vpack.c.bf16 %v4508_v49, %v4508_v49 }
 0x3c8   :  { %4594 = vmatpush2.bf16.msra.mxu0 %v7247_v40  ;;  %v7254_v40 = vld [vmem:[#allocation8 + $0x4e4] ss:$16 sps:$4 sm:$0xff]  }
 0x3c9   :  { %4595 = vmatprep.subr.bf16.mxu0 %v7248_v33  ;;  %9486 = vst [vmem:[#allocation150_spill] sm:$0xff] %v8388_v7  ;;  %v8392_v33 = vpack.c.bf16 %v8328_v42, %v8328_v42 }
 0x3ca   :  { %4555 = vmatpush2.bf16.msra.mxu1 %v7249_v35  ;;  %v7255_v35 = vld [vmem:[#allocation8 + $0x300] ss:$16 sps:$4 sm:$0xff]  }
 0x3cb   :  { %4556 = vmatprep.subr.bf16.mxu1 %v7250_v37  ;;  %9487 = vst [vmem:[#allocation151_spill] sm:$0xff] %v8392_v33  ;;  %v8394_v37 = vpack.c.bf16 %v4509_v3, %v4509_v3 }
 0x3cc   :  { %4596 = vmatpush2.bf16.msra.mxu0 %v7251_v9 }
 0x3cd   :  { %4597 = vmatprep.subr.bf16.mxu0 %v7252_v20  ;;  %v7256_v20 = vld [vmem:[#allocation8 + $0x6e4] ss:$16 sps:$4 sm:$0xff]  }
 0x3ce   :  { %4557 = vmatpush2.bf16.msra.mxu1 %v7253_v29  ;;  %v7257_v29 = vld [vmem:[#allocation8 + $0x4e0] ss:$16 sps:$4 sm:$0xff]  }
 0x3cf   :  { %4608 = vmatprep.subr.bf16.mxu1 %v7254_v40  ;;  %v7258_v40 = vld [vmem:[#allocation8 + $0x4c4] ss:$16 sps:$4 sm:$0xff]  }
 0x3d0   :  { %4598 = vmatpush2.bf16.msra.mxu0 %v7255_v35 }
 0x3d1   :  { %4559 = vmatmul.mubr.bf16.vlgmr.msra.gmra.mxu1 %v8386_v45  ;;  %v4256_v9 = vpop.f32.mrf.mxu1  ;;  %4649 = vmatprep.subr.bf16.mxu0 %v7256_v20  ;;  %v7262_v45 = vld [vmem:[#allocation8 + $0x4a4] ss:$16 sps:$4 sm:$0xff]  }
 0x3d2   :  { %v4257_v25 = vadd.f32 %v4256_v9, %v8366_v48  ;;  %4609 = vmatpush1.bf16.msra.mxu1 %v7257_v29  ;;  %4640 = vmatprep.mubr.bf16.mxu1 %v8388_v7  ;;  %v7260_v9 = vld [vmem:[#allocation8 + $0x6c4] ss:$16 sps:$4 sm:$0xff]  }
 0x3d3   :  { %4600 = vmatmul.mubr.bf16.vlgmr.msra.gmra.mxu0 %v8392_v33  ;;  %v4258_v49 = vpop.f32.mrf.mxu1  ;;  %v4297_v42 = vpop.f32.mrf.mxu0  ;;  %4610 = vmatprep.subr.bf16.mxu1 %v7258_v40  ;;  %v7263_v40 = vld [vmem:[#allocation8 + $0x6c0] ss:$16 sps:$4 sm:$0xff]  }
 0x3d4   :  { %v4259_v3 = vadd.f32 %v4258_v49, %v8369_v34  ;;  %v8401_v35 = vadd.f32 %v4297_v42, %v4257_v25  ;;  %4650 = vmatpush1.bf16.msra.mxu0 %v7259_v13  ;;  %4681 = vmatprep.mubr.bf16.mxu0 %v8394_v37  ;;  %v7264_v25 = vld [vmem:[#allocation8 + $0x6a4] ss:$16 sps:$4 sm:$0xff]   ;;  %v7265_v13 = vld [vmem:[#allocation8 + $0x4a0] ss:$16 sps:$4 sm:$0xff]  }
 0x3d5   :  { %v4260_v20 = vpop.f32.mrf.mxu1  ;;  %v4299_v48 = vpop.f32.mrf.mxu0  ;;  %4651 = vmatprep.subr.bf16.mxu0 %v7260_v9  ;;  %v7266_v49 = vld [vmem:[#allocation8 + $0x484] ss:$16 sps:$4 sm:$0xff]   ;;  %v7267_v42 = vld [vmem:[#allocation8 + $0x6a0] ss:$16 sps:$4 sm:$0xff]  }
 0x3d6   :  { %9488 = vst [vmem:[#allocation152_spill] sm:$0xff] %v8401_v35  ;;  %v8404_v29 = vadd.f32 %v4299_v48, %v4259_v3  ;;  %4611 = vmatpush1.bf16.msra.mxu1 %v7261_v36  ;;  %v7268_v20 = vld [vmem:[#allocation8 + $0x684] ss:$16 sps:$4 sm:$0xff]   ;;  %v7269_v3 = vld [vmem:[#allocation8 + $0x480] ss:$16 sps:$4 sm:$0xff]  }
 0x3d7   :  { %v4261_v33 = vpop.f32.mrf.mxu1  ;;  %v4301_v7 = vpop.f32.mrf.mxu0  ;;  %4612 = vmatprep.subr.bf16.mxu1 %v7262_v45  ;;  %v7270_v36 = vld [vmem:[#allocation8 + $0x464] ss:$16 sps:$4 sm:$0xff]   ;;  %v7275_v9 = vld [vmem:[#allocation8 + $0x660] ss:$16 sps:$4 sm:$0xff]  }
 0x3d8   :  { %9489 = vst [vmem:[#allocation153_spill] sm:$0xff] %v8404_v29  ;;  %4652 = vmatpush1.bf16.msra.mxu0 %v7263_v40  ;;  %v7271_v7 = vld [vmem:[#allocation8 + $0x680] ss:$16 sps:$4 sm:$0xff]   ;;  %v7272_v45 = vld [vmem:[#allocation8 + $0x664] ss:$16 sps:$4 sm:$0xff]  }
 0x3d9   :  { %v4302_v34 = vpop.f32.mrf.mxu0  ;;  %4653 = vmatprep.subr.bf16.mxu0 %v7264_v25  ;;  %v7273_v33 = vld [vmem:[#allocation8 + $0x460] ss:$16 sps:$4 sm:$0xff]   ;;  %v7274_v48 = vld [vmem:[#allocation8 + $0x444] ss:$16 sps:$4 sm:$0xff]  }
 0x3da   :  { %4613 = vmatpush1.bf16.msra.mxu1 %v7265_v13  ;;  %v7276_v40 = vld [vmem:[#allocation8 + $0x644] ss:$16 sps:$4 sm:$0xff]   ;;  %v7277_v34 = vld [vmem:[#allocation8 + $0x440] ss:$16 sps:$4 sm:$0xff]  }
 0x3db   :  { %4614 = vmatprep.subr.bf16.mxu1 %v7266_v49  ;;  %v7278_v25 = vld [vmem:[#allocation8 + $0x424] ss:$16 sps:$4 sm:$0xff]   ;;  %v7279_v13 = vld [vmem:[#allocation8 + $0x640] ss:$16 sps:$4 sm:$0xff]  }
 0x3dc   :  { %4654 = vmatpush1.bf16.msra.mxu0 %v7267_v42  ;;  %v7280_v49 = vld [vmem:[#allocation8 + $0x624] ss:$16 sps:$4 sm:$0xff]   ;;  %v7281_v42 = vld [vmem:[#allocation8 + $0x420] ss:$16 sps:$4 sm:$0xff]  }
 0x3dd   :  { %4655 = vmatprep.subr.bf16.mxu0 %v7268_v20  ;;  %v7282_v20 = vld [vmem:[#allocation8 + $0x404] ss:$16 sps:$4 sm:$0xff]   ;;  %v8780_v29 = vld [vmem:[#allocation11 + $0x94] ss:$8 sps:$4 sm:$0xff]  }
 0x3de   :  { %4615 = vmatpush1.bf16.msra.mxu1 %v7269_v3  ;;  %v7283_v3 = vld [vmem:[#allocation8 + $0x620] ss:$16 sps:$4 sm:$0xff]   ;;  %v8777_v35 = vld [vmem:[#allocation11 + $0xa0] ss:$8 sps:$4 sm:$0xff]  }
 0x3df   :  { %4616 = vmatprep.subr.bf16.mxu1 %v7270_v36  ;;  %v7284_v36 = vld [vmem:[#allocation8 + $0x604] ss:$16 sps:$4 sm:$0xff]  }
 0x3e0   :  { %4656 = vmatpush1.bf16.msra.mxu0 %v7271_v7  ;;  %v7285_v7 = vld [vmem:[#allocation8 + $0x400] ss:$16 sps:$4 sm:$0xff]  }
 0x3e1   :  { %4657 = vmatprep.subr.bf16.mxu0 %v7272_v45  ;;  %v7286_v45 = vld [vmem:[#allocation8 + $0x5e4] ss:$16 sps:$4 sm:$0xff]  }
 0x3e2   :  { %4617 = vmatpush1.bf16.msra.mxu1 %v7273_v33  ;;  %v7287_v33 = vld [vmem:[#allocation8 + $0x600] ss:$16 sps:$4 sm:$0xff]  }
 0x3e3   :  { %4618 = vmatprep.subr.bf16.mxu1 %v7274_v48  ;;  %v7288_v48 = vld [vmem:[#allocation8 + $0x7e4] ss:$16 sps:$4 sm:$0xff]  }
 0x3e4   :  { %4658 = vmatpush1.bf16.msra.mxu0 %v7275_v9  ;;  %v7289_v9 = vld [vmem:[#allocation8 + $0x5e0] ss:$16 sps:$4 sm:$0xff]  }
 0x3e5   :  { %4659 = vmatprep.subr.bf16.mxu0 %v7276_v40  ;;  %v9521_v40 = vld [vmem:[#allocation61_spill] sm:$0xff] }
 0x3e6   :  { %4619 = vmatpush1.bf16.msra.mxu1 %v7277_v34  ;;  %v9522_v34 = vld [vmem:[#allocation62_spill] sm:$0xff] }
 0x3e7   :  { %4620 = vmatprep.subr.bf16.mxu1 %v7278_v25  ;;  %v9523_v25 = vld [vmem:[#allocation63_spill] sm:$0xff] }
 0x3e8   :  { %4660 = vmatpush1.bf16.msra.mxu0 %v7279_v13  ;;  %v9524_v13 = vld [vmem:[#allocation64_spill] sm:$0xff] }
 0x3e9   :  { %4661 = vmatprep.subr.bf16.mxu0 %v7280_v49  ;;  %v9525_v49 = vld [vmem:[#allocation65_spill] sm:$0xff] }
 0x3ea   :  { %4621 = vmatpush1.bf16.msra.mxu1 %v7281_v42  ;;  %v9526_v42 = vld [vmem:[#allocation66_spill] sm:$0xff] }
 0x3eb   :  { %4622 = vmatprep.subr.bf16.mxu1 %v7282_v20  ;;  %v9527_v20 = vld [vmem:[#allocation67_spill] sm:$0xff] }
 0x3ec   :  { %4662 = vmatpush1.bf16.msra.mxu0 %v7283_v3  ;;  %v9528_v3 = vld [vmem:[#allocation68_spill] sm:$0xff] }
 0x3ed   :  { %4663 = vmatprep.subr.bf16.mxu0 %v7284_v36  ;;  %v9529_v36 = vld [vmem:[#allocation69_spill] sm:$0xff] }
 0x3ee   :  { %4623 = vmatpush1.bf16.msra.mxu1 %v7285_v7  ;;  %v9530_v7 = vld [vmem:[#allocation70_spill] sm:$0xff] }
 0x3ef   :  { %4624 = vmatprep.subr.bf16.mxu1 %v7286_v45  ;;  %v9531_v45 = vld [vmem:[#allocation71_spill] sm:$0xff]  ;;  %9653 = vst [vmem:[#allocation70_spill] sm:$0xff] %v8777_v35 }
 0x3f0   :  { %4664 = vmatpush1.bf16.msra.mxu0 %v7287_v33  ;;  %v9532_v33 = vld [vmem:[#allocation72_spill] sm:$0xff]  ;;  %9654 = vst [vmem:[#allocation71_spill] sm:$0xff] %v8780_v29 }
 0x3f1   :  { %4665 = vmatprep.subr.bf16.mxu0 %v7288_v48  ;;  %v9533_v48 = vld [vmem:[#allocation73_spill] sm:$0xff] }
 0x3f2   :  { %4625 = vmatpush2.bf16.msra.mxu1 %v7289_v9  ;;  %v9534_v9 = vld [vmem:[#allocation74_spill] sm:$0xff] }
 0x3f3   :  { %4626 = vmatprep.subr.bf16.mxu1 %v7833_v38  ;;  %v8435_v38 = vpack.c.bf16 %v8375_v32, %v8375_v32  ;;  %v9519_v32 = vld [vmem:[#allocation59_spill] sm:$0xff] }
 0x3f4   :  { %4666 = vmatpush2.bf16.msra.mxu0 %v7836_v0  ;;  %v8440_v0 = vrot.slane %v8339_v41, %v7715_v21 }
 0x3f5   :  { %4667 = vmatprep.subr.bf16.mxu0 %v7838_v44  ;;  %v8445_v44 = vpack.c.bf16 %v8378_v46, %v8378_v46  ;;  %v9520_v46 = vld [vmem:[#allocation60_spill] sm:$0xff] }
 0x3f6   :  { %4627 = vmatpush2.bf16.msra.mxu1 %v7840_v47  ;;  %v8450_v47 = vrot.slane %v8339_v41, %v7718_v22  ;;  %v9517_v41 = vld [vmem:[#allocation57_spill] sm:$0xff] }
 0x3f7   :  { %4628 = vmatprep.subr.bf16.mxu1 %v7843_v50 }
 0x3f8   :  { %4668 = vmatpush2.bf16.msra.mxu0 %v7846_v51 }
 0x3f9   :  { %4669 = vmatprep.subr.bf16.mxu0 %v7849_v52 }
 0x3fa   :  { %4629 = vmatpush2.bf16.msra.mxu1 %v7852_v53 }
 0x3fb   :  { %4630 = vmatprep.subr.bf16.mxu1 %v7855_v54 }
 0x3fc   :  { %4670 = vmatpush2.bf16.msra.mxu0 %v7858_v55 }
 0x3fd   :  { %4671 = vmatprep.subr.bf16.mxu0 %v7861_v56 }
 0x3fe   :  { %4631 = vmatpush2.bf16.msra.mxu1 %v7864_v57 }
 0x3ff   :  { %4632 = vmatprep.subr.bf16.mxu1 %v7867_v62 }
 0x400   :  { %4672 = vmatpush2.bf16.msra.mxu0 %v7870_v2 }
 0x401   :  { %4673 = vmatprep.subr.bf16.mxu0 %v7873_v4  ;;  %v9490_v4 = vld [vmem:[#allocation30_spill] sm:$0xff] }
 0x402   :  { %4633 = vmatpush2.bf16.msra.mxu1 %v7876_v6  ;;  %v9491_v6 = vld [vmem:[#allocation31_spill] sm:$0xff] }
 0x403   :  { %4634 = vmatprep.subr.bf16.mxu1 %v7879_v58  ;;  %v9492_v58 = vld [vmem:[#allocation32_spill] sm:$0xff] }
 0x404   :  { %4674 = vmatpush2.bf16.msra.mxu0 %v7882_v14  ;;  %v9493_v14 = vld [vmem:[#allocation33_spill] sm:$0xff] }
 0x405   :  { %4675 = vmatprep.subr.bf16.mxu0 %v7885_v16  ;;  %v9494_v16 = vld [vmem:[#allocation34_spill] sm:$0xff] }
 0x406   :  { %4635 = vmatpush2.bf16.msra.mxu1 %v7889_v24  ;;  %v9495_v24 = vld [vmem:[#allocation35_spill] sm:$0xff] }
 0x407   :  { %4636 = vmatprep.subr.bf16.mxu1 %v7893_v18  ;;  %v9496_v18 = vld [vmem:[#allocation36_spill] sm:$0xff] }
 0x408   :  { %4676 = vmatpush2.bf16.msra.mxu0 %v7899_v60  ;;  %v9497_v60 = vld [vmem:[#allocation37_spill] sm:$0xff] }
 0x409   :  { %4677 = vmatprep.subr.bf16.mxu0 %v7902_v23  ;;  %v9498_v23 = vld [vmem:[#allocation38_spill] sm:$0xff] }
 0x40a   :  { %4637 = vmatpush2.bf16.msra.mxu1 %v7905_v26  ;;  %v9499_v26 = vld [vmem:[#allocation39_spill] sm:$0xff] }
 0x40b   :  { %4638 = vmatprep.subr.bf16.mxu1 %v7908_v27  ;;  %v9500_v27 = vld [vmem:[#allocation40_spill] sm:$0xff] }
 0x40c   :  { %4678 = vmatpush2.bf16.msra.mxu0 %v7911_v61  ;;  %v9501_v61 = vld [vmem:[#allocation41_spill] sm:$0xff] }
 0x40d   :  { %4679 = vmatprep.subr.bf16.mxu0 %v7915_v30  ;;  %v9502_v30 = vld [vmem:[#allocation42_spill] sm:$0xff] }
 0x40e   :  { %4639 = vmatpush2.bf16.msra.mxu1 %v7918_v31  ;;  %v9503_v31 = vld [vmem:[#allocation43_spill] sm:$0xff] }
 0x40f   :  { %4690 = vmatprep.subr.bf16.mxu1 %v7922_v63  ;;  %v9504_v63 = vld [vmem:[#allocation44_spill] sm:$0xff] }
 0x410   :  { %4680 = vmatpush2.bf16.msra.mxu0 %v7926_v43  ;;  %v9505_v43 = vld [vmem:[#allocation45_spill] sm:$0xff] }
 0x411   :  { %v4338_v50 = vpop.f32.mrf.mxu1  ;;  %4641 = vmatmul.mubr.bf16.vlgmr.msra.gmra.mxu1 %v8435_v38  ;;  %4731 = vmatprep.subr.bf16.mxu0 %v7930_v39  ;;  %v9506_v39 = vld [vmem:[#allocation46_spill] sm:$0xff] }
 0x412   :  { %v4339_v21 = vadd.f32 %v4338_v50, %v8440_v0  ;;  %4691 = vmatpush1.bf16.msra.mxu1 %v7936_v1  ;;  %4722 = vmatprep.mubr.bf16.mxu1 %v8352_v11  ;;  %v9507_v1 = vld [vmem:[#allocation47_spill] sm:$0xff]  ;;  %v9518_v11 = vld [vmem:[#allocation58_spill] sm:$0xff] }
 0x413   :  { %v4340_v51 = vpop.f32.mrf.mxu1  ;;  %v4379_v52 = vpop.f32.mrf.mxu0  ;;  %4682 = vmatmul.mubr.bf16.vlgmr.msra.gmra.mxu0 %v8445_v44  ;;  %4692 = vmatprep.subr.bf16.mxu1 %v7948_v10  ;;  %v9509_v10 = vld [vmem:[#allocation49_spill] sm:$0xff]  ;;  %v9535_v50 = vld [vmem:[#allocation75_spill] sm:$0xff] }
 0x414   :  { %v4341_v22 = vadd.f32 %v4340_v51, %v8450_v47  ;;  %v8460_v53 = vadd.f32 %v4379_v52, %v4339_v21  ;;  %4732 = vmatpush1.bf16.msra.mxu0 %v7946_v5  ;;  %4763 = vmatprep.mubr.bf16.mxu0 %v8359_v28  ;;  %v9508_v5 = vld [vmem:[#allocation48_spill] sm:$0xff]  ;;  %v9537_v51 = vld [vmem:[#allocation77_spill] sm:$0xff]  ;;  %v9538_v52 = vld [vmem:[#allocation78_spill] sm:$0xff] }
 0x415   :  { %v4342_v54 = vpop.f32.mrf.mxu1  ;;  %v4381_v55 = vpop.f32.mrf.mxu0  ;;  %4733 = vmatprep.subr.bf16.mxu0 %v7954_v12  ;;  %v9510_v12 = vld [vmem:[#allocation50_spill] sm:$0xff]  ;;  %v9516_v28 = vld [vmem:[#allocation56_spill] sm:$0xff] }
 0x416   :  { %v8465_v56 = vadd.f32 %v4381_v55, %v4341_v22  ;;  %4693 = vmatpush1.bf16.msra.mxu1 %v7958_v8  ;;  %v9511_v8 = vld [vmem:[#allocation51_spill] sm:$0xff]  ;;  %v9536_v21 = vld [vmem:[#allocation76_spill] sm:$0xff]  ;;  %v9541_v55 = vld [vmem:[#allocation81_spill] sm:$0xff] }
 0x417   :  { %v4343_v57 = vpop.f32.mrf.mxu1  ;;  %v4383_v62 = vpop.f32.mrf.mxu0  ;;  %4694 = vmatprep.subr.bf16.mxu1 %v7962_v15  ;;  %v9512_v15 = vld [vmem:[#allocation52_spill] sm:$0xff]  ;;  %v9539_v22 = vld [vmem:[#allocation79_spill] sm:$0xff] }
 0x418   :  { %4734 = vmatpush1.bf16.msra.mxu0 %v7966_v59  ;;  %v9513_v59 = vld [vmem:[#allocation53_spill] sm:$0xff]  ;;  %v9540_v54 = vld [vmem:[#allocation80_spill] sm:$0xff]  ;;  %v9542_v57 = vld [vmem:[#allocation82_spill] sm:$0xff] }
 0x419   :  { %v4384_v2 = vpop.f32.mrf.mxu0  ;;  %4735 = vmatprep.subr.bf16.mxu0 %v7970_v17  ;;  %v9514_v17 = vld [vmem:[#allocation54_spill] sm:$0xff]  ;;  %v9543_v62 = vld [vmem:[#allocation83_spill] sm:$0xff] }
 0x41a   :  { %4695 = vmatpush1.bf16.msra.mxu1 %v7973_v19  ;;  %v9515_v19 = vld [vmem:[#allocation55_spill] sm:$0xff] }
 0x41b   :  { %4696 = vmatprep.subr.bf16.mxu1 %v9490_v4  ;;  %v9544_v4 = vld [vmem:[#allocation149_spill] sm:$0xff] }
 0x41c   :  { %4736 = vmatpush1.bf16.msra.mxu0 %v9491_v6  ;;  %v9545_v6 = vld [vmem:[#allocation84_spill] sm:$0xff] }
 0x41d   :  { %4737 = vmatprep.subr.bf16.mxu0 %v9492_v58 }
 0x41e   :  { %4697 = vmatpush1.bf16.msra.mxu1 %v9493_v14  ;;  %v9546_v14 = vld [vmem:[#allocation85_spill] sm:$0xff] }
 0x41f   :  { %4698 = vmatprep.subr.bf16.mxu1 %v9494_v16  ;;  %v9547_v16 = vld [vmem:[#allocation150_spill] sm:$0xff] }
 0x420   :  { %4738 = vmatpush1.bf16.msra.mxu0 %v9495_v24 }
 0x421   :  { %4739 = vmatprep.subr.bf16.mxu0 %v9496_v18 }
 0x422   :  { %4699 = vmatpush1.bf16.msra.mxu1 %v9497_v60  ;;  %v9548_v60 = vld [vmem:[#allocation151_spill] sm:$0xff] }
 0x423   :  { %4700 = vmatprep.subr.bf16.mxu1 %v9498_v23  ;;  %v9549_v23 = vld [vmem:[#allocation86_spill] sm:$0xff] }
 0x424   :  { %4740 = vmatpush1.bf16.msra.mxu0 %v9499_v26 }
 0x425   :  { %4741 = vmatprep.subr.bf16.mxu0 %v9500_v27 }
 0x426   :  { %4701 = vmatpush1.bf16.msra.mxu1 %v9501_v61  ;;  %v9550_v61 = vld [vmem:[#allocation87_spill] sm:$0xff] }
 0x427   :  { %4702 = vmatprep.subr.bf16.mxu1 %v9502_v30 }
 0x428   :  { %4742 = vmatpush1.bf16.msra.mxu0 %v9503_v31  ;;  %v9551_v31 = vld [vmem:[#allocation88_spill] sm:$0xff] }
 0x429   :  { %4743 = vmatprep.subr.bf16.mxu0 %v9504_v63 }
 0x42a   :  { %4703 = vmatpush1.bf16.msra.mxu1 %v9505_v43  ;;  %v9552_v43 = vld [vmem:[#allocation89_spill] sm:$0xff] }
 0x42b   :  { %4704 = vmatprep.subr.bf16.mxu1 %v9506_v39 }
 0x42c   :  { %4744 = vmatpush1.bf16.msra.mxu0 %v9507_v1 }
 0x42d   :  { %4745 = vmatprep.subr.bf16.mxu0 %v9508_v5  ;;  %v9553_v5 = vld [vmem:[#allocation90_spill] sm:$0xff] }
 0x42e   :  { %4705 = vmatpush1.bf16.msra.mxu1 %v9509_v10  ;;  %v9554_v10 = vld [vmem:[#allocation91_spill] sm:$0xff] }
 0x42f   :  { %4706 = vmatprep.subr.bf16.mxu1 %v9510_v12  ;;  %v9555_v12 = vld [vmem:[#allocation92_spill] sm:$0xff] }
 0x430   :  { %4746 = vmatpush1.bf16.msra.mxu0 %v9511_v8  ;;  %v9556_v8 = vld [vmem:[#allocation93_spill] sm:$0xff] }
 0x431   :  { %4747 = vmatprep.subr.bf16.mxu0 %v9512_v15  ;;  %v9558_v15 = vld [vmem:[#allocation95_spill] sm:$0xff] }
 0x432   :  { %4707 = vmatpush2.bf16.msra.mxu1 %v9513_v59  ;;  %v9559_v59 = vld [vmem:[#allocation96_spill] sm:$0xff] }
 0x433   :  { %4708 = vmatprep.subr.bf16.mxu1 %v9514_v17  ;;  %v9560_v17 = vld [vmem:[#allocation97_spill] sm:$0xff] }
 0x434   :  { %4748 = vmatpush2.bf16.msra.mxu0 %v9515_v19  ;;  %v9561_v19 = vld [vmem:[#allocation98_spill] sm:$0xff] }
 0x435   :  { %4749 = vmatprep.subr.bf16.mxu0 %v9516_v28  ;;  %v9562_v28 = vld [vmem:[#allocation99_spill] sm:$0xff] }
 0x436   :  { %4709 = vmatpush2.bf16.msra.mxu1 %v9517_v41  ;;  %v9563_v41 = vld [vmem:[#allocation100_spill] sm:$0xff] }
 0x437   :  { %4710 = vmatprep.subr.bf16.mxu1 %v9518_v11  ;;  %v9564_v11 = vld [vmem:[#allocation101_spill] sm:$0xff] }
 0x438   :  { %4750 = vmatpush2.bf16.msra.mxu0 %v9519_v32  ;;  %v9565_v32 = vld [vmem:[#allocation102_spill] sm:$0xff] }
 0x439   :  { %4751 = vmatprep.subr.bf16.mxu0 %v9520_v46  ;;  %v9566_v46 = vld [vmem:[#allocation103_spill] sm:$0xff] }
 0x43a   :  { %4711 = vmatpush2.bf16.msra.mxu1 %v9521_v40  ;;  %v9567_v40 = vld [vmem:[#allocation104_spill] sm:$0xff] }
 0x43b   :  { %4712 = vmatprep.subr.bf16.mxu1 %v9522_v34  ;;  %v9568_v34 = vld [vmem:[#allocation105_spill] sm:$0xff] }
 0x43c   :  { %4752 = vmatpush2.bf16.msra.mxu0 %v9523_v25  ;;  %v9569_v25 = vld [vmem:[#allocation106_spill] sm:$0xff] }
 0x43d   :  { %4753 = vmatprep.subr.bf16.mxu0 %v9524_v13  ;;  %v9570_v13 = vld [vmem:[#allocation107_spill] sm:$0xff] }
 0x43e   :  { %4713 = vmatpush2.bf16.msra.mxu1 %v9525_v49  ;;  %v9571_v49 = vld [vmem:[#allocation108_spill] sm:$0xff] }
 0x43f   :  { %4714 = vmatprep.subr.bf16.mxu1 %v9526_v42  ;;  %v9572_v42 = vld [vmem:[#allocation109_spill] sm:$0xff] }
 0x440   :  { %4754 = vmatpush2.bf16.msra.mxu0 %v9527_v20  ;;  %v9573_v20 = vld [vmem:[#allocation110_spill] sm:$0xff] }
 0x441   :  { %4755 = vmatprep.subr.bf16.mxu0 %v9528_v3  ;;  %v9574_v3 = vld [vmem:[#allocation111_spill] sm:$0xff] }
 0x442   :  { %4715 = vmatpush2.bf16.msra.mxu1 %v9529_v36  ;;  %v9575_v36 = vld [vmem:[#allocation112_spill] sm:$0xff] }
 0x443   :  { %4716 = vmatprep.subr.bf16.mxu1 %v9530_v7  ;;  %v9576_v7 = vld [vmem:[#allocation113_spill] sm:$0xff] }
 0x444   :  { %4756 = vmatpush2.bf16.msra.mxu0 %v9531_v45  ;;  %v9577_v45 = vld [vmem:[#allocation114_spill] sm:$0xff] }
 0x445   :  { %4757 = vmatprep.subr.bf16.mxu0 %v9532_v33  ;;  %v9578_v33 = vld [vmem:[#allocation115_spill] sm:$0xff] }
 0x446   :  { %4717 = vmatpush2.bf16.msra.mxu1 %v9533_v48  ;;  %v9579_v48 = vld [vmem:[#allocation116_spill] sm:$0xff] }
 0x447   :  { %4718 = vmatprep.subr.bf16.mxu1 %v9534_v9  ;;  %v9580_v9 = vld [vmem:[#allocation117_spill] sm:$0xff] }
 0x448   :  { %4758 = vmatpush2.bf16.msra.mxu0 %v9535_v50  ;;  %v9581_v50 = vld [vmem:[#allocation118_spill] sm:$0xff] }
 0x449   :  { %4759 = vmatprep.subr.bf16.mxu0 %v9536_v21  ;;  %v9582_v21 = vld [vmem:[#allocation119_spill] sm:$0xff] }
 0x44a   :  { %4719 = vmatpush2.bf16.msra.mxu1 %v9537_v51  ;;  %v9583_v51 = vld [vmem:[#allocation120_spill] sm:$0xff] }
 0x44b   :  { %4720 = vmatprep.subr.bf16.mxu1 %v9538_v52  ;;  %v9584_v52 = vld [vmem:[#allocation121_spill] sm:$0xff] }
 0x44c   :  { %4760 = vmatpush2.bf16.msra.mxu0 %v9539_v22  ;;  %v9585_v22 = vld [vmem:[#allocation122_spill] sm:$0xff] }
 0x44d   :  { %4761 = vmatprep.subr.bf16.mxu0 %v9540_v54  ;;  %v9586_v54 = vld [vmem:[#allocation123_spill] sm:$0xff] }
 0x44e   :  { %4721 = vmatpush2.bf16.msra.mxu1 %v9541_v55  ;;  %v9587_v55 = vld [vmem:[#allocation124_spill] sm:$0xff] }
 0x44f   :  { %4772 = vmatprep.subr.bf16.mxu1 %v9542_v57  ;;  %v9588_v57 = vld [vmem:[#allocation125_spill] sm:$0xff] }
 0x450   :  { %4762 = vmatpush2.bf16.msra.mxu0 %v9543_v62  ;;  %v9589_v62 = vld [vmem:[#allocation126_spill] sm:$0xff] }
 0x451   :  { %v4420_v2 = vpop.f32.mrf.mxu1  ;;  %4723 = vmatmul.mubr.bf16.vlgmr.msra.gmra.mxu1 %v9544_v4  ;;  %4813 = vmatprep.subr.bf16.mxu0 %v9545_v6  ;;  %v9591_v4 = vld [vmem:[#allocation128_spill] sm:$0xff]  ;;  %v9592_v6 = vld [vmem:[#allocation129_spill] sm:$0xff] }
 0x452   :  { %v4421_v58 = vadd.f32 %v4420_v2, %v8460_v53  ;;  %4773 = vmatpush1.bf16.msra.mxu1 %v9546_v14  ;;  %4804 = vmatprep.mubr.bf16.mxu1 %v9547_v16  ;;  %v9590_v2 = vld [vmem:[#allocation127_spill] sm:$0xff]  ;;  %v9595_v16 = vld [vmem:[#allocation132_spill] sm:$0xff] }
 0x453   :  { %v4422_v24 = vpop.f32.mrf.mxu1  ;;  %v4461_v18 = vpop.f32.mrf.mxu0  ;;  %4764 = vmatmul.mubr.bf16.vlgmr.msra.gmra.mxu0 %v9548_v60  ;;  %4774 = vmatprep.subr.bf16.mxu1 %v9549_v23  ;;  %v9594_v14 = vld [vmem:[#allocation131_spill] sm:$0xff]  ;;  %v9597_v60 = vld [vmem:[#allocation134_spill] sm:$0xff] }
 0x454   :  { %v4423_v26 = vadd.f32 %v4422_v24, %v8465_v56  ;;  %v8534_v27 = vadd.f32 %v4461_v18, %v4421_v58  ;;  %4814 = vmatpush1.bf16.msra.mxu0 %v9550_v61  ;;  %4845 = vmatprep.mubr.bf16.mxu0 %v8394_v37  ;;  %v9557_v37 = vld [vmem:[#allocation94_spill] sm:$0xff]  ;;  %v4858_v24 = vld [vmem:[#allocation2] sm:$0xff]  ;;  %v9598_v23 = vld [vmem:[#allocation135_spill] sm:$0xff] }
 0x455   :  { %v4424_v30 = vpop.f32.mrf.mxu1  ;;  %v4463_v53 = vpop.f32.mrf.mxu0  ;;  %4815 = vmatprep.subr.bf16.mxu0 %v9551_v31  ;;  %v9593_v58 = vld [vmem:[#allocation130_spill] sm:$0xff]  ;;  %v9596_v18 = vld [vmem:[#allocation133_spill] sm:$0xff]  ;;  %v9599_v61 = vld [vmem:[#allocation136_spill] sm:$0xff] }
 0x456   :  { %v8539_v63 = vadd.f32 %v4463_v53, %v4423_v26  ;;  %4775 = vmatpush1.bf16.msra.mxu1 %v9552_v43  ;;  %v4860_v26 = vcombine.high %v4858_v24, %v4858_v24  ;;  %v9600_v30 = vld [vmem:[#allocation137_spill] sm:$0xff]  ;;  %v9602_v43 = vld [vmem:[#allocation138_spill] sm:$0xff] }
 0x457   :  { %v4425_v39 = vpop.f32.mrf.mxu1  ;;  %v4465_v1 = vpop.f32.mrf.mxu0  ;;  %4776 = vmatprep.subr.bf16.mxu1 %v9553_v5  ;;  %v9601_v53 = vld [vmem:[#allocation29_spill] sm:$0xff]  ;;  %v9604_v5 = vld [vmem:[#allocation140_spill] sm:$0xff] }
 0x458   :  { %4816 = vmatpush1.bf16.msra.mxu0 %v9554_v10  ;;  %v8591_v31 = vrot.slane %v4858_v24, %v9601_v53  ;;  %v9603_v39 = vld [vmem:[#allocation139_spill] sm:$0xff]  ;;  %v8596_v1 = vrot.slane %v4860_v26, %v9601_v53  ;;  %v9605_v10 = vld [vmem:[#allocation141_spill] sm:$0xff]  ;;  %7175 = vtanh.f32 %v8539_v63 }
 0x459   :  { %v4466_v56 = vpop.f32.mrf.mxu0  ;;  %4817 = vmatprep.subr.bf16.mxu0 %v9555_v12  ;;  %v9606_v12 = vld [vmem:[#allocation142_spill] sm:$0xff]  ;;  %v8689_v26 = vld [vmem:[#allocation11 + $0x114] ss:$8 sps:$4 sm:$0xff]   ;;  %v8698_v53 = vld [vmem:[#allocation11 + $0x110] ss:$8 sps:$4 sm:$0xff]   ;;  %7177 = vtanh.f32 %v8534_v27 }
 0x45a   :  { %4777 = vmatpush1.bf16.msra.mxu1 %v9556_v8  ;;  %v4875_v56 = vcombine.high %v8591_v31, %v8591_v31  ;;  %v8603_v8 = vld [vmem:[#allocation11 + $0x74] ss:$8 sps:$4 sm:$0xff]   ;;  %v8677_v24 = vld [vmem:[#allocation11 + $0x124] ss:$8 sps:$4 sm:$0xff]   ;;  %9625 = vst [vmem:[#allocation42_spill] sm:$0xff] %v8689_v26  ;;  %9627 = vst [vmem:[#allocation44_spill] sm:$0xff] %v8698_v53 }
 0x45b   :  { %4778 = vmatprep.subr.bf16.mxu1 %v9557_v37  ;;  %v9607_v37 = vld [vmem:[#allocation143_spill] sm:$0xff]  ;;  %9623 = vst [vmem:[#allocation40_spill] sm:$0xff] %v8677_v24 }
 0x45c   :  { %4818 = vmatpush1.bf16.msra.mxu0 %v9558_v15  ;;  %v4876_v15 = vcombine.high %v8596_v1, %v8596_v1  ;;  %v8792_v63 = vld [vmem:[#allocation11 + $0x84] ss:$8 sps:$4 sm:$0xff]  }
 0x45d   :  { %4819 = vmatprep.subr.bf16.mxu0 %v9559_v59  ;;  %v9608_v59 = vld [vmem:[#allocation144_spill] sm:$0xff]  ;;  %9658 = vst [vmem:[#allocation75_spill] sm:$0xff] %v8792_v63  ;;  %v8919_v27 = vld [vmem:[%s9145_s12 + $0x10] sm:$0xff]  }
 0x45e   :  { %4779 = vmatpush1.bf16.msra.mxu1 %v9560_v17  ;;  %v8609_v17 = vld [vmem:[#allocation11 + $0x174] ss:$8 sps:$4 sm:$0xff]  }
 0x45f   :  { %4780 = vmatprep.subr.bf16.mxu1 %v9561_v19  ;;  %9609 = vst [vmem:[#allocation30_spill] sm:$0xff] %v8609_v17  ;;  %v9610_v19 = vld [vmem:[#allocation145_spill] sm:$0xff] }
 0x460   :  { %4820 = vmatpush1.bf16.msra.mxu0 %v9562_v28  ;;  %v8612_v28 = vld [vmem:[#allocation11 + $0x70] ss:$8 sps:$4 sm:$0xff]  }
 0x461   :  { %4821 = vmatprep.subr.bf16.mxu0 %v9563_v41  ;;  %v4882_v41 = vpack.c.bf16 %v4875_v56, %v4875_v56  ;;  %v8713_v56 = vld [vmem:[#allocation11 + $0x1f4] ss:$8 sps:$4 sm:$0xff]  }
 0x462   :  { %4781 = vmatpush1.bf16.msra.mxu1 %v9564_v11  ;;  %v8615_v11 = vld [vmem:[#allocation11 + $0x64] ss:$8 sps:$4 sm:$0xff]   ;;  %9632 = vst [vmem:[#allocation49_spill] sm:$0xff] %v8713_v56 }
 0x463   :  { %4782 = vmatprep.subr.bf16.mxu1 %v9565_v32  ;;  %v9611_v32 = vld [vmem:[#allocation146_spill] sm:$0xff] }
 0x464   :  { %4822 = vmatpush1.bf16.msra.mxu0 %v9566_v46  ;;  %v8618_v46 = vld [vmem:[#allocation11 + $0x170] ss:$8 sps:$4 sm:$0xff]  }
 0x465   :  { %4823 = vmatprep.subr.bf16.mxu0 %v9567_v40  ;;  %9612 = vst [vmem:[#allocation31_spill] sm:$0xff] %v8618_v46  ;;  %v4884_v40 = vpack.c.bf16 %v4876_v15, %v4876_v15  ;;  %v8722_v15 = vld [vmem:[#allocation11 + $0x1f0] ss:$8 sps:$4 sm:$0xff]  }
 0x466   :  { %4783 = vmatpush1.bf16.msra.mxu1 %v9568_v34  ;;  %9635 = vst [vmem:[#allocation52_spill] sm:$0xff] %v8722_v15 }
 0x467   :  { %4784 = vmatprep.subr.bf16.mxu1 %v9569_v25  ;;  %v8622_v25 = vld [vmem:[#allocation11 + $0x164] ss:$8 sps:$4 sm:$0xff]  }
 0x468   :  { %4824 = vmatpush1.bf16.msra.mxu0 %v9570_v13  ;;  %9613 = vst [vmem:[#allocation32_spill] sm:$0xff] %v8622_v25  ;;  %v9614_v13 = vld [vmem:[#allocation147_spill] sm:$0xff] }
 0x469   :  { %4825 = vmatprep.subr.bf16.mxu0 %v9571_v49 }
 0x46a   :  { %4785 = vmatpush1.bf16.msra.mxu1 %v9572_v42  ;;  %v8626_v42 = vld [vmem:[#allocation11 + $0x60] ss:$8 sps:$4 sm:$0xff]  }
 0x46b   :  { %4786 = vmatprep.subr.bf16.mxu1 %v9573_v20 }
 0x46c   :  { %4826 = vmatpush1.bf16.msra.mxu0 %v9574_v3 }
 0x46d   :  { %4827 = vmatprep.subr.bf16.mxu0 %v9575_v36  ;;  %v8630_v36 = vld [vmem:[#allocation11 + $0x54] ss:$8 sps:$4 sm:$0xff]  }
 0x46e   :  { %4787 = vmatpush1.bf16.msra.mxu1 %v9576_v7 }
 0x46f   :  { %4788 = vmatprep.subr.bf16.mxu1 %v9577_v45 }
 0x470   :  { %4828 = vmatpush1.bf16.msra.mxu0 %v9578_v33  ;;  %v8636_v33 = vld [vmem:[#allocation11 + $0x160] ss:$8 sps:$4 sm:$0xff]  }
 0x471   :  { %4829 = vmatprep.subr.bf16.mxu0 %v9579_v48  ;;  %9616 = vst [vmem:[#allocation33_spill] sm:$0xff] %v8636_v33 }
 0x472   :  { %4789 = vmatpush2.bf16.msra.mxu1 %v9580_v9 }
 0x473   :  { %4790 = vmatprep.subr.bf16.mxu1 %v9581_v50  ;;  %v8639_v50 = vld [vmem:[#allocation11 + $0x154] ss:$8 sps:$4 sm:$0xff]  }
 0x474   :  { %4830 = vmatpush2.bf16.msra.mxu0 %v9582_v21  ;;  %9617 = vst [vmem:[#allocation34_spill] sm:$0xff] %v8639_v50  ;;  %v8644_v21 = vld [vmem:[#allocation11 + $0x50] ss:$8 sps:$4 sm:$0xff]  }
 0x475   :  { %4831 = vmatprep.subr.bf16.mxu0 %v9583_v51 }
 0x476   :  { %4791 = vmatpush2.bf16.msra.mxu1 %v9584_v52 }
 0x477   :  { %4792 = vmatprep.subr.bf16.mxu1 %v9585_v22  ;;  %v8647_v22 = vld [vmem:[#allocation11 + $0x44] ss:$8 sps:$4 sm:$0xff]  }
 0x478   :  { %4832 = vmatpush2.bf16.msra.mxu0 %v9586_v54  ;;  %v8650_v54 = vld [vmem:[#allocation11 + $0x150] ss:$8 sps:$4 sm:$0xff]  }
 0x479   :  { %4833 = vmatprep.subr.bf16.mxu0 %v9587_v55  ;;  %9618 = vst [vmem:[#allocation35_spill] sm:$0xff] %v8650_v54 }
 0x47a   :  { %4793 = vmatpush2.bf16.msra.mxu1 %v9588_v57  ;;  %v8653_v57 = vld [vmem:[#allocation11 + $0x144] ss:$8 sps:$4 sm:$0xff]  }
 0x47b   :  { %4794 = vmatprep.subr.bf16.mxu1 %v9589_v62  ;;  %9619 = vst [vmem:[#allocation36_spill] sm:$0xff] %v8653_v57  ;;  %v8656_v62 = vld [vmem:[#allocation11 + $0x40] ss:$8 sps:$4 sm:$0xff]  }
 0x47c   :  { %4834 = vmatpush2.bf16.msra.mxu0 %v9590_v2  ;;  %v8659_v2 = vld [vmem:[#allocation11 + $0x34] ss:$8 sps:$4 sm:$0xff]  }
 0x47d   :  { %4835 = vmatprep.subr.bf16.mxu0 %v9591_v4  ;;  %v8662_v4 = vld [vmem:[#allocation11 + $0x140] ss:$8 sps:$4 sm:$0xff]  }
 0x47e   :  { %4795 = vmatpush2.bf16.msra.mxu1 %v9592_v6  ;;  %9620 = vst [vmem:[#allocation37_spill] sm:$0xff] %v8662_v4  ;;  %v8665_v6 = vld [vmem:[#allocation11 + $0x134] ss:$8 sps:$4 sm:$0xff]  }
 0x47f   :  { %4796 = vmatprep.subr.bf16.mxu1 %v9593_v58  ;;  %9621 = vst [vmem:[#allocation38_spill] sm:$0xff] %v8665_v6  ;;  %v8668_v58 = vld [vmem:[#allocation11 + $0x30] ss:$8 sps:$4 sm:$0xff]  }
 0x480   :  { %4836 = vmatpush2.bf16.msra.mxu0 %v9594_v14  ;;  %v8671_v14 = vld [vmem:[#allocation11 + $0x24] ss:$8 sps:$4 sm:$0xff]  }
 0x481   :  { %4837 = vmatprep.subr.bf16.mxu0 %v9595_v16  ;;  %v8674_v16 = vld [vmem:[#allocation11 + $0x130] ss:$8 sps:$4 sm:$0xff]  }
 0x482   :  { %4797 = vmatpush2.bf16.msra.mxu1 %v9596_v18  ;;  %9622 = vst [vmem:[#allocation39_spill] sm:$0xff] %v8674_v16  ;;  %v8680_v18 = vld [vmem:[#allocation11 + $0x20] ss:$8 sps:$4 sm:$0xff]  }
 0x483   :  { %4798 = vmatprep.subr.bf16.mxu1 %v9597_v60  ;;  %v8683_v60 = vld [vmem:[#allocation11 + $0x14] ss:$8 sps:$4 sm:$0xff]  }
 0x484   :  { %4838 = vmatpush2.bf16.msra.mxu0 %v9598_v23  ;;  %v8686_v23 = vld [vmem:[#allocation11 + $0x120] ss:$8 sps:$4 sm:$0xff]  }
 0x485   :  { %4839 = vmatprep.subr.bf16.mxu0 %v9599_v61  ;;  %9624 = vst [vmem:[#allocation41_spill] sm:$0xff] %v8686_v23  ;;  %v8692_v61 = vld [vmem:[#allocation11 + $0x10] ss:$8 sps:$4 sm:$0xff]  }
 0x486   :  { %4799 = vmatpush2.bf16.msra.mxu1 %v9600_v30  ;;  %v8695_v30 = vld [vmem:[#allocation11 + $0x4] ss:$8 sps:$4 sm:$0xff]  }
 0x487   :  { %4800 = vmatprep.subr.bf16.mxu1 %v9602_v43  ;;  %9626 = vst [vmem:[#allocation43_spill] sm:$0xff] %v8695_v30  ;;  %v8701_v43 = vld [vmem:[#allocation11 + $0x104] ss:$8 sps:$4 sm:$0xff]  }
 0x488   :  { %4840 = vmatpush2.bf16.msra.mxu0 %v9603_v39  ;;  %9628 = vst [vmem:[#allocation45_spill] sm:$0xff] %v8701_v43  ;;  %v8704_v39 = vld [vmem:[#allocation11] ss:$8 sps:$4 sm:$0xff]  }
 0x489   :  { %4841 = vmatprep.subr.bf16.mxu0 %v9604_v5  ;;  %9629 = vst [vmem:[#allocation46_spill] sm:$0xff] %v8704_v39  ;;  %v8707_v5 = vld [vmem:[#allocation11 + $0xf4] ss:$8 sps:$4 sm:$0xff]  }
 0x48a   :  { %4801 = vmatpush2.bf16.msra.mxu1 %v9605_v10  ;;  %9630 = vst [vmem:[#allocation47_spill] sm:$0xff] %v8707_v5  ;;  %v8710_v10 = vld [vmem:[#allocation11 + $0x100] ss:$8 sps:$4 sm:$0xff]  }
 0x48b   :  { %4802 = vmatprep.subr.bf16.mxu1 %v9606_v12  ;;  %9631 = vst [vmem:[#allocation48_spill] sm:$0xff] %v8710_v10  ;;  %v8716_v12 = vld [vmem:[#allocation11 + $0xf0] ss:$8 sps:$4 sm:$0xff]  }
 0x48c   :  { %4842 = vmatpush2.bf16.msra.mxu0 %v9607_v37  ;;  %9633 = vst [vmem:[#allocation50_spill] sm:$0xff] %v8716_v12  ;;  %v8719_v37 = vld [vmem:[#allocation11 + $0xe4] ss:$8 sps:$4 sm:$0xff]  }
 0x48d   :  { %4843 = vmatprep.subr.bf16.mxu0 %v9608_v59  ;;  %9634 = vst [vmem:[#allocation51_spill] sm:$0xff] %v8719_v37  ;;  %v8725_v59 = vld [vmem:[#allocation11 + $0x1e4] ss:$8 sps:$4 sm:$0xff]  }
 0x48e   :  { %4803 = vmatpush2.bf16.msra.mxu1 %v9610_v19  ;;  %9636 = vst [vmem:[#allocation53_spill] sm:$0xff] %v8725_v59  ;;  %v8728_v19 = vld [vmem:[#allocation11 + $0xe0] ss:$8 sps:$4 sm:$0xff]  }
 0x48f   :  { %5281 = vmatprep.subr.bf16.mxu1 %v8603_v8  ;;  %9637 = vst [vmem:[#allocation54_spill] sm:$0xff] %v8728_v19 }
 0x490   :  { %4844 = vmatpush2.bf16.msra.mxu0 %v9611_v32  ;;  %v8734_v32 = vld [vmem:[#allocation11 + $0x1e0] ss:$8 sps:$4 sm:$0xff]  }
 0x491   :  { %v4560_v34 = vpop.f32.mrf.mxu1  ;;  %4805 = vmatmul.mubr.bf16.vlgmr.msra.gmra.mxu1 %v8435_v38  ;;  %5322 = vmatprep.subr.bf16.mxu0 %v8609_v17  ;;  %v9615_v38 = vld [vmem:[#allocation148_spill] sm:$0xff]  ;;  %9639 = vst [vmem:[#allocation56_spill] sm:$0xff] %v8734_v32 }
 0x492   :  { %v4561_v49 = vadd.f32 %v4560_v34, %v9614_v13  ;;  %5282 = vmatpush1.bf16.msra.mxu1 %v8612_v28  ;;  %5313 = vmatprep.mubr.bf16.mxu1 %v4882_v41  ;;  %v8731_v41 = vld [vmem:[#allocation11 + $0xd4] ss:$8 sps:$4 sm:$0xff]   ;;  %v8740_v34 = vld [vmem:[#allocation11 + $0xd0] ss:$8 sps:$4 sm:$0xff]   ;;  %v8743_v13 = vld [vmem:[#allocation11 + $0xc4] ss:$8 sps:$4 sm:$0xff]  }
 0x493   :  { %v4562_v20 = vpop.f32.mrf.mxu1  ;;  %v4601_v3 = vpop.f32.mrf.mxu0  ;;  %4846 = vmatmul.mubr.bf16.vlgmr.msra.gmra.mxu0 %v8445_v44  ;;  %5283 = vmatprep.subr.bf16.mxu1 %v8615_v11  ;;  %9638 = vst [vmem:[#allocation55_spill] sm:$0xff] %v8731_v41  ;;  %9641 = vst [vmem:[#allocation58_spill] sm:$0xff] %v8740_v34 }
 0x494   :  { %v4563_v7 = vadd.f32 %v4562_v20, %v9615_v38  ;;  %v8633_v45 = vadd.f32 %v4601_v3, %v4561_v49  ;;  %5323 = vmatpush1.bf16.msra.mxu0 %v8618_v46  ;;  %5354 = vmatprep.mubr.bf16.mxu0 %v4884_v40  ;;  %v8737_v40 = vld [vmem:[#allocation11 + $0x1d4] ss:$8 sps:$4 sm:$0xff]   ;;  %9642 = vst [vmem:[#allocation59_spill] sm:$0xff] %v8743_v13  ;;  %v8746_v49 = vld [vmem:[#allocation11 + $0x1d0] ss:$8 sps:$4 sm:$0xff]  }
 0x495   :  { %v4564_v48 = vpop.f32.mrf.mxu1  ;;  %v4603_v9 = vpop.f32.mrf.mxu0  ;;  %5324 = vmatprep.subr.bf16.mxu0 %v8622_v25  ;;  %9640 = vst [vmem:[#allocation57_spill] sm:$0xff] %v8737_v40  ;;  %9643 = vst [vmem:[#allocation60_spill] sm:$0xff] %v8746_v49  ;;  %v8749_v20 = vld [vmem:[#allocation11 + $0x1c4] ss:$8 sps:$4 sm:$0xff]   ;;  %v8752_v3 = vld [vmem:[#allocation11 + $0xc0] ss:$8 sps:$4 sm:$0xff]  }
 0x496   :  { %v8641_v44 = vadd.f32 %v4603_v9, %v4563_v7  ;;  %5284 = vmatpush1.bf16.msra.mxu1 %v8626_v42  ;;  %9644 = vst [vmem:[#allocation61_spill] sm:$0xff] %v8749_v20  ;;  %9645 = vst [vmem:[#allocation62_spill] sm:$0xff] %v8752_v3  ;;  %v8755_v38 = vld [vmem:[#allocation11 + $0xb4] ss:$8 sps:$4 sm:$0xff]   ;;  %v8758_v7 = vld [vmem:[#allocation11 + $0x1c0] ss:$8 sps:$4 sm:$0xff]  }
 0x497   :  { %v4565_v51 = vpop.f32.mrf.mxu1  ;;  %v4605_v52 = vpop.f32.mrf.mxu0  ;;  %5285 = vmatprep.subr.bf16.mxu1 %v8630_v36  ;;  %9646 = vst [vmem:[#allocation63_spill] sm:$0xff] %v8755_v38  ;;  %9647 = vst [vmem:[#allocation64_spill] sm:$0xff] %v8758_v7  ;;  %v8761_v48 = vld [vmem:[#allocation11 + $0x1b4] ss:$8 sps:$4 sm:$0xff]   ;;  %v8764_v9 = vld [vmem:[#allocation11 + $0xb0] ss:$8 sps:$4 sm:$0xff]  }
 0x498   :  { %5325 = vmatpush1.bf16.msra.mxu0 %v8636_v33  ;;  %9648 = vst [vmem:[#allocation65_spill] sm:$0xff] %v8761_v48  ;;  %9649 = vst [vmem:[#allocation66_spill] sm:$0xff] %v8764_v9  ;;  %v8767_v51 = vld [vmem:[#allocation11 + $0xa4] ss:$8 sps:$4 sm:$0xff]   ;;  %v8770_v52 = vld [vmem:[#allocation11 + $0x1b0] ss:$8 sps:$4 sm:$0xff]  }
 0x499   :  { %v4606_v55 = vpop.f32.mrf.mxu0  ;;  %5326 = vmatprep.subr.bf16.mxu0 %v8639_v50  ;;  %9650 = vst [vmem:[#allocation67_spill] sm:$0xff] %v8767_v51  ;;  %9651 = vst [vmem:[#allocation68_spill] sm:$0xff] %v8770_v52 }
 0x49a   :  { %5286 = vmatpush1.bf16.msra.mxu1 %v8644_v21  ;;  %v8773_v55 = vld [vmem:[#allocation11 + $0x1a4] ss:$8 sps:$4 sm:$0xff]  }
 0x49b   :  { %5287 = vmatprep.subr.bf16.mxu1 %v8647_v22  ;;  %9652 = vst [vmem:[#allocation69_spill] sm:$0xff] %v8773_v55 }
 0x49c   :  { %5327 = vmatpush1.bf16.msra.mxu0 %v8650_v54 }
 0x49d   :  { %5328 = vmatprep.subr.bf16.mxu0 %v8653_v57 }
 0x49e   :  { %5288 = vmatpush1.bf16.msra.mxu1 %v8656_v62 }
 0x49f   :  { %5289 = vmatprep.subr.bf16.mxu1 %v8659_v2 }
 0x4a0   :  { %5329 = vmatpush1.bf16.msra.mxu0 %v8662_v4 }
 0x4a1   :  { %5330 = vmatprep.subr.bf16.mxu0 %v8665_v6 }
 0x4a2   :  { %5290 = vmatpush1.bf16.msra.mxu1 %v8668_v58 }
 0x4a3   :  { %5291 = vmatprep.subr.bf16.mxu1 %v8671_v14 }
 0x4a4   :  { %5331 = vmatpush1.bf16.msra.mxu0 %v8674_v16 }
 0x4a5   :  { %5332 = vmatprep.subr.bf16.mxu0 %v8677_v24 }
 0x4a6   :  { %5292 = vmatpush1.bf16.msra.mxu1 %v8680_v18 }
 0x4a7   :  { %5293 = vmatprep.subr.bf16.mxu1 %v8683_v60 }
 0x4a8   :  { %5333 = vmatpush1.bf16.msra.mxu0 %v8686_v23 }
 0x4a9   :  { %5334 = vmatprep.subr.bf16.mxu0 %v8689_v26 }
 0x4aa   :  { %5294 = vmatpush1.bf16.msra.mxu1 %v8692_v61 }
 0x4ab   :  { %5295 = vmatprep.subr.bf16.mxu1 %v8695_v30 }
 0x4ac   :  { %5335 = vmatpush1.bf16.msra.mxu0 %v8698_v53 }
 0x4ad   :  { %5336 = vmatprep.subr.bf16.mxu0 %v8701_v43 }
 0x4ae   :  { %5296 = vmatpush1.bf16.msra.mxu1 %v8704_v39 }
 0x4af   :  { %5297 = vmatprep.subr.bf16.mxu1 %v8707_v5 }
 0x4b0   :  { %5337 = vmatpush1.bf16.msra.mxu0 %v8710_v10 }
 0x4b1   :  { %5338 = vmatprep.subr.bf16.mxu0 %v8713_v56 }
 0x4b2   :  { %5298 = vmatpush2.bf16.msra.mxu1 %v8716_v12 }
 0x4b3   :  { %5299 = vmatprep.subr.bf16.mxu1 %v8719_v37 }
 0x4b4   :  { %5339 = vmatpush2.bf16.msra.mxu0 %v8722_v15 }
 0x4b5   :  { %5340 = vmatprep.subr.bf16.mxu0 %v8725_v59 }
 0x4b6   :  { %5300 = vmatpush2.bf16.msra.mxu1 %v8728_v19  ;;  %v4883_v19 = vpack.c.bf16 %v8596_v1, %v8596_v1 }
 0x4b7   :  { %5301 = vmatprep.subr.bf16.mxu1 %v8731_v41  ;;  %v7176_v41 = vpop.eup %7175 }
 0x4b8   :  { %5341 = vmatpush2.bf16.msra.mxu0 %v8734_v32  ;;  %v5545_v37 = vpack.c.bf16 %v7176_v41, %v7176_v41  ;;  %v8862_v41 = vld [vmem:[%s9145_s12 + $0x28] sm:$0xff]  }
 0x4b9   :  { %5342 = vmatprep.subr.bf16.mxu0 %v8737_v40 }
 0x4ba   :  { %5302 = vmatpush2.bf16.msra.mxu1 %v8740_v34  ;;  %v8801_v34 = vld [vmem:[#allocation11 + $0x80] ss:$8 sps:$4 sm:$0xff]  }
 0x4bb   :  { %5303 = vmatprep.subr.bf16.mxu1 %v8743_v13  ;;  %v8789_v13 = vld [vmem:[#allocation11 + $0x90] ss:$8 sps:$4 sm:$0xff]   ;;  %9661 = vst [vmem:[#allocation78_spill] sm:$0xff] %v8801_v34 }
 0x4bc   :  { %5343 = vmatpush2.bf16.msra.mxu0 %v8746_v49  ;;  %9657 = vst [vmem:[#allocation74_spill] sm:$0xff] %v8789_v13 }
 0x4bd   :  { %5344 = vmatprep.subr.bf16.mxu0 %v8749_v20 }
 0x4be   :  { %5304 = vmatpush2.bf16.msra.mxu1 %v8752_v3  ;;  %v8786_v3 = vld [vmem:[#allocation11 + $0x194] ss:$8 sps:$4 sm:$0xff]  }
 0x4bf   :  { %5305 = vmatprep.subr.bf16.mxu1 %v8755_v38  ;;  %v8783_v38 = vld [vmem:[#allocation11 + $0x1a0] ss:$8 sps:$4 sm:$0xff]   ;;  %9656 = vst [vmem:[#allocation73_spill] sm:$0xff] %v8786_v3 }
 0x4c0   :  { %5345 = vmatpush2.bf16.msra.mxu0 %v8758_v7  ;;  %9655 = vst [vmem:[#allocation72_spill] sm:$0xff] %v8783_v38 }
 0x4c1   :  { %5346 = vmatprep.subr.bf16.mxu0 %v8761_v48 }
 0x4c2   :  { %5306 = vmatpush2.bf16.msra.mxu1 %v8764_v9  ;;  %v8798_v9 = vld [vmem:[#allocation11 + $0x184] ss:$8 sps:$4 sm:$0xff]  }
 0x4c3   :  { %5307 = vmatprep.subr.bf16.mxu1 %v8767_v51  ;;  %v8795_v51 = vld [vmem:[#allocation11 + $0x190] ss:$8 sps:$4 sm:$0xff]   ;;  %9660 = vst [vmem:[#allocation77_spill] sm:$0xff] %v8798_v9 }
 0x4c4   :  { %5347 = vmatpush2.bf16.msra.mxu0 %v8770_v52  ;;  %9659 = vst [vmem:[#allocation76_spill] sm:$0xff] %v8795_v51 }
 0x4c5   :  { %5348 = vmatprep.subr.bf16.mxu0 %v8773_v55 }
 0x4c6   :  { %5308 = vmatpush2.bf16.msra.mxu1 %v8777_v35  ;;  %v8805_v35 = vld [vmem:[#allocation11 + $0x180] ss:$8 sps:$4 sm:$0xff]  }
 0x4c7   :  { %5309 = vmatprep.subr.bf16.mxu1 %v8780_v29  ;;  %9662 = vst [vmem:[#allocation79_spill] sm:$0xff] %v8805_v35  ;;  %v4881_v29 = vpack.c.bf16 %v8591_v31, %v8591_v31 }
 0x4c8   :  { %5349 = vmatpush2.bf16.msra.mxu0 %v8783_v38 }
 0x4c9   :  { %5350 = vmatprep.subr.bf16.mxu0 %v8786_v3 }
 0x4ca   :  { %5310 = vmatpush2.bf16.msra.mxu1 %v8789_v13 }
 0x4cb   :  { %5311 = vmatprep.subr.bf16.mxu1 %v8792_v63 }
 0x4cc   :  { %5351 = vmatpush2.bf16.msra.mxu0 %v8795_v51 }
 0x4cd   :  { %5352 = vmatprep.subr.bf16.mxu0 %v8798_v9 }
 0x4ce   :  { %5312 = vmatpush2.bf16.msra.mxu1 %v8801_v34 }
 0x4d0   :  { %5353 = vmatpush2.bf16.msra.mxu0 %v8805_v35 }
 0x4d1   :  { %v4642_v13 = vpop.f32.mrf.mxu1  ;;  %5314 = vmatmul.mubr.bf16.vlgmr.msra.gmra.mxu1 %v4881_v29  ;;  %5587 = vmatprep.subr.bf16.mxu0 %v8609_v17 }
 0x4d2   :  { %v4643_v63 = vadd.f32 %v4642_v13, %v8633_v45  ;;  %v8830_v45 = vld [vmem:[%s9145_s12 + $0x78] sm:$0xff]   ;;  %v8869_v13 = vld [vmem:[%s9145_s12 + $0x60] sm:$0xff]  }
 0x4d3   :  { %v4644_v12 = vpop.f32.mrf.mxu1  ;;  %v4683_v5 = vpop.f32.mrf.mxu0  ;;  %5355 = vmatmul.mubr.bf16.vlgmr.msra.gmra.mxu0 %v4883_v19  ;;  %6528 = vmatprep.subr.bf16.mxu1 %v8830_v45  ;;  %v8855_v19 = vld [vmem:[%s9145_s12 + $0x68] sm:$0xff]  }
 0x4d4   :  { %v8816_v39 = vadd.f32 %v4683_v5, %v4643_v63  ;;  %5588 = vmatpush1.bf16.msra.mxu0 %v8618_v46  ;;  %5619 = vmatprep.mubr.bf16.mxu0 %v5545_v37  ;;  %v8840_v5 = vld [vmem:[%s9145_s12 + $0x70] sm:$0xff]   ;;  %v8876_v63 = vld [vmem:[%s9145_s12 + $0x20] sm:$0xff]  }
 0x4d5   :  { %v4646_v31 = vpop.f32.mrf.mxu1  ;;  %v4685_v34 = vpop.f32.mrf.mxu0  ;;  %5589 = vmatprep.subr.bf16.mxu0 %v8622_v25  ;;  %v8848_v37 = vld [vmem:[%s9145_s12 + $0x30] sm:$0xff]  }
 0x4d6   :  { %v8883_v31 = vld [vmem:[%s9145_s12 + $0x58] sm:$0xff]  }
 0x4d7   :  { %v4647_v1 = vpop.f32.mrf.mxu1  ;;  %v4687_v30 = vpop.f32.mrf.mxu0 }
 0x4d8   :  { %5590 = vmatpush1.bf16.msra.mxu0 %v8636_v33  ;;  %v8835_v30 = vld [vmem:[%s9145_s12 + $0x38] sm:$0xff]  }
 0x4d9   :  { %v4688_v29 = vpop.f32.mrf.mxu0  ;;  %5591 = vmatprep.subr.bf16.mxu0 %v8639_v50  ;;  %6529 = vmatpush3.bf16.msra.mxu1 %v8835_v30  ;;  %v8890_v1 = vld [vmem:[%s9145_s12 + $0x18] sm:$0xff]  }
 0x4da   :  { %6530 = vmatprep.subr.bf16.mxu1 %v8840_v5  ;;  %v8897_v29 = vld [vmem:[%s9145_s12 + $0x50] sm:$0xff]  }
 0x4dc   :  { %5592 = vmatpush1.bf16.msra.mxu0 %v8650_v54 }
 0x4dd   :  { %5593 = vmatprep.subr.bf16.mxu0 %v8653_v57  ;;  %6531 = vmatpush3.bf16.msra.mxu1 %v8848_v37 }
 0x4de   :  { %6532 = vmatprep.subr.bf16.mxu1 %v8855_v19 }
 0x4e0   :  { %5594 = vmatpush1.bf16.msra.mxu0 %v8662_v4 }
 0x4e1   :  { %5595 = vmatprep.subr.bf16.mxu0 %v8665_v6  ;;  %6533 = vmatpush3.bf16.msra.mxu1 %v8862_v41 }
 0x4e2   :  { %6534 = vmatprep.subr.bf16.mxu1 %v8869_v13 }
 0x4e4   :  { %5596 = vmatpush1.bf16.msra.mxu0 %v8674_v16 }
 0x4e5   :  { %5597 = vmatprep.subr.bf16.mxu0 %v8677_v24  ;;  %6535 = vmatpush3.bf16.msra.mxu1 %v8876_v63 }
 0x4e6   :  { %6536 = vmatprep.subr.bf16.mxu1 %v8883_v31 }
 0x4e8   :  { %5598 = vmatpush1.bf16.msra.mxu0 %v8686_v23 }
 0x4e9   :  { %5599 = vmatprep.subr.bf16.mxu0 %v8689_v26  ;;  %6537 = vmatpush3.bf16.msra.mxu1 %v8890_v1 }
 0x4ea   :  { %6538 = vmatprep.subr.bf16.mxu1 %v8897_v29 }
 0x4ec   :  { %5600 = vmatpush1.bf16.msra.mxu0 %v8698_v53  ;;  %v9683_v53 = vld [vmem:[#allocation78_spill] sm:$0xff] }
 0x4ed   :  { %5601 = vmatprep.subr.bf16.mxu0 %v8701_v43  ;;  %6539 = vmatpush3.bf16.msra.mxu1 %v8919_v27 }
 0x4f0   :  { %5602 = vmatpush1.bf16.msra.mxu0 %v8710_v10  ;;  %v9682_v10 = vld [vmem:[#allocation75_spill] sm:$0xff] }
 0x4f1   :  { %5603 = vmatprep.subr.bf16.mxu0 %v8713_v56  ;;  %v4645_v56 = vadd.f32 %v4644_v12, %v8641_v44  ;;  %v7178_v44 = vpop.eup %7177 }
 0x4f2   :  { %v5544_v12 = vpack.c.bf16 %v7178_v44, %v7178_v44  ;;  %v8933_v44 = vld [vmem:[%s9145_s12 + $0x8] sm:$0xff]  }
 0x4f3   :  { %9663 = vst [vmem:[#allocation80_spill] sm:$0xff] %v8933_v44 }
 0x4f4   :  { %5604 = vmatpush2.bf16.msra.mxu0 %v8722_v15  ;;  %v4686_v15 = vadd.f32 %v4685_v34, %v4645_v56 }
 0x4f5   :  { %5605 = vmatprep.subr.bf16.mxu0 %v8725_v59  ;;  %v9681_v59 = vld [vmem:[#allocation74_spill] sm:$0xff] }
 0x4f6   :  { %7179 = vtanh.f32 %v4686_v15 }
 0x4f7   :  { %7181 = vtanh.f32 %v8816_v39 }
 0x4f8   :  { %5606 = vmatpush2.bf16.msra.mxu0 %v8734_v32  ;;  %v9680_v32 = vld [vmem:[#allocation71_spill] sm:$0xff] }
 0x4f9   :  { %5607 = vmatprep.subr.bf16.mxu0 %v8737_v40  ;;  %v9679_v40 = vld [vmem:[#allocation70_spill] sm:$0xff] }
 0x4fc   :  { %5608 = vmatpush2.bf16.msra.mxu0 %v8746_v49  ;;  %v9678_v49 = vld [vmem:[#allocation67_spill] sm:$0xff] }
 0x4fd   :  { %5609 = vmatprep.subr.bf16.mxu0 %v8749_v20  ;;  %v9677_v20 = vld [vmem:[#allocation66_spill] sm:$0xff] }
 0x500   :  { %5610 = vmatpush2.bf16.msra.mxu0 %v8758_v7  ;;  %v9676_v7 = vld [vmem:[#allocation63_spill] sm:$0xff] }
 0x501   :  { %5611 = vmatprep.subr.bf16.mxu0 %v8761_v48  ;;  %v9675_v48 = vld [vmem:[#allocation62_spill] sm:$0xff] }
 0x503   :  { %v7180_v56 = vpop.eup %7179 }
 0x504   :  { %5612 = vmatpush2.bf16.msra.mxu0 %v8770_v52  ;;  %v7182_v43 = vpop.eup %7181 }
 0x505   :  { %5613 = vmatprep.subr.bf16.mxu0 %v8773_v55  ;;  %v5672_v26 = vpack.c.bf16 %v7182_v43, %v7182_v43 }
 0x508   :  { %5614 = vmatpush2.bf16.msra.mxu0 %v8783_v38 }
 0x509   :  { %5615 = vmatprep.subr.bf16.mxu0 %v8786_v3 }
 0x50c   :  { %5616 = vmatpush2.bf16.msra.mxu0 %v8795_v51  ;;  %v5673_v51 = vpack.c.bf16 %v7180_v56, %v7180_v56 }
 0x50d   :  { %5617 = vmatprep.subr.bf16.mxu0 %v8798_v9  ;;  %v8928_v9 = vld [vmem:[%s9145_s12 + $0x48] sm:$0xff]  }
 0x50e   :  { %6540 = vmatprep.subr.bf16.mxu1 %v8928_v9 }
 0x50f   :  { %6541 = vmatpush3.bf16.msra.mxu1 %v8933_v44 }
 0x510   :  { %5618 = vmatpush2.bf16.msra.mxu0 %v8805_v35 }
 0x511   :  { %v4724_v15 = vpop.f32.mrf.mxu1  ;;  %5676 = vmatprep.subr.bf16.mxu0 %v8603_v8 }
 0x512   :  { %v4725_v34 = vadd.f32 %v4724_v15, %v8440_v0 }
 0x513   :  { %v4726_v3 = vpop.f32.mrf.mxu1  ;;  %v4765_v38 = vpop.f32.mrf.mxu0  ;;  %5620 = vmatmul.mubr.bf16.vlgmr.msra.gmra.mxu0 %v5544_v12  ;;  %v8943_v12 = vld [vmem:[%s9145_s12 + $0x40] sm:$0xff]  }
 0x514   :  { %v4727_v35 = vadd.f32 %v4726_v3, %v8450_v47  ;;  %v4766_v55 = vadd.f32 %v4765_v38, %v4725_v34  ;;  %5677 = vmatpush1.bf16.msra.mxu0 %v8612_v28  ;;  %5708 = vmatprep.mubr.bf16.mxu0 %v5673_v51  ;;  %9664 = vst [vmem:[#allocation81_spill] sm:$0xff] %v8943_v12  ;;  %v8948_v3 = vld [vmem:[%s9145_s12] sm:$0xff]   ;;  %v9668_v51 = vld [vmem:[#allocation47_spill] sm:$0xff] }
 0x515   :  { %v4728_v0 = vpop.f32.mrf.mxu1  ;;  %v4767_v56 = vpop.f32.mrf.mxu0  ;;  %5678 = vmatprep.subr.bf16.mxu0 %v8615_v11  ;;  %9665 = vst [vmem:[#allocation82_spill] sm:$0xff] %v8948_v3  ;;  %6542 = vmatprep.subr.bf16.mxu1 %v8943_v12  ;;  %v9670_v34 = vld [vmem:[#allocation51_spill] sm:$0xff] }
 0x516   :  { %v4768_v15 = vadd.f32 %v4767_v56, %v4727_v35  ;;  %6543 = vmatpush3.bf16.msra.mxu1 %v8948_v3  ;;  %v9666_v35 = vld [vmem:[#allocation43_spill] sm:$0xff]  ;;  %v9671_v0 = vld [vmem:[#allocation54_spill] sm:$0xff] }
 0x517   :  { %v4729_v52 = vpop.f32.mrf.mxu1  ;;  %v4769_v47 = vpop.f32.mrf.mxu0  ;;  %5546 = vmatprep.subr.bf16.mxu1 %v8603_v8  ;;  %v9667_v8 = vld [vmem:[#allocation46_spill] sm:$0xff]  ;;  %v9672_v56 = vld [vmem:[#allocation55_spill] sm:$0xff] }
 0x518   :  { %5679 = vmatpush1.bf16.msra.mxu0 %v8626_v42  ;;  %v9669_v52 = vld [vmem:[#allocation50_spill] sm:$0xff] }
 0x519   :  { %v4770_v38 = vpop.f32.mrf.mxu0  ;;  %5680 = vmatprep.subr.bf16.mxu0 %v8630_v36  ;;  %v9673_v47 = vld [vmem:[#allocation58_spill] sm:$0xff] }
 0x51a   :  { %v9674_v38 = vld [vmem:[#allocation59_spill] sm:$0xff] }
 0x51c   :  { %5681 = vmatpush1.bf16.msra.mxu0 %v8644_v21 }
 0x51d   :  { %5682 = vmatprep.subr.bf16.mxu0 %v8647_v22 }
 0x520   :  { %5683 = vmatpush1.bf16.msra.mxu0 %v8656_v62 }
 0x521   :  { %5684 = vmatprep.subr.bf16.mxu0 %v8659_v2 }
 0x524   :  { %5685 = vmatpush1.bf16.msra.mxu0 %v8668_v58 }
 0x525   :  { %5686 = vmatprep.subr.bf16.mxu0 %v8671_v14 }
 0x528   :  { %5687 = vmatpush1.bf16.msra.mxu0 %v8680_v18 }
 0x529   :  { %5688 = vmatprep.subr.bf16.mxu0 %v8683_v60 }
 0x52c   :  { %5689 = vmatpush1.bf16.msra.mxu0 %v8692_v61 }
 0x52d   :  { %5690 = vmatprep.subr.bf16.mxu0 %v9666_v35 }
 0x530   :  { %5691 = vmatpush1.bf16.msra.mxu0 %v9667_v8 }
 0x531   :  { %5692 = vmatprep.subr.bf16.mxu0 %v9668_v51 }
 0x534   :  { %5693 = vmatpush2.bf16.msra.mxu0 %v9669_v52 }
 0x535   :  { %5694 = vmatprep.subr.bf16.mxu0 %v9670_v34 }
 0x538   :  { %5695 = vmatpush2.bf16.msra.mxu0 %v9671_v0 }
 0x539   :  { %5696 = vmatprep.subr.bf16.mxu0 %v9672_v56 }
 0x53c   :  { %5697 = vmatpush2.bf16.msra.mxu0 %v9673_v47 }
 0x53d   :  { %5698 = vmatprep.subr.bf16.mxu0 %v9674_v38 }
 0x540   :  { %5699 = vmatpush2.bf16.msra.mxu0 %v9675_v48 }
 0x541   :  { %5700 = vmatprep.subr.bf16.mxu0 %v9676_v7 }
 0x544   :  { %5701 = vmatpush2.bf16.msra.mxu0 %v9677_v20 }
 0x545   :  { %5702 = vmatprep.subr.bf16.mxu0 %v9678_v49 }
 0x548   :  { %5703 = vmatpush2.bf16.msra.mxu0 %v9679_v40 }
 0x549   :  { %5704 = vmatprep.subr.bf16.mxu0 %v9680_v32 }
 0x54c   :  { %5705 = vmatpush2.bf16.msra.mxu0 %v9681_v59 }
 0x54d   :  { %5706 = vmatprep.subr.bf16.mxu0 %v9682_v10 }
 0x550   :  { %5707 = vmatpush2.bf16.msra.mxu0 %v9683_v53 }
 0x551   :  { %v4806_v23 = vpop.f32.mrf.mxu1  ;;  %6572 = vmatprep.subr.bf16.mxu0 %v8830_v45 }
 0x552   :  { %v4807_v39 = vadd.f32 %v4806_v23, %v4766_v55 }
 0x553   :  { %v4808_v24 = vpop.f32.mrf.mxu1  ;;  %v4847_v16 = vpop.f32.mrf.mxu0  ;;  %5709 = vmatmul.mubr.bf16.vlgmr.msra.gmra.mxu0 %v5672_v26 }
 0x554   :  { %v4809_v6 = vadd.f32 %v4808_v24, %v4768_v15  ;;  %v8984_v4 = vadd.f32 %v4847_v16, %v4807_v39  ;;  %6573 = vmatpush3.bf16.msra.mxu0 %v8835_v30 }
 0x555   :  { %v4810_v57 = vpop.f32.mrf.mxu1  ;;  %v4849_v54 = vpop.f32.mrf.mxu0  ;;  %6574 = vmatprep.subr.bf16.mxu0 %v8840_v5 }
 0x556   :  { %9684 = vst [vmem:[#allocation83_spill] sm:$0xff] %v8984_v4  ;;  %v8988_v50 = vadd.f32 %v4849_v54, %v4809_v6  ;;  %v9687_v54 = vld [vmem:[#allocation27_spill] sm:$0xff]  ;;  %v9688_v6 = vld [vmem:[#allocation28_spill] sm:$0xff] }
 0x557   :  { %v4811_v33 = vpop.f32.mrf.mxu1  ;;  %v4851_v43 = vpop.f32.mrf.mxu0 }
 0x558   :  { %9685 = vst [vmem:[#allocation149_spill] sm:$0xff] %v8988_v50  ;;  %6575 = vmatpush3.bf16.msra.mxu0 %v8848_v37  ;;  %v9686_v33 = vld [vmem:[#allocation153_spill] sm:$0xff] }
 0x559   :  { %v4852_v25 = vpop.f32.mrf.mxu0  ;;  %6576 = vmatprep.subr.bf16.mxu0 %v8855_v19  ;;  %7183 = vtanh.f32 %v9686_v33 }
 0x55a   :  { %v4949_v25 = vld [vmem:[#allocation13] sm:$0x3] }
 0x55b   :  { %v9005_v57 = vrot.slane %v4949_v25, %v9687_v54  ;;  %v9008_v16 = vrot.slane %v4949_v25, %v9688_v6 }
 0x55c   :  { %6577 = vmatpush3.bf16.msra.mxu0 %v8862_v41 }
 0x55d   :  { %6578 = vmatprep.subr.bf16.mxu0 %v8869_v13 }
 0x560   :  { %6579 = vmatpush3.bf16.msra.mxu0 %v8876_v63 }
 0x561   :  { %6580 = vmatprep.subr.bf16.mxu0 %v8883_v31 }
 0x564   :  { %6581 = vmatpush3.bf16.msra.mxu0 %v8890_v1 }
 0x565   :  { %6582 = vmatprep.subr.bf16.mxu0 %v8897_v29 }
 0x566   :  { %v7184_v54 = vpop.eup %7183 }
 0x568   :  { %6583 = vmatpush3.bf16.msra.mxu0 %v8919_v27 }
 0x569   :  { %6584 = vmatprep.subr.bf16.mxu0 %v8928_v9 }
 0x56c   :  { %6585 = vmatpush3.bf16.msra.mxu0 %v8933_v44 }
 0x56d   :  { %6586 = vmatprep.subr.bf16.mxu0 %v8943_v12 }
 0x570   :  { %6587 = vmatpush3.bf16.msra.mxu0 %v8948_v3 }
 0x591   :  { %v5315_v24 = vpop.f32.mrf.mxu1 }
 0x592   :  { %v5316_v23 = vadd.f32 %v5315_v24, %v9005_v57  ;;  %v5543_v24 = vpack.c.bf16 %v7184_v54, %v7184_v54  ;;  %v9715_v54 = vld [vmem:[#allocation60_spill] sm:$0xff] }
 0x593   :  { %v5317_v26 = vpop.f32.mrf.mxu1  ;;  %v5356_v55 = vpop.f32.mrf.mxu0 }
 0x594   :  { %v5318_v15 = vadd.f32 %v5317_v26, %v9008_v16  ;;  %v5357_v39 = vadd.f32 %v5356_v55, %v5316_v23  ;;  %v9708_v23 = vld [vmem:[#allocation45_spill] sm:$0xff]  ;;  %v9709_v26 = vld [vmem:[#allocation48_spill] sm:$0xff] }
 0x595   :  { %v5319_v43 = vpop.f32.mrf.mxu1  ;;  %v5358_v4 = vpop.f32.mrf.mxu0  ;;  %v9710_v55 = vld [vmem:[#allocation49_spill] sm:$0xff] }
 0x596   :  { %v5359_v46 = vadd.f32 %v5358_v4, %v5318_v15  ;;  %v5363_v50 = vmax.f32 %v5357_v39, 0.0  ;;  %v9711_v15 = vld [vmem:[#allocation52_spill] sm:$0xff]  ;;  %v9712_v39 = vld [vmem:[#allocation53_spill] sm:$0xff] }
 0x597   :  { %v5320_v17 = vpop.f32.mrf.mxu1  ;;  %v5360_v33 = vpop.f32.mrf.mxu0  ;;  %v9713_v43 = vld [vmem:[#allocation56_spill] sm:$0xff] }
 0x598   :  { %v5364_v3 = vmax.f32 %v5359_v46, 0.0  ;;  %v5365_v6 = vpack.c.bf16 %v5363_v50, %v5363_v50  ;;  %v9689_v17 = vld [vmem:[#allocation152_spill] sm:$0xff]  ;;  %v9714_v33 = vld [vmem:[#allocation57_spill] sm:$0xff] }
 0x599   :  { %v5361_v12 = vpop.f32.mrf.mxu0  ;;  %7185 = vtanh.f32 %v9689_v17  ;;  %v9719_v17 = vld [vmem:[#allocation65_spill] sm:$0xff] }
 0x59a   :  { %v5366_v44 = vpack.c.bf16 %v5364_v3, %v5364_v3  ;;  %v5807_v25 = vcombine.low %v5363_v50, %v5364_v3  ;;  %v9697_v12 = vld [vmem:[#allocation33_spill] sm:$0xff]  ;;  %v9698_v3 = vld [vmem:[#allocation34_spill] sm:$0xff] }
 0x59c   :  { %6526 = vst.sshfl [vmem:[#allocation17] sm:$0x33 pattern:$0x76325410] %v5807_v25  ;;  %5534 = vmatprep.mubr.bf16.mxu1 %v5366_v44  ;;  %v9696_v44 = vld [vmem:[#allocation32_spill] sm:$0xff]  ;;  %v9716_v25 = vld [vmem:[#allocation61_spill] sm:$0xff] }
 0x59d   :  { %5535 = vmatmul.mubr.bf16.vlgmr.msra.gmra.mxu1 %v5365_v6  ;;  %v9717_v6 = vld [vmem:[#allocation64_spill] sm:$0xff] }
 0x59e   :  { %5547 = vmatpush1.bf16.msra.mxu1 %v8612_v28  ;;  %5578 = vmatprep.mubr.bf16.mxu1 %v5543_v24  ;;  %v9718_v24 = vld [vmem:[#allocation83_spill] sm:$0xff] }
 0x59f   :  { %5548 = vmatprep.subr.bf16.mxu1 %v8615_v11 }
 0x5a2   :  { %5549 = vmatpush1.bf16.msra.mxu1 %v8626_v42 }
 0x5a3   :  { %5550 = vmatprep.subr.bf16.mxu1 %v8630_v36 }
 0x5a6   :  { %5551 = vmatpush1.bf16.msra.mxu1 %v8644_v21  ;;  %v7186_v42 = vpop.eup %7185  ;;  %v9690_v21 = vld [vmem:[#allocation80_spill] sm:$0xff] }
 0x5a7   :  { %5552 = vmatprep.subr.bf16.mxu1 %v8647_v22  ;;  %v5542_v50 = vpack.c.bf16 %v7186_v42, %v7186_v42  ;;  %v9691_v22 = vld [vmem:[#allocation81_spill] sm:$0xff] }
 0x5a8   :  { %v9723_v42 = vld [vmem:[#allocation73_spill] sm:$0xff] }
 0x5aa   :  { %5553 = vmatpush1.bf16.msra.mxu1 %v8656_v62  ;;  %v9692_v62 = vld [vmem:[#allocation82_spill] sm:$0xff] }
 0x5ab   :  { %5554 = vmatprep.subr.bf16.mxu1 %v8659_v2  ;;  %v9693_v2 = vld [vmem:[#allocation30_spill] sm:$0xff] }
 0x5ae   :  { %5555 = vmatpush1.bf16.msra.mxu1 %v8668_v58 }
 0x5af   :  { %5556 = vmatprep.subr.bf16.mxu1 %v8671_v14 }
 0x5b2   :  { %5557 = vmatpush1.bf16.msra.mxu1 %v8680_v18 }
 0x5b3   :  { %5558 = vmatprep.subr.bf16.mxu1 %v8683_v60 }
 0x5b6   :  { %5559 = vmatpush1.bf16.msra.mxu1 %v8692_v61  ;;  %v9068_v61 = vld [vmem:[%s9146_s13] ss:$0 sm:$0xff] }
 0x5b7   :  { %5560 = vmatprep.subr.bf16.mxu1 %v9666_v35  ;;  %v9699_v35 = vld [vmem:[#allocation35_spill] sm:$0xff] }
 0x5ba   :  { %5561 = vmatpush1.bf16.msra.mxu1 %v9667_v8  ;;  %v9700_v8 = vld [vmem:[#allocation36_spill] sm:$0xff] }
 0x5bb   :  { %5562 = vmatprep.subr.bf16.mxu1 %v9668_v51  ;;  %v9701_v51 = vld [vmem:[#allocation37_spill] sm:$0xff] }
 0x5be   :  { %5563 = vmatpush2.bf16.msra.mxu1 %v9669_v52  ;;  %v9702_v52 = vld [vmem:[#allocation38_spill] sm:$0xff] }
 0x5bf   :  { %5564 = vmatprep.subr.bf16.mxu1 %v9670_v34  ;;  %v9703_v34 = vld [vmem:[#allocation39_spill] sm:$0xff] }
 0x5c2   :  { %5565 = vmatpush2.bf16.msra.mxu1 %v9671_v0  ;;  %v9704_v0 = vld [vmem:[#allocation40_spill] sm:$0xff] }
 0x5c3   :  { %5566 = vmatprep.subr.bf16.mxu1 %v9672_v56  ;;  %v9705_v56 = vld [vmem:[#allocation41_spill] sm:$0xff] }
 0x5c6   :  { %5567 = vmatpush2.bf16.msra.mxu1 %v9673_v47  ;;  %v9706_v47 = vld [vmem:[#allocation42_spill] sm:$0xff] }
 0x5c7   :  { %5568 = vmatprep.subr.bf16.mxu1 %v9674_v38  ;;  %v9707_v38 = vld [vmem:[#allocation44_spill] sm:$0xff] }
 0x5ca   :  { %5569 = vmatpush2.bf16.msra.mxu1 %v9675_v48 }
 0x5cb   :  { %5570 = vmatprep.subr.bf16.mxu1 %v9676_v7 }
 0x5ce   :  { %5571 = vmatpush2.bf16.msra.mxu1 %v9677_v20 }
 0x5cf   :  { %5572 = vmatprep.subr.bf16.mxu1 %v9678_v49  ;;  %v9694_v49 = vld [vmem:[#allocation149_spill] sm:$0xff] }
 0x5d0   :  { %7187 = vtanh.f32 %v9694_v49 }
 0x5d1   :  { %7189 = vtanh.f32 %v9718_v24 }
 0x5d2   :  { %5573 = vmatpush2.bf16.msra.mxu1 %v9679_v40 }
 0x5d3   :  { %v5621_v28 = vpop.f32.mrf.mxu0  ;;  %5574 = vmatprep.subr.bf16.mxu1 %v9680_v32 }
 0x5d5   :  { %v5623_v11 = vpop.f32.mrf.mxu0 }
 0x5d6   :  { %5575 = vmatpush2.bf16.msra.mxu1 %v9681_v59 }
 0x5d7   :  { %v5625_v46 = vpop.f32.mrf.mxu0  ;;  %5576 = vmatprep.subr.bf16.mxu1 %v9682_v10 }
 0x5d8   :  { %v9722_v46 = vld [vmem:[#allocation72_spill] sm:$0xff] }
 0x5d9   :  { %v5626_v36 = vpop.f32.mrf.mxu0 }
 0x5da   :  { %5577 = vmatpush2.bf16.msra.mxu1 %v9683_v53  ;;  %v9724_v36 = vld [vmem:[#allocation76_spill] sm:$0xff] }
 0x5db   :  { %6550 = vmatprep.subr.bf16.mxu1 %v8830_v45 }
 0x5dd   :  { %5579 = vmatmul.mubr.bf16.vlgmr.msra.gmra.mxu1 %v5542_v50  ;;  %v9725_v50 = vld [vmem:[#allocation77_spill] sm:$0xff] }
 0x5de   :  { %6551 = vmatpush3.bf16.msra.mxu1 %v8835_v30 }
 0x5df   :  { %6552 = vmatprep.subr.bf16.mxu1 %v8840_v5 }
 0x5e2   :  { %6553 = vmatpush3.bf16.msra.mxu1 %v8848_v37 }
 0x5e3   :  { %6554 = vmatprep.subr.bf16.mxu1 %v8855_v19 }
 0x5e6   :  { %6555 = vmatpush3.bf16.msra.mxu1 %v8862_v41 }
 0x5e7   :  { %6556 = vmatprep.subr.bf16.mxu1 %v8869_v13  ;;  %v7188_v13 = vpop.eup %7187 }
 0x5ea   :  { %6557 = vmatpush3.bf16.msra.mxu1 %v8876_v63 }
 0x5eb   :  { %6558 = vmatprep.subr.bf16.mxu1 %v8883_v31 }
 0x5ee   :  { %6559 = vmatpush3.bf16.msra.mxu1 %v8890_v1 }
 0x5ef   :  { %6560 = vmatprep.subr.bf16.mxu1 %v8897_v29  ;;  %v5675_v29 = vpack.c.bf16 %v7188_v13, %v7188_v13 }
 0x5f2   :  { %6561 = vmatpush3.bf16.msra.mxu1 %v8919_v27  ;;  %v9695_v27 = vld [vmem:[#allocation31_spill] sm:$0xff] }
 0x5f3   :  { %6562 = vmatprep.subr.bf16.mxu1 %v8928_v9 }
 0x5f6   :  { %6563 = vmatpush3.bf16.msra.mxu1 %v9690_v21  ;;  %v7190_v21 = vpop.eup %7189 }
 0x5f7   :  { %6564 = vmatprep.subr.bf16.mxu1 %v9691_v22  ;;  %v9726_v22 = vld [vmem:[#allocation79_spill] sm:$0xff] }
 0x5fa   :  { %6565 = vmatpush3.bf16.msra.mxu1 %v9692_v62  ;;  %v5674_v62 = vpack.c.bf16 %v7190_v21, %v7190_v21 }
 0x5fb   :  { %5717 = vmatprep.subr.bf16.mxu1 %v9693_v2 }
 0x613   :  { %v9061_v4 = vpop.f32.mrf.mxu0 }
 0x615   :  { %v9063_v58 = vpop.f32.mrf.mxu0 }
 0x617   :  { %v5714_v14 = vpop.f32.mrf.mxu0 }
 0x619   :  { %v5715_v18 = vpop.f32.mrf.mxu0 }
 0x65d   :  { %v6544_v60 = vpop.f32.mrf.mxu1 }
 0x65f   :  { %v6545_v53 = vpop.f32.mrf.mxu1 }
 0x660   :  { %v6546_v10 = vadd.f32 %v6545_v53, %v6544_v60 }
 0x661   :  { %v6547_v59 = vpop.f32.mrf.mxu1 }
 0x662   :  { %v5537_v32 = vadd.f32 %v6546_v10, %v9068_v61  ;;  %v5711_v59 = vadd.f32 %v9061_v4, %v9005_v57 }
 0x663   :  { %v6548_v40 = vpop.f32.mrf.mxu1 }
 0x664   :  { %5802 = vst [vmem:[%s9149_s16] sm:$0x3] %v5537_v32  ;;  %v5713_v40 = vadd.f32 %v9063_v58, %v9008_v16 }
 0x69d   :  { %v5580_v20 = vpop.f32.mrf.mxu1 }
 0x69e   :  { %v5581_v7 = vadd.f32 %v5580_v20, %v9005_v57 }
 0x69f   :  { %v5582_v48 = vpop.f32.mrf.mxu1 }
 0x6a0   :  { %v5622_v9 = vadd.f32 %v5621_v28, %v5581_v7  ;;  %v5583_v45 = vadd.f32 %v5582_v48, %v9008_v16  ;;  %v9720_v28 = vld [vmem:[#allocation68_spill] sm:$0xff] }
 0x6a1   :  { %v5584_v30 = vpop.f32.mrf.mxu1 }
 0x6a2   :  { %v5624_v5 = vadd.f32 %v5623_v11, %v5583_v45  ;;  %v5628_v37 = vmax.f32 %v5622_v9, 0.0  ;;  %v9721_v11 = vld [vmem:[#allocation69_spill] sm:$0xff] }
 0x6a3   :  { %v5585_v19 = vpop.f32.mrf.mxu1 }
 0x6a4   :  { %v5629_v41 = vmax.f32 %v5624_v5, 0.0  ;;  %v5630_v1 = vpack.c.bf16 %v5628_v37, %v5628_v37 }
 0x6a6   :  { %v5631_v63 = vpack.c.bf16 %v5629_v41, %v5629_v41  ;;  %v5819_v31 = vcombine.low %v5628_v37, %v5629_v41 }
 0x6a8   :  { %5664 = vmatprep.mubr.bf16.mxu1 %v5631_v63  ;;  %6527 = vst.sshfl [vmem:[#allocation18] sm:$0x33 pattern:$0x76325410] %v5819_v31 }
 0x6a9   :  { %5665 = vmatmul.mubr.bf16.vlgmr.msra.gmra.mxu1 %v5630_v1 }
 0x6aa   :  { %5718 = vmatpush1.bf16.msra.mxu1 %v9695_v27  ;;  %5749 = vmatprep.mubr.bf16.mxu1 %v5675_v29 }
 0x6ab   :  { %5719 = vmatprep.subr.bf16.mxu1 %v9696_v44 }
 0x6ae   :  { %5720 = vmatpush1.bf16.msra.mxu1 %v9697_v12 }
 0x6af   :  { %5721 = vmatprep.subr.bf16.mxu1 %v9698_v3 }
 0x6b2   :  { %5722 = vmatpush1.bf16.msra.mxu1 %v9699_v35 }
 0x6b3   :  { %5723 = vmatprep.subr.bf16.mxu1 %v9700_v8 }
 0x6b6   :  { %5724 = vmatpush1.bf16.msra.mxu1 %v9701_v51 }
 0x6b7   :  { %5725 = vmatprep.subr.bf16.mxu1 %v9702_v52 }
 0x6ba   :  { %5726 = vmatpush1.bf16.msra.mxu1 %v9703_v34 }
 0x6bb   :  { %5727 = vmatprep.subr.bf16.mxu1 %v9704_v0 }
 0x6be   :  { %5728 = vmatpush1.bf16.msra.mxu1 %v9705_v56 }
 0x6bf   :  { %5729 = vmatprep.subr.bf16.mxu1 %v9706_v47 }
 0x6c2   :  { %5730 = vmatpush1.bf16.msra.mxu1 %v9707_v38 }
 0x6c3   :  { %5731 = vmatprep.subr.bf16.mxu1 %v9708_v23 }
 0x6c6   :  { %5732 = vmatpush1.bf16.msra.mxu1 %v9709_v26 }
 0x6c7   :  { %5733 = vmatprep.subr.bf16.mxu1 %v9710_v55 }
 0x6ca   :  { %5734 = vmatpush2.bf16.msra.mxu1 %v9711_v15 }
 0x6cb   :  { %5735 = vmatprep.subr.bf16.mxu1 %v9712_v39 }
 0x6ce   :  { %5736 = vmatpush2.bf16.msra.mxu1 %v9713_v43 }
 0x6cf   :  { %5737 = vmatprep.subr.bf16.mxu1 %v9714_v33 }
 0x6d2   :  { %5738 = vmatpush2.bf16.msra.mxu1 %v9715_v54 }
 0x6d3   :  { %5739 = vmatprep.subr.bf16.mxu1 %v9716_v25 }
 0x6d6   :  { %5740 = vmatpush2.bf16.msra.mxu1 %v9717_v6 }
 0x6d7   :  { %5741 = vmatprep.subr.bf16.mxu1 %v9719_v17 }
 0x6da   :  { %5742 = vmatpush2.bf16.msra.mxu1 %v9720_v28 }
 0x6db   :  { %5743 = vmatprep.subr.bf16.mxu1 %v9721_v11 }
 0x6de   :  { %5744 = vmatpush2.bf16.msra.mxu1 %v9722_v46 }
 0x6df   :  { %5745 = vmatprep.subr.bf16.mxu1 %v9723_v42 }
 0x6e2   :  { %5746 = vmatpush2.bf16.msra.mxu1 %v9724_v36 }
 0x6e3   :  { %5747 = vmatprep.subr.bf16.mxu1 %v9725_v50 }
 0x6e6   :  { %5748 = vmatpush2.bf16.msra.mxu1 %v9726_v22 }
 0x6e9   :  { %5750 = vmatmul.mubr.bf16.vlgmr.msra.gmra.mxu1 %v5674_v62 }
 0x769   :  { %v6566_v2 = vpop.f32.mrf.mxu1 }
 0x76b   :  { %v6567_v14 = vpop.f32.mrf.mxu1 }
 0x76c   :  { %v6568_v18 = vadd.f32 %v6567_v14, %v6566_v2 }
 0x76d   :  { %v6569_v60 = vpop.f32.mrf.mxu1 }
 0x76e   :  { %v5667_v53 = vadd.f32 %v6568_v18, %v9068_v61 }
 0x76f   :  { %v6570_v10 = vpop.f32.mrf.mxu1 }
 0x770   :  { %5803 = vst [vmem:[%s9150_s17] sm:$0x3] %v5667_v53  ;;  %s5845_s17 = sshll.u32 %s7538_s2, 4  ;;  %s5846_s17 = int_to_ptr.vmem [resolvable:$true] %s5845_s17 }
 0x771   :  { %s7430_s25 = scalar_lea.vmem %s5846_s17, 256  ;;  %p7435_p8 = scmp.lt.s32.totalorder %s5846_s17, %s5846_s17 }
 0x772   :  { %p7431_p7 = scmp.ne.s32.totalorder %s5846_s17, %s7430_s25  ;;  %p7436_p9 = scmp.lt.s32.totalorder %s7430_s25, %s7430_s25 }
 0x774   :  { %p7437_p10 = por %p7436_p9, %p7435_p8 }
 0x776   :  { %p7438_p11 = pnand %p7437_p10, %p7431_p7 }
 0x7a9   :  { %v5751_v32 = vpop.f32.mrf.mxu1 }
 0x7aa   :  { %v5752_v49 = vadd.f32 %v5751_v32, %v5711_v59 }
 0x7ab   :  { %v5753_v20 = vpop.f32.mrf.mxu1 }
 0x7ac   :  { %v5754_v7 = vadd.f32 %v5753_v20, %v5713_v40  ;;  %v5758_v48 = vmax.f32 %v5752_v49, 0.0 }
 0x7ad   :  { %v5755_v9 = vpop.f32.mrf.mxu1 }
 0x7ae   :  { %v5759_v45 = vmax.f32 %v5754_v7, 0.0  ;;  %v5760_v37 = vpack.c.bf16 %v5758_v48, %v5758_v48 }
 0x7af   :  { %v5756_v30 = vpop.f32.mrf.mxu1 }
 0x7b0   :  { %v5761_v5 = vpack.c.bf16 %v5759_v45, %v5759_v45 }
 0x7b2   :  { %5794 = vmatprep.mubr.bf16.mxu0 %v5761_v5 }
 0x7b3   :  { %5795 = vmatmul.mubr.bf16.vlgmr.msra.gmra.mxu0 %v5760_v37 }
 0x7b4   :  { %7441 = shalt.err (!%p7438_p11)
}
 0x7b5   :  { %5848 = dma.vmem_to_hbm [thread:$0]  %s5846_s17, 256, %s9148_s15, [#allocation16]  }
 0x7b6   :  { %s7450_s26 = scalar_lea.vmem %s5836_s23, 256  ;;  %p7455_p13 = scmp.lt.s32.totalorder %s5836_s23, %s5836_s23 }
 0x7b7   :  { %p7451_p12 = scmp.ne.s32.totalorder %s5836_s23, %s7450_s26  ;;  %p7456_p0 = scmp.lt.s32.totalorder %s7450_s26, %s7450_s26 }
 0x7b9   :  { %p7457_p1 = por %p7456_p0, %p7455_p13 }
 0x7bb   :  { %p7458_p2 = pnand %p7457_p1, %p7451_p12 }
 0x7bd   :  { %7461 = shalt.err (!%p7458_p2)
}
 0x7be   :  { %5838 = dma.vmem_to_hbm [thread:$0]  %s5836_s23, 256, %s9147_s14, [#allocation4]  }
 0x7bf   :  { %s7540_s28 = smov [#allocation17]   ;;  %s7541_s4 = smov [#allocation18]  }
 0x7c0   :  { %s5861_s6 = sshll.u32 %s7540_s28, 4  ;;  %s5871_s9 = sshll.u32 %s7541_s4, 4  ;;  %s5862_s6 = int_to_ptr.vmem [resolvable:$true] %s5861_s6  ;;  %s5872_s9 = int_to_ptr.vmem [resolvable:$true] %s5871_s9 }
 0x7c1   :  { %s7470_s11 = scalar_lea.vmem %s5862_s6, 64  ;;  %p7475_p4 = scmp.lt.s32.totalorder %s5862_s6, %s5862_s6 }
 0x7c2   :  { %p7471_p3 = scmp.ne.s32.totalorder %s5862_s6, %s7470_s11  ;;  %p7476_p5 = scmp.lt.s32.totalorder %s7470_s11, %s7470_s11 }
 0x7c4   :  { %p7477_p6 = por %p7476_p5, %p7475_p4 }
 0x7c6   :  { %p7478_p7 = pnand %p7477_p6, %p7471_p3 }
 0x7c8   :  { %7481 = shalt.err (!%p7478_p7)
}
 0x7c9   :  { %5864 = dma.vmem_to_hbm [thread:$0]  %s5862_s6, 64, %s9152_s19, [#allocation16]  }
 0x7ca   :  { %s7490_s30 = scalar_lea.vmem %s5872_s9, 64  ;;  %p7495_p9 = scmp.lt.s32.totalorder %s5872_s9, %s5872_s9 }
 0x7cb   :  { %p7491_p8 = scmp.ne.s32.totalorder %s5872_s9, %s7490_s30  ;;  %p7496_p10 = scmp.lt.s32.totalorder %s7490_s30, %s7490_s30 }
 0x7cd   :  { %p7497_p11 = por %p7496_p10, %p7495_p9 }
 0x7cf   :  { %p7498_p12 = pnand %p7497_p11, %p7491_p8 }
 0x7d1   :  { %7501 = shalt.err (!%p7498_p12)
}
 0x7d2   :  { %5874 = dma.vmem_to_hbm [thread:$0]  %s5872_s9, 64, %s9153_s20, [#allocation19]  }
 0x873   :  { %v6588_v57 = vpop.f32.mrf.mxu0 }
 0x875   :  { %v6589_v16 = vpop.f32.mrf.mxu0 }
 0x876   :  { %v6590_v4 = vadd.f32 %v6589_v16, %v6588_v57 }
 0x877   :  { %v6591_v58 = vpop.f32.mrf.mxu0 }
 0x878   :  { %v5797_v19 = vadd.f32 %v6590_v4, %v9068_v61 }
 0x879   :  { %v6592_v41 = vpop.f32.mrf.mxu0 }
 0x87a   :  { %5804 = vst [vmem:[%s9151_s18] sm:$0x3] %v5797_v19 }
 0x87b   :  { %7518 = dma.done.wait [#allocation4], 256  }
 0x87c   :  { %7519 = vsyncadd [#allocation4], 4294967040 }
 0x87d   :  { %7520 = dma.done.wait [#allocation16], 320  }
 0x87e   :  { %7521 = vsyncadd [#allocation16], 4294966976 }
 0x87f   :  { %7522 = dma.done.wait [#allocation19], 64  }
 0x880   :  { %7523 = vsyncadd [#allocation19], 4294967232 }
 0x881   :  { %5893 = vsyncpa [#allocation3], 1 }
 0x882   :  { %5894 = vsyncpa [#allocation6], 1 }
 0x883   :  { %5895 = vsyncpa [#allocation9], 1 }
 0x884   :  { %5896 = vsyncpa [#allocation12], 1 }
 0x885   :  { %5897 = vsyncpa [#allocation4], 1 }
 0x886   :  { %5898 = vsyncpa [#allocation16], 1 }
 0x887   :  { %5899 = vsyncpa [#allocation19], 1 }

</bundles_post_ra>
